<compile_context>
chip_gen: v7x
topology: tpu7x:2x2x1
jax: 0.10.0
libtpu: 0.0.40
codegen_flags: <defaults>
</compile_context>

<pallas_src>
import functools

import jax
import jax.numpy as jnp
from jax import lax
from jax.experimental import pallas as pl
from jax.experimental.pallas import tpu as pltpu


# ----------------------------------------------------------------------------
# Kernel
# ----------------------------------------------------------------------------
def _mlp_pinn_kernel(x_ref, w_in_ref, b_in_ref, w_h_ref, b_h_ref,
                     w_out_ref, b_out_ref, o_ref, *,
                     num_hidden_layers, d_in, use_bf16):
    mm_dtype = jnp.bfloat16 if use_bf16 else jnp.float32

    # ---- Input layer: (H, D_in) @ (D_in, T) + (H, 1) -> tanh ----
    if d_in <= 8:
        # VPU path: d_in broadcast-FMAs; avoids an MXU push/pop for a K=2
        # matmul (and keeps the raw input coordinates in f32).
        h = b_in_ref[...]                                        # (H, 1)
        for k in range(d_in):
            h = h + w_in_ref[:, k:k + 1] * x_ref[k:k + 1, :]     # -> (H, T)
    else:
        h = (jnp.dot(w_in_ref[...].astype(mm_dtype),
                     x_ref[...].astype(mm_dtype),
                     preferred_element_type=jnp.float32)
             + b_in_ref[...])
    h = jnp.tanh(h)

    # ---- Hidden stack: num_hidden_layers x [Linear(H,H) + tanh] ----
    def layer(l, h):
        z = jnp.dot(w_h_ref[l].astype(mm_dtype), h.astype(mm_dtype),
                    preferred_element_type=jnp.float32)
        return jnp.tanh(z + b_h_ref[l])

    if num_hidden_layers <= 8:
        # Static unroll: full schedule visible to the LLO scheduler. At H=32
        # each activation is only ~16 vregs per 2048-column tile, so no spills.
        for l in range(num_hidden_layers):
            h = layer(l, h)
    else:
        # Deep stacks: in-kernel loop with a small unroll window.
        h = lax.fori_loop(0, num_hidden_layers, layer, h, unroll=2)

    # ---- Output layer: (D_out, H) @ (H, T) + (D_out, 1), no activation ----
    o_ref[...] = (
        jnp.dot(w_out_ref[...].astype(mm_dtype), h.astype(mm_dtype),
                preferred_element_type=jnp.float32)
        + b_out_ref[...]
    ).astype(o_ref.dtype)


# ----------------------------------------------------------------------------
# Tiling / VMEM helpers
# ----------------------------------------------------------------------------
def _choose_tiling(n, max_tile_n):
    """Pick (tile_n, grid, n_pad): lane-dense tiles, grid even & >=2 if possible."""
    lane = 128
    n_lanes = (n + lane - 1) // lane                # batch in 128-wide lane groups
    max_tile_lanes = max(1, max_tile_n // lane)

    grid = max(1, -(-n_lanes // max_tile_lanes))    # ceil
    if n_lanes >= 2:
        # v7x has 2 TensorCores; the "parallel" grid axis is how work shards
        # across them, so keep the grid >= 2 and even. Costs one extra ~0.35us
        # step on single-TC chips (v5e/v6e) — negligible.
        grid = max(grid, 2)
        if grid % 2:
            grid += 1

    tile_lanes = -(-n_lanes // grid)                # ceil: even split of lane groups
    tile_n = tile_lanes * lane
    n_pad = tile_n * grid
    return tile_n, grid, n_pad


def _vmem_limit_bytes(d_in, d_out, h_dim, n_hidden_layers, tile_n):
    f32 = 4
    est = (2 * d_in * tile_n                              # x tile (double-buffered)
           + 2 * d_out * tile_n                           # out tile (double-buffered)
           + h_dim * d_in + h_dim                         # input-layer weights
           + n_hidden_layers * (h_dim * h_dim + h_dim)    # hidden weight stack
           + d_out * h_dim + d_out                        # output-layer weights
           + 6 * h_dim * tile_n) * f32                    # activation working set
    # At least the 32 MiB v6e/v7x scoped default (v5e's default is only 16 MiB),
    # and comfortably under the smallest physical VMEM (v7x: 64 MiB / core).
    return int(min(max(2 * est, 32 * 1024 * 1024), 60 * 1024 * 1024))


# ----------------------------------------------------------------------------
# Wrapper
# ----------------------------------------------------------------------------
def mlp_pinn_forward(x, params, *, max_tile_n=4096, use_bf16_matmul=False):
    """PyTorch-style interface: x (N, num_input) f32 -> (N, num_output) f32."""
    w_in, b_in = params["w_in"], params["b_in"]        # (H, D_in), (H, 1)
    w_h, b_h = params["w_h"], params["b_h"]            # (L-1, H, H), (L-1, H, 1)
    w_out, b_out = params["w_out"], params["b_out"]    # (D_out, H), (D_out, 1)

    n, d_in = x.shape
    h_dim = w_in.shape[0]
    d_out = w_out.shape[0]
    n_hidden_layers = w_h.shape[0]
    assert n_hidden_layers >= 1, "need num_layers >= 2 (at least one hidden block)"

    tile_n, grid_n, n_pad = _choose_tiling(n, max_tile_n)

    # batch-on-lanes layout: (D_in, N_pad); pad batch with zeros, sliced off after.
    # TODO(synk): for multi-million-point batches, fuse this transpose/pad into
    # the kernel to save a full HBM read+write of x.
    xt = x.T
    if n_pad != n:
        xt = jnp.pad(xt, ((0, 0), (0, n_pad - n)))

    kernel = functools.partial(_mlp_pinn_kernel,
                               num_hidden_layers=n_hidden_layers,
                               d_in=d_in, use_bf16=use_bf16_matmul)

    # TODO(synk): for very large H*L (w_h stack approaching VMEM) stream hidden
    # weights per layer (layer grid axis or manual make_async_copy double-buffer)
    # instead of keeping the whole (L, H, H) stack resident.

    def call(weight_mode):
        wkw = {} if weight_mode is None else {"pipeline_mode": weight_mode}
        in_specs = [
            pl.BlockSpec((d_in, tile_n), lambda i: (0, i)),                     # x tile
            pl.BlockSpec((h_dim, d_in), lambda i: (0, 0), **wkw),               # w_in
            pl.BlockSpec((h_dim, 1), lambda i: (0, 0), **wkw),                  # b_in
            pl.BlockSpec((n_hidden_layers, h_dim, h_dim),
                         lambda i: (0, 0, 0), **wkw),                           # w_h
            pl.BlockSpec((n_hidden_layers, h_dim, 1),
                         lambda i: (0, 0, 0), **wkw),                           # b_h
            pl.BlockSpec((d_out, h_dim), lambda i: (0, 0), **wkw),              # w_out
            pl.BlockSpec((d_out, 1), lambda i: (0, 0), **wkw),                  # b_out
        ]
        return pl.pallas_call(
            kernel,
            out_shape=jax.ShapeDtypeStruct((d_out, n_pad), jnp.float32),
            grid_spec=pltpu.PrefetchScalarGridSpec(
                num_scalar_prefetch=0,
                grid=(grid_n,),
                in_specs=in_specs,
                out_specs=pl.BlockSpec((d_out, tile_n), lambda i: (0, i)),      # lane-dense
            ),
            compiler_params=pltpu.CompilerParams(
                dimension_semantics=("parallel",),
                vmem_limit_bytes=_vmem_limit_bytes(
                    d_in, d_out, h_dim, n_hidden_layers, tile_n)),
        )(xt, w_in, b_in, w_h, b_h, w_out, b_out)

    try:
        # Grid-invariant weight/bias blocks only need a single VMEM buffer.
        out_t = call(pl.Buffered(1))
    except Exception:
        # Fallback for jax versions without per-BlockSpec buffer-count control:
        # default double-buffered specs, identical numerics.
        out_t = call(None)

    return out_t[:, :n].T                      # back to (N, D_out)


# ----------------------------------------------------------------------------
# Params / reference
# ----------------------------------------------------------------------------
def init_params(key, num_input, num_output, num_hidden, num_layers):
    """Deterministic init mimicking nn.Linear's U(-1/sqrt(fan_in), 1/sqrt(fan_in)).

    Weights stored PyTorch-native (out_features, in_features); biases as
    (out_features, 1) so they broadcast over the lane (batch) axis in-kernel.
    """
    assert num_layers >= 2
    ks = jax.random.split(key, 6)

    def uni(k, shape, fan_in):
        bound = 1.0 / jnp.sqrt(jnp.float32(fan_in))
        return jax.random.uniform(k, shape, jnp.float32, -bound, bound)

    n_hidden_layers = num_layers - 1
    return {
        "w_in": uni(ks[0], (num_hidden, num_input), num_input),
        "b_in": uni(ks[1], (num_hidden, 1), num_input),
        "w_h": uni(ks[2], (n_hidden_layers, num_hidden, num_hidden), num_hidden),
        "b_h": uni(ks[3], (n_hidden_layers, num_hidden, 1), num_hidden),
        "w_out": uni(ks[4], (num_output, num_hidden), num_hidden),
        "b_out": uni(ks[5], (num_output, 1), num_hidden),
    }


def mlp_pinn_reference(x, params):
    h = jnp.tanh(x @ params["w_in"].T + params["b_in"].T)
    for l in range(params["w_h"].shape[0]):
        h = jnp.tanh(h @ params["w_h"][l].T + params["b_h"][l].T)
    return h @ params["w_out"].T + params["b_out"].T


# ----------------------------------------------------------------------------
# Self-test
# ----------------------------------------------------------------------------
if __name__ == "__main__":
    # Typical PINN sizes: 2 input coords (x, t), 1 output field, 32 hidden, 3 layers.
    num_input, num_output, num_hidden, num_layers = 2, 1, 32, 3

    key = jax.random.PRNGKey(0)
    k_x, k_x2, k_x3, k_p, k_p2 = jax.random.split(key, 5)
    params = init_params(k_p, num_input, num_output, num_hidden, num_layers)

    # Case 1: collocation batch -> even grid of 2 steps (one per v7x TC),
    # tile_n=2048 lane-dense columns each (was 8 steps of 512 before).
    batch = 4096
    x = jax.random.normal(k_x, (batch, num_input), jnp.float32)
    out = jax.block_until_ready(mlp_pinn_forward(x, params))
    ref = mlp_pinn_reference(x, params)
    assert out.shape == (batch, num_output)
    assert jnp.allclose(out, ref, atol=1e-5, rtol=1e-5), \
        f"max abs err {jnp.max(jnp.abs(out - ref))}"

    # Case 2: small, non-tile-aligned batch exercises the pad-and-slice path.
    batch2 = 100
    x2 = jax.random.normal(k_x2, (batch2, num_input), jnp.float32)
    out2 = jax.block_until_ready(mlp_pinn_forward(x2, params))
    ref2 = mlp_pinn_reference(x2, params)
    assert out2.shape == (batch2, num_output)
    assert jnp.allclose(out2, ref2, atol=1e-5, rtol=1e-5), \
        f"max abs err {jnp.max(jnp.abs(out2 - ref2))}"

    # Case 3: optional bf16-MXU path (looser tolerance; f32 remains the default).
    out3 = jax.block_until_ready(mlp_pinn_forward(x, params, use_bf16_matmul=True))
    assert jnp.allclose(out3, ref, atol=5e-2, rtol=5e-2), \
        f"bf16 max abs err {jnp.max(jnp.abs(out3 - ref))}"

    # Case 4: deeper hidden stack (11 hidden blocks) exercises the fori_loop path.
    params_deep = init_params(k_p2, num_input, num_output, num_hidden, 12)
    x3 = jax.random.normal(k_x3, (512, num_input), jnp.float32)
    out4 = jax.block_until_ready(mlp_pinn_forward(x3, params_deep))
    ref4 = mlp_pinn_reference(x3, params_deep)
    assert out4.shape == (512, num_output)
    assert jnp.allclose(out4, ref4, atol=1e-4, rtol=1e-4), \
        f"deep max abs err {jnp.max(jnp.abs(out4 - ref4))}"

    print("KERNEL_OK")
</pallas_src>

<mosaic_0001>
module attributes {stable_mosaic.version = 11 : i64} {
  func.func @_mlp_pinn_kernel(%arg0: i32, %arg1: memref<2x2048xf32, #tpu.memory_space<vmem>>, %arg2: memref<32x2xf32, #tpu.memory_space<vmem>>, %arg3: memref<32x1xf32, #tpu.memory_space<vmem>>, %arg4: memref<2x32x32xf32, #tpu.memory_space<vmem>>, %arg5: memref<2x32x1xf32, #tpu.memory_space<vmem>>, %arg6: memref<1x32xf32, #tpu.memory_space<vmem>>, %arg7: memref<1x1xf32, #tpu.memory_space<vmem>>, %arg8: memref<1x2048xf32, #tpu.memory_space<vmem>>) attributes {dimension_semantics = [#tpu.dimension_semantics<parallel>], iteration_bounds = array<i64: 2>, scalar_prefetch = 0 : i64, scratch_operands = 0 : i64, tpu.core_type = #tpu.core_type<tc>, window_params = [{transform_indices = @transform_0, window_bounds = array<i64: 2, 2048>}, {pipeline_mode = #tpu.pipeline_mode<synchronous>, transform_indices = @transform_1, window_bounds = array<i64: 32, 2>}, {pipeline_mode = #tpu.pipeline_mode<synchronous>, transform_indices = @transform_2, window_bounds = array<i64: 32, 1>}, {pipeline_mode = #tpu.pipeline_mode<synchronous>, transform_indices = @transform_3, window_bounds = array<i64: 2, 32, 32>}, {pipeline_mode = #tpu.pipeline_mode<synchronous>, transform_indices = @transform_4, window_bounds = array<i64: 2, 32, 1>}, {pipeline_mode = #tpu.pipeline_mode<synchronous>, transform_indices = @transform_5, window_bounds = array<i64: 1, 32>}, {pipeline_mode = #tpu.pipeline_mode<synchronous>, transform_indices = @transform_6, window_bounds = array<i64: 1, 1>}, {transform_indices = @transform_7, window_bounds = array<i64: 1, 2048>}]} {
    %c0 = arith.constant 0 : index
    %c0_0 = arith.constant 0 : index
    %0 = vector.load %arg3[%c0, %c0_0] : memref<32x1xf32, #tpu.memory_space<vmem>>, vector<32x1xf32>
    %c0_1 = arith.constant 0 : index
    %c0_2 = arith.constant 0 : index
    %1 = vector.load %arg2[%c0_1, %c0_2] : memref<32x2xf32, #tpu.memory_space<vmem>>, vector<32x1xf32>
    %c0_3 = arith.constant 0 : index
    %c0_4 = arith.constant 0 : index
    %2 = vector.load %arg1[%c0_3, %c0_4] : memref<2x2048xf32, #tpu.memory_space<vmem>>, vector<1x2048xf32>
    %3 = vector.broadcast %1 : vector<32x1xf32> to vector<32x2048xf32>
    %4 = vector.broadcast %2 : vector<1x2048xf32> to vector<32x2048xf32>
    %5 = arith.mulf %3, %4 : vector<32x2048xf32>
    %6 = vector.broadcast %0 : vector<32x1xf32> to vector<32x2048xf32>
    %7 = arith.addf %6, %5 : vector<32x2048xf32>
    %c0_5 = arith.constant 0 : index
    %c1 = arith.constant 1 : index
    %8 = vector.load %arg2[%c0_5, %c1] : memref<32x2xf32, #tpu.memory_space<vmem>>, vector<32x1xf32>
    %c1_6 = arith.constant 1 : index
    %c0_7 = arith.constant 0 : index
    %9 = vector.load %arg1[%c1_6, %c0_7] : memref<2x2048xf32, #tpu.memory_space<vmem>>, vector<1x2048xf32>
    %10 = vector.broadcast %8 : vector<32x1xf32> to vector<32x2048xf32>
    %11 = vector.broadcast %9 : vector<1x2048xf32> to vector<32x2048xf32>
    %12 = arith.mulf %10, %11 : vector<32x2048xf32>
    %13 = arith.addf %7, %12 : vector<32x2048xf32>
    %14 = math.tanh %13 : vector<32x2048xf32>
    %c0_8 = arith.constant 0 : index
    %c0_9 = arith.constant 0 : index
    %c0_10 = arith.constant 0 : index
    %15 = vector.load %arg4[%c0_8, %c0_9, %c0_10] : memref<2x32x32xf32, #tpu.memory_space<vmem>>, vector<1x32x32xf32>
    %16 = vector.shape_cast %15 : vector<1x32x32xf32> to vector<32x32xf32>
    %cst = arith.constant dense<0.000000e+00> : vector<32x2048xf32>
    %17 = tpu.matmul %16, %14, %cst {dimension_numbers = #tpu.dot_dimension_numbers<[1], [0], [0], [1], [0, 0, 1, 1], [], []>} : vector<32x32xf32>, vector<32x2048xf32>, vector<32x2048xf32> -> vector<32x2048xf32>
    %c0_11 = arith.constant 0 : index
    %c0_12 = arith.constant 0 : index
    %c0_13 = arith.constant 0 : index
    %18 = vector.load %arg5[%c0_11, %c0_12, %c0_13] : memref<2x32x1xf32, #tpu.memory_space<vmem>>, vector<1x32x1xf32>
    %19 = vector.shape_cast %18 : vector<1x32x1xf32> to vector<32x1xf32>
    %20 = vector.broadcast %19 : vector<32x1xf32> to vector<32x2048xf32>
    %21 = arith.addf %17, %20 : vector<32x2048xf32>
    %22 = math.tanh %21 : vector<32x2048xf32>
    %c1_14 = arith.constant 1 : index
    %c0_15 = arith.constant 0 : index
    %c0_16 = arith.constant 0 : index
    %23 = vector.load %arg4[%c1_14, %c0_15, %c0_16] : memref<2x32x32xf32, #tpu.memory_space<vmem>>, vector<1x32x32xf32>
    %24 = vector.shape_cast %23 : vector<1x32x32xf32> to vector<32x32xf32>
    %cst_17 = arith.constant dense<0.000000e+00> : vector<32x2048xf32>
    %25 = tpu.matmul %24, %22, %cst_17 {dimension_numbers = #tpu.dot_dimension_numbers<[1], [0], [0], [1], [0, 0, 1, 1], [], []>} : vector<32x32xf32>, vector<32x2048xf32>, vector<32x2048xf32> -> vector<32x2048xf32>
    %c1_18 = arith.constant 1 : index
    %c0_19 = arith.constant 0 : index
    %c0_20 = arith.constant 0 : index
    %26 = vector.load %arg5[%c1_18, %c0_19, %c0_20] : memref<2x32x1xf32, #tpu.memory_space<vmem>>, vector<1x32x1xf32>
    %27 = vector.shape_cast %26 : vector<1x32x1xf32> to vector<32x1xf32>
    %28 = vector.broadcast %27 : vector<32x1xf32> to vector<32x2048xf32>
    %29 = arith.addf %25, %28 : vector<32x2048xf32>
    %30 = math.tanh %29 : vector<32x2048xf32>
    %c0_21 = arith.constant 0 : index
    %c0_22 = arith.constant 0 : index
    %31 = vector.load %arg6[%c0_21, %c0_22] : memref<1x32xf32, #tpu.memory_space<vmem>>, vector<1x32xf32>
    %cst_23 = arith.constant dense<0.000000e+00> : vector<1x2048xf32>
    %32 = tpu.matmul %31, %30, %cst_23 {dimension_numbers = #tpu.dot_dimension_numbers<[1], [0], [0], [1], [0, 0, 1, 1], [], []>} : vector<1x32xf32>, vector<32x2048xf32>, vector<1x2048xf32> -> vector<1x2048xf32>
    %c0_24 = arith.constant 0 : index
    %c0_25 = arith.constant 0 : index
    %33 = vector.load %arg7[%c0_24, %c0_25] : memref<1x1xf32, #tpu.memory_space<vmem>>, vector<1x1xf32>
    %34 = vector.broadcast %33 : vector<1x1xf32> to vector<1x2048xf32>
    %35 = arith.addf %32, %34 : vector<1x2048xf32>
    %c0_26 = arith.constant 0 : index
    %c0_27 = arith.constant 0 : index
    %36 = vector.load %arg8[%c0_26, %c0_27] : memref<1x2048xf32, #tpu.memory_space<vmem>>, vector<1x2048xf32>
    tpu.vector_store %arg8[%c0_26, %c0_27], %35 {strides = array<i32>} : memref<1x2048xf32, #tpu.memory_space<vmem>>, vector<1x2048xf32>,
    return
  }
  func.func @transform_0(%arg0: i32) -> (i32, i32) {
    %c0_i32 = arith.constant 0 : i32
    %c0_i32_0 = arith.constant 0 : i32
    return %c0_i32, %arg0 : i32, i32
  }
  func.func @transform_1(%arg0: i32) -> (i32, i32) {
    %c0_i32 = arith.constant 0 : i32
    %c0_i32_0 = arith.constant 0 : i32
    %c0_i32_1 = arith.constant 0 : i32
    return %c0_i32, %c0_i32_0 : i32, i32
  }
  func.func @transform_2(%arg0: i32) -> (i32, i32) {
    %c0_i32 = arith.constant 0 : i32
    %c0_i32_0 = arith.constant 0 : i32
    %c0_i32_1 = arith.constant 0 : i32
    return %c0_i32, %c0_i32_0 : i32, i32
  }
  func.func @transform_3(%arg0: i32) -> (i32, i32, i32) {
    %c0_i32 = arith.constant 0 : i32
    %c0_i32_0 = arith.constant 0 : i32
    %c0_i32_1 = arith.constant 0 : i32
    %c0_i32_2 = arith.constant 0 : i32
    return %c0_i32, %c0_i32_0, %c0_i32_1 : i32, i32, i32
  }
  func.func @transform_4(%arg0: i32) -> (i32, i32, i32) {
    %c0_i32 = arith.constant 0 : i32
    %c0_i32_0 = arith.constant 0 : i32
    %c0_i32_1 = arith.constant 0 : i32
    %c0_i32_2 = arith.constant 0 : i32
    return %c0_i32, %c0_i32_0, %c0_i32_1 : i32, i32, i32
  }
  func.func @transform_5(%arg0: i32) -> (i32, i32) {
    %c0_i32 = arith.constant 0 : i32
    %c0_i32_0 = arith.constant 0 : i32
    %c0_i32_1 = arith.constant 0 : i32
    return %c0_i32, %c0_i32_0 : i32, i32
  }
  func.func @transform_6(%arg0: i32) -> (i32, i32) {
    %c0_i32 = arith.constant 0 : i32
    %c0_i32_0 = arith.constant 0 : i32
    %c0_i32_1 = arith.constant 0 : i32
    return %c0_i32, %c0_i32_0 : i32, i32
  }
  func.func @transform_7(%arg0: i32) -> (i32, i32) {
    %c0_i32 = arith.constant 0 : i32
    %c0_i32_0 = arith.constant 0 : i32
    return %c0_i32, %arg0 : i32, i32
  }
}

module attributes {stable_mosaic.version = 11 : i64} {
  func.func @_mlp_pinn_kernel(%arg0: i32, %arg1: memref<2x2048xf32, #tpu.memory_space<vmem>>, %arg2: memref<32x2xf32, #tpu.memory_space<vmem>>, %arg3: memref<32x1xf32, #tpu.memory_space<vmem>>, %arg4: memref<2x32x32xf32, #tpu.memory_space<vmem>>, %arg5: memref<2x32x1xf32, #tpu.memory_space<vmem>>, %arg6: memref<1x32xf32, #tpu.memory_space<vmem>>, %arg7: memref<1x1xf32, #tpu.memory_space<vmem>>, %arg8: memref<1x2048xf32, #tpu.memory_space<vmem>>) attributes {dimension_semantics = [#tpu.dimension_semantics<parallel>], iteration_bounds = array<i64: 2>, scalar_prefetch = 0 : i64, scratch_operands = 0 : i64, tpu.core_type = #tpu.core_type<tc>, window_params = [{transform_indices = @transform_0, window_bounds = array<i64: 2, 2048>}, {pipeline_mode = #tpu.pipeline_mode<synchronous>, transform_indices = @transform_1, window_bounds = array<i64: 32, 2>}, {pipeline_mode = #tpu.pipeline_mode<synchronous>, transform_indices = @transform_2, window_bounds = array<i64: 32, 1>}, {pipeline_mode = #tpu.pipeline_mode<synchronous>, transform_indices = @transform_3, window_bounds = array<i64: 2, 32, 32>}, {pipeline_mode = #tpu.pipeline_mode<synchronous>, transform_indices = @transform_4, window_bounds = array<i64: 2, 32, 1>}, {pipeline_mode = #tpu.pipeline_mode<synchronous>, transform_indices = @transform_5, window_bounds = array<i64: 1, 32>}, {pipeline_mode = #tpu.pipeline_mode<synchronous>, transform_indices = @transform_6, window_bounds = array<i64: 1, 1>}, {transform_indices = @transform_7, window_bounds = array<i64: 1, 2048>}]} {
    %c0 = arith.constant 0 : index
    %c0_0 = arith.constant 0 : index
    %0 = vector.load %arg3[%c0, %c0_0] : memref<32x1xf32, #tpu.memory_space<vmem>>, vector<32x1xf32>
    %c0_1 = arith.constant 0 : index
    %c0_2 = arith.constant 0 : index
    %1 = vector.load %arg2[%c0_1, %c0_2] : memref<32x2xf32, #tpu.memory_space<vmem>>, vector<32x1xf32>
    %c0_3 = arith.constant 0 : index
    %c0_4 = arith.constant 0 : index
    %2 = vector.load %arg1[%c0_3, %c0_4] : memref<2x2048xf32, #tpu.memory_space<vmem>>, vector<1x2048xf32>
    %3 = vector.broadcast %1 : vector<32x1xf32> to vector<32x2048xf32>
    %4 = vector.broadcast %2 : vector<1x2048xf32> to vector<32x2048xf32>
    %5 = arith.mulf %3, %4 : vector<32x2048xf32>
    %6 = vector.broadcast %0 : vector<32x1xf32> to vector<32x2048xf32>
    %7 = arith.addf %6, %5 : vector<32x2048xf32>
    %c0_5 = arith.constant 0 : index
    %c1 = arith.constant 1 : index
    %8 = vector.load %arg2[%c0_5, %c1] : memref<32x2xf32, #tpu.memory_space<vmem>>, vector<32x1xf32>
    %c1_6 = arith.constant 1 : index
    %c0_7 = arith.constant 0 : index
    %9 = vector.load %arg1[%c1_6, %c0_7] : memref<2x2048xf32, #tpu.memory_space<vmem>>, vector<1x2048xf32>
    %10 = vector.broadcast %8 : vector<32x1xf32> to vector<32x2048xf32>
    %11 = vector.broadcast %9 : vector<1x2048xf32> to vector<32x2048xf32>
    %12 = arith.mulf %10, %11 : vector<32x2048xf32>
    %13 = arith.addf %7, %12 : vector<32x2048xf32>
    %14 = math.tanh %13 : vector<32x2048xf32>
    %c0_8 = arith.constant 0 : index
    %c0_9 = arith.constant 0 : index
    %c0_10 = arith.constant 0 : index
    %15 = vector.load %arg4[%c0_8, %c0_9, %c0_10] : memref<2x32x32xf32, #tpu.memory_space<vmem>>, vector<1x32x32xf32>
    %16 = vector.shape_cast %15 : vector<1x32x32xf32> to vector<32x32xf32>
    %cst = arith.constant dense<0.000000e+00> : vector<32x2048xf32>
    %17 = tpu.matmul %16, %14, %cst {dimension_numbers = #tpu.dot_dimension_numbers<[1], [0], [0], [1], [0, 0, 1, 1], [], []>} : vector<32x32xf32>, vector<32x2048xf32>, vector<32x2048xf32> -> vector<32x2048xf32>
    %c0_11 = arith.constant 0 : index
    %c0_12 = arith.constant 0 : index
    %c0_13 = arith.constant 0 : index
    %18 = vector.load %arg5[%c0_11, %c0_12, %c0_13] : memref<2x32x1xf32, #tpu.memory_space<vmem>>, vector<1x32x1xf32>
    %19 = vector.shape_cast %18 : vector<1x32x1xf32> to vector<32x1xf32>
    %20 = vector.broadcast %19 : vector<32x1xf32> to vector<32x2048xf32>
    %21 = arith.addf %17, %20 : vector<32x2048xf32>
    %22 = math.tanh %21 : vector<32x2048xf32>
    %c1_14 = arith.constant 1 : index
    %c0_15 = arith.constant 0 : index
    %c0_16 = arith.constant 0 : index
    %23 = vector.load %arg4[%c1_14, %c0_15, %c0_16] : memref<2x32x32xf32, #tpu.memory_space<vmem>>, vector<1x32x32xf32>
    %24 = vector.shape_cast %23 : vector<1x32x32xf32> to vector<32x32xf32>
    %cst_17 = arith.constant dense<0.000000e+00> : vector<32x2048xf32>
    %25 = tpu.matmul %24, %22, %cst_17 {dimension_numbers = #tpu.dot_dimension_numbers<[1], [0], [0], [1], [0, 0, 1, 1], [], []>} : vector<32x32xf32>, vector<32x2048xf32>, vector<32x2048xf32> -> vector<32x2048xf32>
    %c1_18 = arith.constant 1 : index
    %c0_19 = arith.constant 0 : index
    %c0_20 = arith.constant 0 : index
    %26 = vector.load %arg5[%c1_18, %c0_19, %c0_20] : memref<2x32x1xf32, #tpu.memory_space<vmem>>, vector<1x32x1xf32>
    %27 = vector.shape_cast %26 : vector<1x32x1xf32> to vector<32x1xf32>
    %28 = vector.broadcast %27 : vector<32x1xf32> to vector<32x2048xf32>
    %29 = arith.addf %25, %28 : vector<32x2048xf32>
    %30 = math.tanh %29 : vector<32x2048xf32>
    %c0_21 = arith.constant 0 : index
    %c0_22 = arith.constant 0 : index
    %31 = vector.load %arg6[%c0_21, %c0_22] : memref<1x32xf32, #tpu.memory_space<vmem>>, vector<1x32xf32>
    %cst_23 = arith.constant dense<0.000000e+00> : vector<1x2048xf32>
    %32 = tpu.matmul %31, %30, %cst_23 {dimension_numbers = #tpu.dot_dimension_numbers<[1], [0], [0], [1], [0, 0, 1, 1], [], []>} : vector<1x32xf32>, vector<32x2048xf32>, vector<1x2048xf32> -> vector<1x2048xf32>
    %c0_24 = arith.constant 0 : index
    %c0_25 = arith.constant 0 : index
    %33 = vector.load %arg7[%c0_24, %c0_25] : memref<1x1xf32, #tpu.memory_space<vmem>>, vector<1x1xf32>
    %34 = vector.broadcast %33 : vector<1x1xf32> to vector<1x2048xf32>
    %35 = arith.addf %32, %34 : vector<1x2048xf32>
    %c0_26 = arith.constant 0 : index
    %c0_27 = arith.constant 0 : index
    %36 = vector.load %arg8[%c0_26, %c0_27] : memref<1x2048xf32, #tpu.memory_space<vmem>>, vector<1x2048xf32>
    tpu.vector_store %arg8[%c0_26, %c0_27], %35 {strides = array<i32>} : memref<1x2048xf32, #tpu.memory_space<vmem>>, vector<1x2048xf32>,
    return
  }
  func.func @transform_0(%arg0: i32) -> (i32, i32) {
    %c0_i32 = arith.constant 0 : i32
    %c0_i32_0 = arith.constant 0 : i32
    return %c0_i32, %arg0 : i32, i32
  }
  func.func @transform_1(%arg0: i32) -> (i32, i32) {
    %c0_i32 = arith.constant 0 : i32
    %c0_i32_0 = arith.constant 0 : i32
    %c0_i32_1 = arith.constant 0 : i32
    return %c0_i32, %c0_i32_0 : i32, i32
  }
  func.func @transform_2(%arg0: i32) -> (i32, i32) {
    %c0_i32 = arith.constant 0 : i32
    %c0_i32_0 = arith.constant 0 : i32
    %c0_i32_1 = arith.constant 0 : i32
    return %c0_i32, %c0_i32_0 : i32, i32
  }
  func.func @transform_3(%arg0: i32) -> (i32, i32, i32) {
    %c0_i32 = arith.constant 0 : i32
    %c0_i32_0 = arith.constant 0 : i32
    %c0_i32_1 = arith.constant 0 : i32
    %c0_i32_2 = arith.constant 0 : i32
    return %c0_i32, %c0_i32_0, %c0_i32_1 : i32, i32, i32
  }
  func.func @transform_4(%arg0: i32) -> (i32, i32, i32) {
    %c0_i32 = arith.constant 0 : i32
    %c0_i32_0 = arith.constant 0 : i32
    %c0_i32_1 = arith.constant 0 : i32
    %c0_i32_2 = arith.constant 0 : i32
    return %c0_i32, %c0_i32_0, %c0_i32_1 : i32, i32, i32
  }
  func.func @transform_5(%arg0: i32) -> (i32, i32) {
    %c0_i32 = arith.constant 0 : i32
    %c0_i32_0 = arith.constant 0 : i32
    %c0_i32_1 = arith.constant 0 : i32
    return %c0_i32, %c0_i32_0 : i32, i32
  }
  func.func @transform_6(%arg0: i32) -> (i32, i32) {
    %c0_i32 = arith.constant 0 : i32
    %c0_i32_0 = arith.constant 0 : i32
    %c0_i32_1 = arith.constant 0 : i32
    return %c0_i32, %c0_i32_0 : i32, i32
  }
  func.func @transform_7(%arg0: i32) -> (i32, i32) {
    %c0_i32 = arith.constant 0 : i32
    %c0_i32_0 = arith.constant 0 : i32
    return %c0_i32, %arg0 : i32, i32
  }
}

</mosaic_0001>

<bundles_post_ra>
// kernel: tpu_custom_call.1
= control target key start
LH: loop header
LB: loop body
LE: loop exit
PB: predicated region body
PF: predicated region fallthrough
CT: control target
= control target key end

     0   :  { %s5131_s0 = inlined_call_operand.vmem [shape: f32[2,4096], index: 0, kind: input, shape index: {}]   ;;  %s5132_s1 = inlined_call_operand.vmem [shape: f32[32,2], index: 1, kind: input, shape index: {}]   ;;  %s5133_s2 = inlined_call_operand.vmem [shape: f32[32,1], index: 2, kind: input, shape index: {}]   ;;  %s5134_s3 = inlined_call_operand.vmem [shape: f32[2,32,32], index: 3, kind: input, shape index: {}]   ;;  %s5135_s4 = inlined_call_operand.vmem [shape: f32[2,32,1], index: 4, kind: input, shape index: {}]   ;;  %s5136_s5 = inlined_call_operand.vmem [shape: f32[1,32], index: 5, kind: input, shape index: {}]   ;;  %s5137_s6 = inlined_call_operand.<no memory space> [shape: f32[1,1], index: 6, kind: input, shape index: {}]   ;;  %s5138_s7 = inlined_call_operand.hbm [shape: f32[1,4096], index: 7, kind: output, shape index: {}]  }
   0x1   :  { %v12_v0 = vstv %s5137_s6 }
   0x2   :  { %13 = vst [vmem:[#allocation2] sm:$0x1] %v12_v0 }
   0x3   :  { %14 = vsyncpa [#allocation4], 0 }
   0x4   :  { %16 = vsyncpa [#allocation4 + $0x1], 0  ;;  %s4081_s26 = smov 0   ;;  %s4083_s27 = smov 0  }
   0x5   :  { %s4085_s28 = smov 0   ;;  %s4087_s29 = smov 0  }
   0x6 LB: > { %s4102_s6 = sadd.s32 4294967295, %s4031_s29   ;;  %s3246_s30 = sadd.s32 4294967294, %s4031_s29   ;;  %s4031_s29 = sphi %s4087_s29, %s5192_s29   ;;  %s4027_s28 = sphi %s4085_s28, %s5191_s28   ;;  %s4023_s27 = sphi %s4083_s27, %s5190_s27   ;;  %s4019_s26 = sphi %s4081_s26, %s5189_s26  }
   0x7   : > { %s4106_s8 = sadd.s32 1, %s4031_s29   ;;  %s181_s9 = sadd.s32 1, %s4027_s28 }
   0x8   : > { %s178_s10 = ssub.s32 %s4031_s29, %s4106_s8  ;;  %p191_p0 = scmp.ne.s32.totalorder %s4027_s28, %s4023_s27 }
   0x9   : > { %p179_p1 = scmp.eq.s32.totalorder %s178_s10, 0  ;;  %p192_p2 = scmp.eq.s32.totalorder %s4102_s6, 1 }
   0xa   : > { %p197_p3 = scmp.ne.s32.totalorder %s4023_s27, %s4019_s26  ;;  %p198_p4 = scmp.eq.s32.totalorder %s3246_s30, 1 }
   0xb   : > { %s4117_s11 = scalar_select %p179_p1, %s4027_s28, %s181_s9  }
   0xc   : > { %p4119_p5 = por %p192_p2, %p191_p0  ;;  %p4123_p6 = por %p198_p4, %p197_p3 }
   0xd   : > { %p3249_p7 = scmp.ge.s32.totalorder %s4031_s29, 1  ;;  %p243_p8 = scmp.lt.s32.totalorder %s4031_s29, 3 }
   0xf   : > { %p244_p9 = pnand %p3249_p7, %p243_p8 }
  0x11   : > { %247 = sbr.rel (%p244_p9) target bundleno = 987 (0x3db), region = 48 }
  0x18   : > { %v286_v1 = vld [vmem:[%s5132_s1] sm:$0xff]  ;;  %v4033_v3 = vmov 0   ;;  %v287_v4 = vld [vmem:[%s5132_s1 + $0x8] sm:$0xff]  ;;  %v289_v6 = vld [vmem:[%s5132_s1 + $0x18] sm:$0xff]  ;;  %v4034_v7 = vmov 1   ;;  %v5139_v11 = vmov 0.0   ;;  %v315_v12 = vlaneseq }
  0x19   : > { %v282_v2 = vld [vmem:[%s5133_s2] sm:$0xff]  ;;  %3578 = vset.pattern.permute.xlu1 %v4033_v3  ;;  %3577 = vset.pattern.permute.xlu0 %v4033_v3  ;;  %v283_v5 = vld [vmem:[%s5133_s2 + $0x8] sm:$0xff]  ;;  %v288_v8 = vld [vmem:[%s5132_s1 + $0x10] sm:$0xff]  ;;  %s3251_s15 = sshll.u32 %s4102_s6, 4  ;;  %vm865_vm0 = vcmask 261120   ;;  %s272_s24 = sand.u32 1, %s4023_s27  }
  0x1a   : > { %295 = vperm.xlu0 %3577, %v286_v1   ;;  %461 = vperm.xlu1 %3578, %v282_v2   ;;  %v284_v9 = vld [vmem:[%s5133_s2 + $0x10] sm:$0xff]  ;;  %v285_v10 = vld [vmem:[%s5133_s2 + $0x18] sm:$0xff]  ;;  %p276_p10 = scmp.lt.s32.totalorder %s3251_s15, 31  ;;  %v4156_v13 = vshrl.u32 %v315_v12, 7  ;;  %v841_v26 = vld [vmem:[%s5135_s4] sm:$0xff]  ;;  %s3250_s25 = sshll.u32 %s272_s24, 4 }
  0x1b   : > { %942 = vmatprep.mubr.f32.mxu0 %v5139_v11  ;;  %1031 = vmatprep.mubr.f32.mxu1 %v5139_v11  ;;  %v842_v27 = vld [vmem:[%s5135_s4 + $0x8] sm:$0xff]  ;;  %v843_v36 = vld [vmem:[%s5135_s4 + $0x10] sm:$0xff]  ;;  %v3292_v37 = vld [vmem:[%s5135_s4 + $0x20] sm:$0xff]  ;;  %s5078_s30 = scalar_lea.vmem [#allocation3], %s3250_s25  ;;  %s3341_s9 = sshll.u32 %s4102_s6, 8 }
  0x1c   : > { %s5194_s15 = smov (!%p276_p10, %s3251_s15), 31  ;;  %5158 = vst [vmem:[#allocation6_spill] sm:$0xff] %v4156_v13  ;;  %v321_v14 = vsub.s32 1, %v4156_v13  ;;  %v329_v15 = vsub.s32 3, %v4156_v13  ;;  %v4167_v17 = vsub.s32 0, %v4156_v13  ;;  %v325_v18 = vsub.s32 2, %v4156_v13 }
  0x1d   : > { %s3252_s16 = sshll.u32 %s5194_s15, 1  ;;  %v337_v20 = vsub.s32 5, %v4156_v13  ;;  %v345_v21 = vsub.s32 7, %v4156_v13  ;;  %v333_v22 = vsub.s32 4, %v4156_v13  ;;  %v341_v25 = vsub.s32 6, %v4156_v13  ;;  %v844_v54 = vld [vmem:[%s5135_s4 + $0x18] sm:$0xff] }
  0x1e   : > { %300 = vperm.xlu0 %3577, %v287_v4   ;;  %466 = vperm.xlu1 %3578, %v283_v5   ;;  %s4161_s19 = scalar_lea.vmem %s5131_s0, %s3252_s16  ;;  %5159 = vst [vmem:[#allocation7_spill] sm:$0xff] %v4167_v17  ;;  %v3294_v59 = vld [vmem:[%s5135_s4 + $0x30] sm:$0xff]  ;;  %s3187_s10 = sshll.u32 %s5078_s30, 4  ;;  %s5088_s10 = int_to_ptr.vmem [resolvable:$true] %s3187_s10 }
  0x1f   : > { %v290_v16 = vld [vmem:[%s4161_s19] ss:$2 sm:$0xff]  ;;  %v3254_v19 = vld [vmem:[%s4161_s19 + $0x1] ss:$2 sm:$0xff]  ;;  %v3253_v31 = vld [vmem:[%s4161_s19 + $0x10] ss:$2 sm:$0xff]  ;;  %s5086_s16 = scalar_lea.hbm %s5138_s7, %s3341_s9 }
  0x20   : > { %v4174_v23 = vrot.slane %v290_v16, %v321_v14  ;;  %v4176_v24 = vrot.slane %v290_v16, %v329_v15  ;;  %v4185_v28 = vrot.slane %v3254_v19, %v321_v14  ;;  %v4188_v29 = vrot.slane %v290_v16, %v4167_v17  ;;  %v3255_v42 = vld [vmem:[%s4161_s19 + $0x11] ss:$2 sm:$0xff]  ;;  %s3173_s17 = scalar_lea.sflag [#allocation4], %s272_s24  ;;  %s3969_s18 = scalar_lea.vmem %s5088_s10, 256 }
  0x21   : > { %v4190_v30 = vrot.slane %v290_v16, %v325_v18  ;;  %v4193_v32 = vrot.slane %v3254_v19, %v329_v15  ;;  %v4196_v33 = vrot.slane %v3254_v19, %v4167_v17  ;;  %v4198_v34 = vrot.slane %v290_v16, %v337_v20  ;;  %p3970_p11 = scmp.ne.s32.totalorder %s5088_s10, %s3969_s18  ;;  %s4037_s6 = smov [#allocation3]  }
  0x22   : > { %310 = vperm.xlu0 %3577, %v289_v6   ;;  %3579 = vset.pattern.permute.xlu1 %v4034_v7  ;;  %v4200_v35 = vrot.slane %v290_v16, %v345_v21  ;;  %v4208_v38 = vrot.slane %v3254_v19, %v325_v18  ;;  %v4210_v39 = vrot.slane %v3254_v19, %v337_v20  ;;  %s3973_s19 = sshll.u32 %s4037_s6, 4  ;;  %s3974_s19 = int_to_ptr.vmem [resolvable:$false] %s3973_s19 }
  0x23   : > { %552 = vperm.xlu1 %3579, %v287_v4   ;;  %v4212_v40 = vrot.slane %v3254_v19, %v345_v21  ;;  %v4214_v41 = vrot.slane %v290_v16, %v333_v22  ;;  %v4217_v43 = vrot.slane %v3254_v19, %v333_v22  ;;  %v4219_v44 = vrot.slane %v290_v16, %v341_v25  ;;  %p3971_p12 = pnand %p3970_p11, %p4119_p5  ;;  %s3975_s20 = scalar_lea.vmem %s3974_s19, 512 }
  0x24   : > { %v4221_v45 = vrot.slane %v3254_v19, %v341_v25  ;;  %v4223_v46 = vrot.slane %v3253_v31, %v321_v14  ;;  %v4225_v47 = vrot.slane %v3253_v31, %v329_v15  ;;  %v4228_v48 = vrot.slane %v3253_v31, %v4167_v17  ;;  %p3976_p0 = scmp.lt.s32.totalorder %s5088_s10, %s3974_s19  ;;  %p3977_p1 = scmp.lt.s32.totalorder %s3975_s20, %s3969_s18 }
  0x25   : > { %v4230_v49 = vrot.slane %v3253_v31, %v325_v18  ;;  %v4232_v50 = vrot.slane %v3255_v42, %v321_v14  ;;  %v4234_v51 = vrot.slane %v3255_v42, %v329_v15  ;;  %v4237_v52 = vrot.slane %v3255_v42, %v4167_v17  ;;  %p3972_p13 = pneg %p3971_p12 }
  0x26   : > { %3581 = vset.pattern.permute.xlu0 %v4034_v7  ;;  %5160 = vst [vmem:[#allocation8_spill] sm:$0xff] %v4228_v48  ;;  %v4239_v53 = vrot.slane %v3253_v31, %v337_v20  ;;  %v4244_v55 = vrot.slane %v3255_v42, %v325_v18  ;;  %v4246_v56 = vrot.slane %v3253_v31, %v345_v21  ;;  %v2473_v18 = vld [vmem:[#allocation2] sm:$0x1]  ;;  %p3978_p2 = por %p3977_p1, %p3976_p0 }
  0x27   : > { %548 = vperm.xlu0 %3581, %v286_v1   ;;  %3580 = vset.pattern.permute.xlu1 %v4033_v3  ;;  %5161 = vst [vmem:[#allocation9_spill] sm:$0xff] %v4230_v49  ;;  %5162 = vst [vmem:[#allocation10_spill] sm:$0xff] %v4234_v51  ;;  %v4248_v57 = vrot.slane %v3253_v31, %v333_v22  ;;  %v4250_v58 = vrot.slane %v3253_v31, %v341_v25 }
  0x28   : > { %305 = vperm.xlu1 %3580, %v288_v8   ;;  %5163 = vst [vmem:[#allocation11_spill] sm:$0xff] %v4237_v52  ;;  %5164 = vst [vmem:[#allocation12_spill] sm:$0xff] %v4239_v53  ;;  %v4259_v62 = vrot.slane %v3255_v42, %v337_v20  ;;  %v4261_v63 = vrot.slane %v3255_v42, %v345_v21  ;;  %v4263_v0 = vrot.slane %v3255_v42, %v333_v22  ;;  %p3979_p3 = pnand %p3978_p2, %p3972_p13 }
  0x29   : > { %5165 = vst [vmem:[#allocation13_spill] sm:$0xff] %v4244_v55  ;;  %5166 = vst [vmem:[#allocation14_spill] sm:$0xff] %v4246_v56  ;;  %v4265_v1 = vrot.slane %v3255_v42, %v341_v25 }
  0x2a   : > { %5167 = vst [vmem:[#allocation15_spill] sm:$0xff] %v4248_v57  ;;  %5168 = vst [vmem:[#allocation16_spill] sm:$0xff] %v4250_v58 }
  0x2b   : > { %556 = vperm.xlu0 %3581, %v288_v8   ;;  %5169 = vst [vmem:[#allocation17_spill] sm:$0xff] %v4259_v62  ;;  %5170 = vst [vmem:[#allocation18_spill] sm:$0xff] %v4261_v63 }
  0x2c   : > { %471 = vperm.xlu1 %3580, %v284_v9   ;;  %5171 = vst [vmem:[#allocation19_spill] sm:$0xff] %v4263_v0  ;;  %5172 = vst [vmem:[#allocation20_spill] sm:$0xff] %v4265_v1 }
  0x2f   : > { %3584 = vset.pattern.permute.xlu0 %v4033_v3 }
  0x30   : > { %476 = vperm.xlu1 %3580, %v285_v10   ;;  %852 = vperm.xlu0 %3584, %v842_v27   ;;  %v3293_v10 = vld [vmem:[%s5135_s4 + $0x28] sm:$0xff] }
  0x34   : > { %3582 = vset.pattern.permute.xlu1 %v4034_v7  ;;  %1666 = vperm.xlu0 %3584, %v3292_v37  }
  0x35   : > { %560 = vperm.xlu1 %3582, %v289_v6  }
  0x38   : > { %1676 = vperm.xlu0 %3584, %v3294_v59  }
  0x39   : > { %3583 = vset.pattern.permute.xlu1 %v4033_v3 }
  0x3a   : > { %847 = vperm.xlu1 %3583, %v841_v26  }
  0x3c   : > { %2476 = vperm.xlu0 %3584, %v2473_v18  }
  0x3e   : > { %857 = vperm.xlu1 %3583, %v843_v36  }
  0x42   : > { %862 = vperm.xlu1 %3583, %v844_v54  }
  0x46   : > { %1671 = vperm.xlu1 %3583, %v3293_v10  }
  0x99   : > { %v4255_v60 = vpop.permute.xlu0 %295  ;;  %v4257_v61 = vpop.permute.xlu1 %461 }
  0x9a   : > { %v396_v2 = vmul.f32 %v4174_v23, %v4255_v60  ;;  %v398_v3 = vmul.f32 %v4176_v24, %v4255_v60  ;;  %v395_v4 = vmul.f32 %v4188_v29, %v4255_v60  ;;  %v397_v5 = vmul.f32 %v4190_v30, %v4255_v60 }
  0x9b   : > { %v400_v6 = vmul.f32 %v4198_v34, %v4255_v60  ;;  %v402_v7 = vmul.f32 %v4200_v35, %v4255_v60  ;;  %v399_v8 = vmul.f32 %v4214_v41, %v4255_v60  ;;  %v401_v9 = vmul.f32 %v4219_v44, %v4255_v60 }
  0x9c   : > { %v4287_v12 = vadd.f32 %v4257_v61, %v396_v2  ;;  %v4290_v14 = vadd.f32 %v4257_v61, %v398_v3  ;;  %v4293_v15 = vadd.f32 %v4257_v61, %v395_v4  ;;  %v4296_v16 = vadd.f32 %v4257_v61, %v397_v5  ;;  %v3295_v3 = vld [vmem:[%s5135_s4 + $0x38] sm:$0xff] }
  0x9d   : > { %v4298_v19 = vpop.permute.xlu0 %300  ;;  %v4300_v20 = vpop.permute.xlu1 %466  ;;  %v4303_v21 = vadd.f32 %v4257_v61, %v400_v6  ;;  %v4306_v22 = vadd.f32 %v4257_v61, %v402_v7  ;;  %v4309_v25 = vadd.f32 %v4257_v61, %v399_v8  ;;  %v4312_v26 = vadd.f32 %v4257_v61, %v401_v9  ;;  %1681 = vperm.xlu1 %3583, %v3295_v3  }
  0x9e   : > { %v412_v27 = vmul.f32 %v4174_v23, %v4298_v19  ;;  %v414_v31 = vmul.f32 %v4176_v24, %v4298_v19  ;;  %v411_v36 = vmul.f32 %v4188_v29, %v4298_v19  ;;  %v413_v37 = vmul.f32 %v4190_v30, %v4298_v19 }
  0x9f   : > { %v416_v42 = vmul.f32 %v4198_v34, %v4298_v19  ;;  %v418_v54 = vmul.f32 %v4200_v35, %v4298_v19  ;;  %v415_v59 = vmul.f32 %v4214_v41, %v4298_v19  ;;  %v417_v2 = vmul.f32 %v4219_v44, %v4298_v19 }
  0xa0   : > { %v496_v4 = vadd.f32 %v4300_v20, %v412_v27  ;;  %v498_v5 = vadd.f32 %v4300_v20, %v414_v31  ;;  %v495_v6 = vadd.f32 %v4300_v20, %v411_v36  ;;  %v497_v7 = vadd.f32 %v4300_v20, %v413_v37 }
  0xa1   : > { %v4337_v8 = vpop.permute.xlu0 %310  ;;  %v500_v9 = vadd.f32 %v4300_v20, %v416_v42  ;;  %v502_v10 = vadd.f32 %v4300_v20, %v418_v54  ;;  %v499_v18 = vadd.f32 %v4300_v20, %v415_v59  ;;  %v501_v11 = vadd.f32 %v4300_v20, %v417_v2 }
  0xa2   : > { %v4343_v13 = vpop.permute.xlu1 %552  ;;  %v444_v27 = vmul.f32 %v4174_v23, %v4337_v8  ;;  %v4349_v31 = vmul.f32 %v4176_v24, %v4337_v8  ;;  %v4353_v36 = vmul.f32 %v4188_v29, %v4337_v8  ;;  %v4357_v37 = vmul.f32 %v4190_v30, %v4337_v8 }
  0xa3   : > { %v662_v42 = vmul.f32 %v4185_v28, %v4343_v13  ;;  %v664_v54 = vmul.f32 %v4193_v32, %v4343_v13  ;;  %v661_v59 = vmul.f32 %v4196_v33, %v4343_v13  ;;  %v663_v2 = vmul.f32 %v4208_v38, %v4343_v13 }
  0xa4   : > { %v666_v17 = vmul.f32 %v4210_v39, %v4343_v13  ;;  %v668_v1 = vmul.f32 %v4212_v40, %v4343_v13  ;;  %v665_v3 = vmul.f32 %v4217_v43, %v4343_v13  ;;  %v667_v58 = vmul.f32 %v4221_v45, %v4343_v13 }
  0xa5   : > { %v726_v0 = vadd.f32 %v662_v42, %v496_v4  ;;  %v728_v57 = vadd.f32 %v664_v54, %v498_v5  ;;  %v725_v63 = vadd.f32 %v661_v59, %v495_v6  ;;  %v727_v56 = vadd.f32 %v663_v2, %v497_v7 }
  0xa6   : > { %v4375_v62 = vpop.permute.xlu0 %548  ;;  %v730_v53 = vadd.f32 %v666_v17, %v500_v9  ;;  %v4377_v55 = vadd.f32 %v668_v1, %v502_v10  ;;  %v4379_v49 = vadd.f32 %v665_v3, %v499_v18  ;;  %v4381_v52 = vadd.f32 %v667_v58, %v501_v11 }
  0xa7   : > { %v4383_v48 = vpop.permute.xlu1 %305  ;;  %v646_v51 = vmul.f32 %v4185_v28, %v4375_v62  ;;  %3585 = vtanh.f32 %v726_v0  ;;  %v648_v4 = vmul.f32 %v4193_v32, %v4375_v62  ;;  %v645_v5 = vmul.f32 %v4196_v33, %v4375_v62 }
  0xa8   : > { %3587 = vtanh.f32 %v728_v57  ;;  %v647_v17 = vmul.f32 %v4208_v38, %v4375_v62  ;;  %v428_v11 = vmul.f32 %v4174_v23, %v4383_v48  ;;  %v430_v58 = vmul.f32 %v4176_v24, %v4383_v48 }
  0xa9   : > { %v710_v1 = vadd.f32 %v646_v51, %v4287_v12  ;;  %v712_v0 = vadd.f32 %v648_v4, %v4290_v14  ;;  %v709_v6 = vadd.f32 %v645_v5, %v4293_v15  ;;  %3589 = vtanh.f32 %v725_v63 }
  0xaa   : > { %v4400_v7 = vpop.permute.xlu0 %556  ;;  %v711_v57 = vadd.f32 %v647_v17, %v4296_v16  ;;  %3591 = vtanh.f32 %v727_v56  ;;  %v427_v9 = vmul.f32 %v4188_v29, %v4383_v48  ;;  %v429_v23 = vmul.f32 %v4190_v30, %v4383_v48 }
  0xab   : > { %v4407_v10 = vpop.permute.xlu1 %471  ;;  %3593 = vtanh.f32 %v710_v1  ;;  %v678_v24 = vmul.f32 %v4185_v28, %v4400_v7  ;;  %v680_v51 = vmul.f32 %v4193_v32, %v4400_v7  ;;  %v677_v63 = vmul.f32 %v4196_v33, %v4400_v7 }
  0xac   : > { %3595 = vtanh.f32 %v712_v0  ;;  %v512_v56 = vadd.f32 %v4407_v10, %v428_v11  ;;  %v514_v29 = vadd.f32 %v4407_v10, %v430_v58  ;;  %v511_v12 = vadd.f32 %v4407_v10, %v427_v9 }
  0xad   : > { %3597 = vtanh.f32 %v709_v6  ;;  %v513_v30 = vadd.f32 %v4407_v10, %v429_v23  ;;  %v679_v14 = vmul.f32 %v4208_v38, %v4400_v7  ;;  %v650_v15 = vmul.f32 %v4210_v39, %v4375_v62 }
  0xae   : > { %3599 = vtanh.f32 %v711_v57  ;;  %v742_v16 = vadd.f32 %v678_v24, %v512_v56  ;;  %v744_v18 = vadd.f32 %v680_v51, %v514_v29  ;;  %v741_v42 = vadd.f32 %v677_v63, %v511_v12 }
  0xaf   : > { %v4423_v54 = vpop.permute.xlu1 %476  ;;  %v743_v59 = vadd.f32 %v679_v14, %v513_v30  ;;  %v714_v2 = vadd.f32 %v650_v15, %v4303_v21  ;;  %3601 = vtanh.f32 %v730_v53  ;;  %v652_v3 = vmul.f32 %v4212_v40, %v4375_v62 }
  0xb0   : > { %v528_v4 = vadd.f32 %v4423_v54, %v444_v27  ;;  %3603 = vtanh.f32 %v742_v16  ;;  %v530_v5 = vadd.f32 %v4423_v54, %v4349_v31  ;;  %v527_v17 = vadd.f32 %v4423_v54, %v4353_v36 }
  0xb1   : > { %v3586_v11 = vpop.eup %3585  ;;  %3605 = vtanh.f32 %v744_v18  ;;  %v529_v58 = vadd.f32 %v4423_v54, %v4357_v37  ;;  %v716_v21 = vadd.f32 %v652_v3, %v4306_v22  ;;  %v649_v53 = vmul.f32 %v4217_v43, %v4375_v62 }
  0xb2   : > { %v3588_v1 = vpop.eup %3587  ;;  %3607 = vtanh.f32 %v741_v42  ;;  %v651_v27 = vmul.f32 %v4221_v45, %v4375_v62  ;;  %v432_v31 = vmul.f32 %v4198_v34, %v4383_v48  ;;  %v448_v36 = vmul.f32 %v4198_v34, %v4337_v8 }
  0xb3   : > { %v3590_v0 = vpop.eup %3589  ;;  %3609 = vtanh.f32 %v743_v59  ;;  %v713_v37 = vadd.f32 %v649_v53, %v4309_v25  ;;  %v682_v22 = vmul.f32 %v4210_v39, %v4400_v7  ;;  %v434_v6 = vmul.f32 %v4200_v35, %v4383_v48 }
  0xb4   : > { %v3592_v57 = vpop.eup %3591  ;;  %v4449_v9 = vpop.permute.xlu1 %560  ;;  %3611 = vtanh.f32 %v714_v2  ;;  %v715_v23 = vadd.f32 %v651_v27, %v4312_v26  ;;  %v516_v24 = vadd.f32 %v4407_v10, %v432_v31  ;;  %v532_v34 = vadd.f32 %v4423_v54, %v448_v36 }
  0xb5   : > { %v3594_v51 = vpop.eup %3593  ;;  %v694_v25 = vmul.f32 %v4185_v28, %v4449_v9  ;;  %v696_v63 = vmul.f32 %v4193_v32, %v4449_v9  ;;  %v693_v56 = vmul.f32 %v4196_v33, %v4449_v9  ;;  %v695_v29 = vmul.f32 %v4208_v38, %v4449_v9 }
  0xb6   : > { %v3596_v12 = vpop.eup %3595  ;;  %v3342_v30 = vpack.c.bf16 %v3586_v11, %v3594_v51  ;;  %3613 = vtanh.f32 %v716_v21  ;;  %v698_v26 = vmul.f32 %v4210_v39, %v4449_v9  ;;  %v746_v14 = vadd.f32 %v682_v22, %v516_v24 }
  0xb7   : > { %v3598_v15 = vpop.eup %3597  ;;  %v3350_v16 = vpack.c.bf16 %v3588_v1, %v3596_v12  ;;  %v758_v18 = vadd.f32 %v694_v25, %v528_v4  ;;  %v760_v28 = vadd.f32 %v696_v63, %v530_v5  ;;  %v757_v42 = vadd.f32 %v693_v56, %v527_v17 }
  0xb8   : > { %v3600_v59 = vpop.eup %3599  ;;  %3343 = vmatprep.subr.bf16.mxu0 %v3342_v30  ;;  %v3344_v32 = vpack.c.bf16 %v3590_v0, %v3598_v15  ;;  %v759_v2 = vadd.f32 %v695_v29, %v529_v58  ;;  %3615 = vtanh.f32 %v4377_v55  ;;  %v762_v33 = vadd.f32 %v698_v26, %v532_v34 }
  0xb9   : > { %v4465_v38 = vpop.eup %3601  ;;  %3351 = vmatprep.subr.bf16.mxu1 %v3350_v16  ;;  %v3352_v3 = vpack.c.bf16 %v3592_v57, %v3600_v59  ;;  %3617 = vtanh.f32 %v758_v18  ;;  %v450_v39 = vmul.f32 %v4200_v35, %v4337_v8  ;;  %v518_v11 = vadd.f32 %v4407_v10, %v434_v6 }
  0xba   : > { %v3604_v4 = vpop.eup %3603  ;;  %3345 = vmatpush1.bf16.msra.mxu0 %v3344_v32  ;;  %3619 = vtanh.f32 %v760_v28  ;;  %v684_v5 = vmul.f32 %v4212_v40, %v4400_v7  ;;  %v700_v55 = vmul.f32 %v4212_v40, %v4449_v9  ;;  %v431_v17 = vmul.f32 %v4214_v41, %v4383_v48 }
  0xbb   : > { %v3606_v58 = vpop.eup %3605  ;;  %3353 = vmatpush1.bf16.msra.mxu1 %v3352_v3  ;;  %3621 = vtanh.f32 %v757_v42  ;;  %v534_v21 = vadd.f32 %v4423_v54, %v450_v39  ;;  %v447_v35 = vmul.f32 %v4214_v41, %v4337_v8  ;;  %v681_v53 = vmul.f32 %v4217_v43, %v4400_v7 }
  0xbc   : > { %v3608_v1 = vpop.eup %3607  ;;  %3623 = vtanh.f32 %v759_v2  ;;  %v748_v27 = vadd.f32 %v684_v5, %v518_v11  ;;  %v515_v31 = vadd.f32 %v4407_v10, %v431_v17  ;;  %v697_v40 = vmul.f32 %v4217_v43, %v4449_v9  ;;  %v5173_v5 = vld [vmem:[#allocation10_spill] sm:$0xff] }
  0xbd   : > { %v4484_v36 = vpop.eup %3609  ;;  %3625 = vtanh.f32 %v713_v37  ;;  %v764_v0 = vadd.f32 %v700_v55, %v534_v21  ;;  %v531_v22 = vadd.f32 %v4423_v54, %v447_v35  ;;  %v433_v41 = vmul.f32 %v4219_v44, %v4383_v48  ;;  %v5174_v21 = vld [vmem:[#allocation8_spill] sm:$0xff] }
  0xbe   : > { %v3612_v6 = vpop.eup %3611  ;;  %3627 = vtanh.f32 %v4379_v49  ;;  %v745_v57 = vadd.f32 %v681_v53, %v515_v31  ;;  %v449_v24 = vmul.f32 %v4219_v44, %v4337_v8  ;;  %v683_v34 = vmul.f32 %v4221_v45, %v4400_v7 }
  0xbf   : > { %v3358_v43 = vpack.c.bf16 %v4465_v38, %v3612_v6  ;;  %3629 = vtanh.f32 %v715_v23  ;;  %v761_v37 = vadd.f32 %v697_v40, %v531_v22  ;;  %v517_v51 = vadd.f32 %v4407_v10, %v433_v41  ;;  %v5175_v40 = vld [vmem:[#allocation11_spill] sm:$0xff] }
  0xc0   : > { %v3614_v25 = vpop.eup %3613  ;;  %3631 = vtanh.f32 %v4381_v52  ;;  %v533_v63 = vadd.f32 %v4423_v54, %v449_v24  ;;  %v699_v49 = vmul.f32 %v4221_v45, %v4449_v9  ;;  %v404_v44 = vmul.f32 %v4223_v46, %v4255_v60 }
  0xc1   : > { %3633 = vtanh.f32 %v746_v14  ;;  %v747_v56 = vadd.f32 %v683_v34, %v517_v51  ;;  %v420_v23 = vmul.f32 %v4223_v46, %v4298_v19  ;;  %v654_v29 = vmul.f32 %v4232_v50, %v4375_v62 }
  0xc2   : > { %v3616_v12 = vpop.eup %3615  ;;  %3635 = vtanh.f32 %v762_v33  ;;  %v763_v30 = vadd.f32 %v699_v49, %v533_v63  ;;  %v488_v52 = vadd.f32 %v4257_v61, %v404_v44  ;;  %v670_v26 = vmul.f32 %v4232_v50, %v4343_v13 }
  0xc3   : > { %v3618_v45 = vpop.eup %3617  ;;  %v3366_v15 = vpack.c.bf16 %v3616_v12, %v3614_v25  ;;  %3637 = vtanh.f32 %v748_v27  ;;  %v504_v14 = vadd.f32 %v4300_v20, %v420_v23  ;;  %v406_v16 = vmul.f32 %v4225_v47, %v4255_v60  ;;  %v5177_v12 = vld [vmem:[#allocation13_spill] sm:$0xff] }
  0xc4   : > { %v3620_v18 = vpop.eup %3619  ;;  %v3346_v28 = vpack.c.bf16 %v3618_v45, %v3604_v4  ;;  %3639 = vtanh.f32 %v764_v0  ;;  %v718_v42 = vadd.f32 %v654_v29, %v488_v52  ;;  %v422_v59 = vmul.f32 %v4225_v47, %v4298_v19 }
  0xc5   : > { %v3622_v32 = vpop.eup %3621  ;;  %v3354_v2 = vpack.c.bf16 %v3620_v18, %v3606_v58  ;;  %3641 = vtanh.f32 %v745_v57  ;;  %v734_v33 = vadd.f32 %v670_v26, %v504_v14  ;;  %v490_v38 = vadd.f32 %v4257_v61, %v406_v16 }
  0xc6   : > { %v3624_v3 = vpop.eup %3623  ;;  %3347 = vmatprep.subr.bf16.mxu0 %v3346_v28  ;;  %v3348_v39 = vpack.c.bf16 %v3622_v32, %v3608_v1  ;;  %3643 = vtanh.f32 %v761_v37  ;;  %v506_v11 = vadd.f32 %v4300_v20, %v422_v59  ;;  %v656_v4 = vmul.f32 %v5173_v5, %v4375_v62  ;;  %v4526_v1 = vld [vmem:[%s5134_s3] sm:$0xff] }
  0xc7   : > { %v3626_v55 = vpop.eup %3625  ;;  %3355 = vmatprep.subr.bf16.mxu1 %v3354_v2  ;;  %v3356_v17 = vpack.c.bf16 %v3624_v3, %v4484_v36  ;;  %3645 = vtanh.f32 %v747_v56  ;;  %v672_v58 = vmul.f32 %v5173_v5, %v4343_v13  ;;  %v403_v35 = vmul.f32 %v5174_v21, %v4255_v60  ;;  %v5176_v37 = vld [vmem:[#allocation9_spill] sm:$0xff]  ;;  %v4547_v56 = vld [vmem:[%s5134_s3 + $0x8] sm:$0xff] }
  0xc8   : > { %v3628_v53 = vpop.eup %3627  ;;  %3349 = vmatpush1.bf16.msra.mxu0 %v3348_v39  ;;  %3647 = vtanh.f32 %v763_v30  ;;  %v720_v27 = vadd.f32 %v656_v4, %v490_v38  ;;  %v419_v31 = vmul.f32 %v5174_v21, %v4298_v19  ;;  %v653_v36 = vmul.f32 %v5175_v40, %v4375_v62 }
  0xc9   : > { %v3630_v0 = vpop.eup %3629  ;;  %3357 = vmatpush1.bf16.msra.mxu1 %v3356_v17  ;;  %3359 = vmatprep.subr.bf16.mxu0 %v3358_v43  ;;  %v3360_v22 = vpack.c.bf16 %v3628_v53, %v3626_v55  ;;  %3649 = vtanh.f32 %v718_v42  ;;  %v736_v41 = vadd.f32 %v672_v58, %v506_v11  ;;  %v487_v6 = vadd.f32 %v4257_v61, %v403_v35  ;;  %v4576_v55 = vld [vmem:[%s5134_s3 + $0x10] sm:$0xff] }
  0xca   : > { %v3632_v57 = vpop.eup %3631  ;;  %3367 = vmatprep.subr.bf16.mxu1 %v3366_v15  ;;  %3651 = vtanh.f32 %v734_v33  ;;  %v503_v24 = vadd.f32 %v4300_v20, %v419_v31  ;;  %v669_v34 = vmul.f32 %v5175_v40, %v4343_v13  ;;  %v405_v51 = vmul.f32 %v5176_v37, %v4255_v60 }
  0xcb   : > { %v3634_v25 = vpop.eup %3633  ;;  %3256 = vmatmul.mubr.msk.f32.vlgmr.msra.gmra.mrb[0].mxu0 %vm865_vm0, %v4526_v1  ;;  %v3368_v43 = vpack.c.bf16 %v3632_v57, %v3630_v0  ;;  %3653 = vtanh.f32 %v720_v27  ;;  %v717_v63 = vadd.f32 %v653_v36, %v487_v6  ;;  %v421_v49 = vmul.f32 %v5176_v37, %v4298_v19 }
  0xcc   : > { %v3636_v44 = vpop.eup %3635  ;;  %3260 = vmatmul.mubr.msk.f32.vlgmr.msra.gmra.mrb[0].mxu1 %vm865_vm0, %v4526_v1  ;;  %3361 = vmatpush1.bf16.msra.mxu0 %v3360_v22  ;;  %3655 = vtanh.f32 %v736_v41  ;;  %v733_v23 = vadd.f32 %v669_v34, %v503_v24  ;;  %v489_v29 = vadd.f32 %v4257_v61, %v405_v51  ;;  %v655_v30 = vmul.f32 %v5177_v12, %v4375_v62 }
  0xcd   : > { %v3638_v52 = vpop.eup %3637  ;;  %3369 = vmatpush1.bf16.msra.mxu1 %v3368_v43  ;;  %v3362_v26 = vpack.c.bf16 %v3636_v44, %v3634_v25  ;;  %v5178_v45 = vmov 0.0   ;;  %3657 = vtanh.f32 %v717_v63  ;;  %v505_v15 = vadd.f32 %v4300_v20, %v421_v49  ;;  %v4604_v25 = vld [vmem:[%s5134_s3 + $0x18] sm:$0xff] }
  0xce   : > { %948 = vmatprep.mubr.f32.mxu0 %v5178_v45  ;;  %v671_v14 = vmul.f32 %v5177_v12, %v4343_v13  ;;  %v3640_v16 = vpop.eup %3639  ;;  %1037 = vmatprep.mubr.f32.mxu1 %v5178_v45  ;;  %3659 = vtanh.f32 %v733_v23  ;;  %v719_v18 = vadd.f32 %v655_v30, %v489_v29  ;;  %v436_v28 = vmul.f32 %v4223_v46, %v4383_v48 }
  0xcf   : > { %v452_v42 = vmul.f32 %v4223_v46, %v4337_v8  ;;  %v3642_v59 = vpop.eup %3641  ;;  %3363 = vmatprep.subr.bf16.mxu0 %v3362_v26  ;;  %v3370_v32 = vpack.c.bf16 %v3640_v16, %v3638_v52  ;;  %3257 = vmatmul.mubr.msk.f32.gmra.mrb[2].mxu0 %vm865_vm0, %v4547_v56  ;;  %v686_v33 = vmul.f32 %v4232_v50, %v4400_v7 }
  0xd0   : > { %v735_v2 = vadd.f32 %v671_v14, %v505_v15  ;;  %v3644_v38 = vpop.eup %3643  ;;  %3261 = vmatmul.mubr.msk.f32.gmra.mrb[2].mxu1 %vm865_vm0, %v4547_v56  ;;  %954 = vmatprep.mubr.f32.mxu0 %v5178_v45  ;;  %3661 = vtanh.f32 %v719_v18  ;;  %v520_v3 = vadd.f32 %v4407_v10, %v436_v28  ;;  %v702_v39 = vmul.f32 %v4232_v50, %v4449_v9 }
  0xd1   : > { %v536_v46 = vadd.f32 %v4423_v54, %v452_v42  ;;  %v3646_v11 = vpop.eup %3645  ;;  %3371 = vmatprep.subr.bf16.mxu1 %v3370_v32  ;;  %v3364_v4 = vpack.c.bf16 %v3644_v38, %v3642_v59  ;;  %1043 = vmatprep.mubr.f32.mxu1 %v5178_v45  ;;  %v438_v17 = vmul.f32 %v4225_v47, %v4383_v48 }
  0xd2   : > { %3663 = vtanh.f32 %v735_v2  ;;  %v454_v58 = vmul.f32 %v4225_v47, %v4337_v8  ;;  %v3648_v35 = vpop.eup %3647  ;;  %v750_v53 = vadd.f32 %v686_v33, %v520_v3  ;;  %v688_v27 = vmul.f32 %v5173_v5, %v4400_v7  ;;  %v5180_v33 = vld [vmem:[#allocation17_spill] sm:$0xff] }
  0xd3   : > { %v766_v50 = vadd.f32 %v702_v39, %v536_v46  ;;  %v704_v31 = vmul.f32 %v5173_v5, %v4449_v9  ;;  %v3650_v36 = vpop.eup %3649  ;;  %3365 = vmatpush1.bf16.msra.mxu0 %v3364_v4  ;;  %v3372_v0 = vpack.c.bf16 %v3648_v35, %v3646_v11  ;;  %v522_v22 = vadd.f32 %v4407_v10, %v438_v17 }
  0xd4   : > { %v538_v41 = vadd.f32 %v4423_v54, %v454_v58  ;;  %v435_v6 = vmul.f32 %v5174_v21, %v4383_v48  ;;  %v3652_v47 = vpop.eup %3651  ;;  %3258 = vmatmul.mubr.msk.f32.gmra.mrb[4].mxu0 %vm865_vm0, %v4576_v55  ;;  %3262 = vmatmul.mubr.msk.f32.gmra.mrb[4].mxu1 %vm865_vm0, %v4576_v55  ;;  %3665 = vtanh.f32 %v750_v53  ;;  %v451_v5 = vmul.f32 %v5174_v21, %v4337_v8  ;;  %v5181_v58 = vld [vmem:[#allocation14_spill] sm:$0xff] }
  0xd5   : > { %v685_v57 = vmul.f32 %v5175_v40, %v4400_v7  ;;  %v701_v24 = vmul.f32 %v5175_v40, %v4449_v9  ;;  %v3654_v34 = vpop.eup %3653  ;;  %3373 = vmatpush1.bf16.msra.mxu1 %v3372_v0  ;;  %v3374_v51 = vpack.c.bf16 %v3652_v47, %v3650_v36  ;;  %960 = vmatprep.mubr.f32.mxu0 %v5178_v45  ;;  %3667 = vtanh.f32 %v766_v50 }
  0xd6   : > { %v752_v43 = vadd.f32 %v688_v27, %v522_v22  ;;  %v768_v63 = vadd.f32 %v704_v31, %v538_v41  ;;  %v3656_v21 = vpop.eup %3655  ;;  %1049 = vmatprep.mubr.f32.mxu1 %v5178_v45  ;;  %v519_v49 = vadd.f32 %v4407_v10, %v435_v6  ;;  %v535_v40 = vadd.f32 %v4423_v54, %v451_v5  ;;  %v5182_v27 = vld [vmem:[#allocation18_spill] sm:$0xff]  ;;  %v5183_v5 = vld [vmem:[#allocation15_spill] sm:$0xff] }
  0xd7   : > { %v437_v44 = vmul.f32 %v5176_v37, %v4383_v48  ;;  %v453_v23 = vmul.f32 %v5176_v37, %v4337_v8  ;;  %v3658_v29 = vpop.eup %3657  ;;  %3375 = vmatprep.subr.bf16.mxu0 %v3374_v51  ;;  %v3382_v30 = vpack.c.bf16 %v3656_v21, %v3654_v34  ;;  %v687_v52 = vmul.f32 %v5177_v12, %v4400_v7 }
  0xd8   : > { %3669 = vtanh.f32 %v752_v43  ;;  %v703_v26 = vmul.f32 %v5177_v12, %v4449_v9  ;;  %v3660_v15 = vpop.eup %3659  ;;  %3259 = vmatmul.mubr.msk.f32.gmra.mrb[6].mxu0 %vm865_vm0, %v4604_v25  ;;  %3263 = vmatmul.mubr.msk.f32.gmra.mrb[6].mxu1 %vm865_vm0, %v4604_v25  ;;  %v749_v14 = vadd.f32 %v685_v57, %v519_v49  ;;  %v765_v37 = vadd.f32 %v701_v24, %v535_v40  ;;  %v5179_v12 = vld [vmem:[#allocation12_spill] sm:$0xff]  ;;  %v5184_v43 = vld [vmem:[#allocation19_spill] sm:$0xff] }
  0xd9   : > { %3671 = vtanh.f32 %v768_v63  ;;  %v521_v16 = vadd.f32 %v4407_v10, %v437_v44  ;;  %3383 = vmatprep.subr.bf16.mxu1 %v3382_v30  ;;  %1120 = vmatprep.mubr.f32.mxu0 %v5178_v45  ;;  %v3376_v18 = vpack.c.bf16 %v3660_v15, %v3658_v29  ;;  %v537_v28 = vadd.f32 %v4423_v54, %v453_v23  ;;  %v5185_v30 = vld [vmem:[#allocation16_spill] sm:$0xff] }
  0xda   : > { %v408_v42 = vmul.f32 %v5179_v12, %v4255_v60  ;;  %v3662_v59 = vpop.eup %3661  ;;  %1209 = vmatprep.mubr.f32.mxu1 %v5178_v45  ;;  %3673 = vtanh.f32 %v749_v14  ;;  %v424_v2 = vmul.f32 %v5179_v12, %v4298_v19  ;;  %v658_v38 = vmul.f32 %v5180_v33, %v4375_v62 }
  0xdb   : > { %v751_v32 = vadd.f32 %v687_v52, %v521_v16  ;;  %3675 = vtanh.f32 %v765_v37  ;;  %v767_v46 = vadd.f32 %v703_v26, %v537_v28  ;;  %v674_v11 = vmul.f32 %v5180_v33, %v4343_v13  ;;  %v5186_v37 = vld [vmem:[#allocation20_spill] sm:$0xff] }
  0xdc   : > { %v3664_v3 = vpop.eup %3663  ;;  %v492_v39 = vadd.f32 %v4257_v61, %v408_v42  ;;  %3264 = vmatmul.mubr.msk.f32.vlgmr.msra.gmra.mrb[8].mxu0 %vm865_vm0, %v4526_v1  ;;  %3268 = vmatmul.mubr.msk.f32.vlgmr.msra.gmra.mrb[8].mxu1 %vm865_vm0, %v4526_v1  ;;  %v508_v17 = vadd.f32 %v4300_v20, %v424_v2  ;;  %v410_v35 = vmul.f32 %v5181_v58, %v4255_v60 }
  0xdd   : > { %v3384_v4 = vpack.c.bf16 %v3664_v3, %v3662_v59  ;;  %3677 = vtanh.f32 %v751_v32  ;;  %3377 = vmatpush1.bf16.msra.mxu0 %v3376_v18  ;;  %1126 = vmatprep.mubr.f32.mxu0 %v5178_v45  ;;  %v426_v50 = vmul.f32 %v5181_v58, %v4298_v19  ;;  %v660_v31 = vmul.f32 %v5182_v27, %v4375_v62 }
  0xde   : > { %3679 = vtanh.f32 %v767_v46  ;;  %v722_v53 = vadd.f32 %v658_v38, %v492_v39  ;;  %v3666_v36 = vpop.eup %3665  ;;  %1215 = vmatprep.mubr.f32.mxu1 %v5178_v45  ;;  %v738_v0 = vadd.f32 %v674_v11, %v508_v17  ;;  %v494_v22 = vadd.f32 %v4257_v61, %v410_v35 }
  0xdf   : > { %3385 = vmatpush1.bf16.msra.mxu1 %v3384_v4  ;;  %v676_v41 = vmul.f32 %v5182_v27, %v4343_v13  ;;  %v3668_v6 = vpop.eup %3667  ;;  %v510_v47 = vadd.f32 %v4300_v20, %v426_v50  ;;  %v407_v57 = vmul.f32 %v5183_v5, %v4255_v60  ;;  %v423_v24 = vmul.f32 %v5183_v5, %v4298_v19 }
  0xe0   : > { %3681 = vtanh.f32 %v722_v53  ;;  %v3378_v34 = vpack.c.bf16 %v3668_v6, %v3666_v36  ;;  %3265 = vmatmul.mubr.msk.f32.gmra.mrb[10].mxu0 %vm865_vm0, %v4547_v56  ;;  %3269 = vmatmul.mubr.msk.f32.gmra.mrb[10].mxu1 %vm865_vm0, %v4547_v56  ;;  %v724_v51 = vadd.f32 %v660_v31, %v494_v22  ;;  %v657_v63 = vmul.f32 %v5184_v43, %v4375_v62 }
  0xe1   : > { %3683 = vtanh.f32 %v738_v0  ;;  %v740_v49 = vadd.f32 %v676_v41, %v510_v47  ;;  %1132 = vmatprep.mubr.f32.mxu0 %v5178_v45  ;;  %1221 = vmatprep.mubr.f32.mxu1 %v5178_v45  ;;  %v491_v40 = vadd.f32 %v4257_v61, %v407_v57  ;;  %v507_v44 = vadd.f32 %v4300_v20, %v423_v24 }
  0xe2   : > { %v3670_v21 = vpop.eup %3669  ;;  %3379 = vmatprep.subr.bf16.mxu0 %v3378_v34  ;;  %3685 = vtanh.f32 %v724_v51  ;;  %v673_v29 = vmul.f32 %v5184_v43, %v4343_v13  ;;  %v409_v52 = vmul.f32 %v5185_v30, %v4255_v60  ;;  %v425_v26 = vmul.f32 %v5185_v30, %v4298_v19 }
  0xe3   : > { %v3672_v23 = vpop.eup %3671  ;;  %3687 = vtanh.f32 %v740_v49  ;;  %v721_v14 = vadd.f32 %v657_v63, %v491_v40  ;;  %v659_v16 = vmul.f32 %v5186_v37, %v4375_v62  ;;  %v675_v62 = vmul.f32 %v5186_v37, %v4343_v13 }
  0xe4   : > { %v3386_v15 = vpack.c.bf16 %v3672_v23, %v3670_v21  ;;  %v3674_v18 = vpop.eup %3673  ;;  %3266 = vmatmul.mubr.msk.f32.gmra.mrb[12].mxu0 %vm865_vm0, %v4576_v55  ;;  %3270 = vmatmul.mubr.msk.f32.gmra.mrb[12].mxu1 %vm865_vm0, %v4576_v55  ;;  %v737_v28 = vadd.f32 %v673_v29, %v507_v44  ;;  %v493_v42 = vadd.f32 %v4257_v61, %v409_v52 }
  0xe5   : > { %v509_v60 = vadd.f32 %v4300_v20, %v425_v26  ;;  %v3676_v59 = vpop.eup %3675  ;;  %1138 = vmatprep.mubr.f32.mxu0 %v5178_v45  ;;  %3689 = vtanh.f32 %v721_v14  ;;  %v440_v19 = vmul.f32 %v5179_v12, %v4383_v48  ;;  %v456_v32 = vmul.f32 %v5179_v12, %v4337_v8  ;;  %1227 = vmatprep.mubr.f32.mxu1 %v5178_v45 }
  0xe6   : > { %3387 = vmatprep.subr.bf16.mxu1 %v3386_v15  ;;  %v3380_v38 = vpack.c.bf16 %v3676_v59, %v3674_v18  ;;  %3691 = vtanh.f32 %v737_v28  ;;  %v723_v61 = vadd.f32 %v659_v16, %v493_v42  ;;  %v690_v20 = vmul.f32 %v5180_v33, %v4400_v7 }
  0xe7   : > { %v3678_v2 = vpop.eup %3677  ;;  %v739_v46 = vadd.f32 %v675_v62, %v509_v60  ;;  %v524_v39 = vadd.f32 %v4407_v10, %v440_v19  ;;  %v540_v13 = vadd.f32 %v4423_v54, %v456_v32  ;;  %v706_v11 = vmul.f32 %v5180_v33, %v4449_v9 }
  0xe8   : > { %v3680_v3 = vpop.eup %3679  ;;  %3381 = vmatpush1.bf16.msra.mxu0 %v3380_v38  ;;  %3271 = vmatmul.mubr.msk.f32.gmra.mrb[14].mxu1 %vm865_vm0, %v4604_v25  ;;  %3693 = vtanh.f32 %v723_v61  ;;  %v442_v4 = vmul.f32 %v5181_v58, %v4383_v48  ;;  %v458_v17 = vmul.f32 %v5181_v58, %v4337_v8  ;;  %v692_v50 = vmul.f32 %v5182_v27, %v4400_v7 }
  0xe9   : > { %v3388_v12 = vpack.c.bf16 %v3680_v3, %v3678_v2  ;;  %3267 = vmatmul.mubr.msk.f32.gmra.mrb[14].mxu0 %vm865_vm0, %v4604_v25  ;;  %1387 = vmatprep.mubr.f32.mxu1 %v5178_v45  ;;  %3695 = vtanh.f32 %v739_v46  ;;  %v754_v33 = vadd.f32 %v690_v20, %v524_v39  ;;  %v770_v53 = vadd.f32 %v706_v11, %v540_v13  ;;  %v4783_v13 = vpop.permute.xlu0 %852 }
  0xea   : > { %v3682_v35 = vpop.eup %3681  ;;  %1298 = vmatprep.mubr.f32.mxu0 %v5178_v45  ;;  %v526_v36 = vadd.f32 %v4407_v10, %v442_v4  ;;  %v542_v58 = vadd.f32 %v4423_v54, %v458_v17  ;;  %v708_v0 = vmul.f32 %v5182_v27, %v4449_v9  ;;  %v439_v41 = vmul.f32 %v5183_v5, %v4383_v48 }
  0xeb   : > { %v3684_v31 = vpop.eup %3683  ;;  %3389 = vmatpush1.bf16.msra.mxu1 %v3388_v12  ;;  %3697 = vtanh.f32 %v754_v33  ;;  %v455_v6 = vmul.f32 %v5183_v5, %v4337_v8  ;;  %v689_v34 = vmul.f32 %v5184_v43, %v4400_v7  ;;  %v705_v21 = vmul.f32 %v5184_v43, %v4449_v9 }
  0xec   : > { %v3390_v22 = vpack.c.bf16 %v3684_v31, %v3682_v35  ;;  %v3686_v47 = vpop.eup %3685  ;;  %3699 = vtanh.f32 %v770_v53  ;;  %v756_v57 = vadd.f32 %v692_v50, %v526_v36  ;;  %v772_v24 = vadd.f32 %v708_v0, %v542_v58 }
  0xed   : > { %v3688_v51 = vpop.eup %3687  ;;  %3272 = vmatmul.mubr.msk.f32.vlgmr.msra.gmra.mrb[16].mxu0 %vm865_vm0, %v4526_v1  ;;  %v523_v27 = vadd.f32 %v4407_v10, %v439_v41  ;;  %v539_v63 = vadd.f32 %v4423_v54, %v455_v6  ;;  %v441_v49 = vmul.f32 %v5185_v30, %v4383_v48  ;;  %v457_v40 = vmul.f32 %v5185_v30, %v4337_v8 }
  0xee   : > { %3391 = vmatprep.subr.bf16.mxu0 %v3390_v22  ;;  %v3398_v5 = vpack.c.bf16 %v3688_v51, %v3686_v47  ;;  %3276 = vmatmul.mubr.msk.f32.vlgmr.msra.gmra.mrb[16].mxu1 %vm865_vm0, %v4526_v1  ;;  %3701 = vtanh.f32 %v756_v57  ;;  %v691_v43 = vmul.f32 %v5186_v37, %v4400_v7  ;;  %v707_v48 = vmul.f32 %v5186_v37, %v4449_v9 }
  0xef   : > { %1304 = vmatprep.mubr.f32.mxu0 %v5178_v45  ;;  %v3690_v44 = vpop.eup %3689  ;;  %3703 = vtanh.f32 %v772_v24  ;;  %1393 = vmatprep.mubr.f32.mxu1 %v5178_v45  ;;  %v753_v23 = vadd.f32 %v689_v34, %v523_v27  ;;  %v769_v29 = vadd.f32 %v705_v21, %v539_v63  ;;  %v525_v26 = vadd.f32 %v4407_v10, %v441_v49 }
  0xf0   : > { %v3692_v52 = vpop.eup %3691  ;;  %3399 = vmatprep.subr.bf16.mxu1 %v3398_v5  ;;  %v541_v15 = vadd.f32 %v4423_v54, %v457_v40 }
  0xf1   : > { %v3392_v14 = vpack.c.bf16 %v3692_v52, %v3690_v44  ;;  %3273 = vmatmul.mubr.msk.f32.gmra.mrb[18].mxu0 %vm865_vm0, %v4547_v56  ;;  %3705 = vtanh.f32 %v753_v23  ;;  %v755_v7 = vadd.f32 %v691_v43, %v525_v26 }
  0xf2   : > { %v3694_v8 = vpop.eup %3693  ;;  %3277 = vmatmul.mubr.msk.f32.gmra.mrb[18].mxu1 %vm865_vm0, %v4547_v56  ;;  %3707 = vtanh.f32 %v769_v29  ;;  %v771_v30 = vadd.f32 %v707_v48, %v541_v15  ;;  %1310 = vmatprep.mubr.f32.mxu0 %v5178_v45 }
  0xf3   : > { %v3696_v10 = vpop.eup %3695  ;;  %3393 = vmatpush1.bf16.msra.mxu0 %v3392_v14  ;;  %1399 = vmatprep.mubr.f32.mxu1 %v5178_v45  ;;  %3709 = vtanh.f32 %v755_v7 }
  0xf4   : > { %v3400_v54 = vpack.c.bf16 %v3696_v10, %v3694_v8  ;;  %3711 = vtanh.f32 %v771_v30 }
  0xf5   : > { %v3698_v9 = vpop.eup %3697  ;;  %3274 = vmatmul.mubr.msk.f32.gmra.mrb[20].mxu0 %vm865_vm0, %v4576_v55 }
  0xf6   : > { %v3700_v37 = vpop.eup %3699  ;;  %3401 = vmatpush1.bf16.msra.mxu1 %v3400_v54  ;;  %1316 = vmatprep.mubr.f32.mxu0 %v5178_v45 }
  0xf7   : > { %v3394_v16 = vpack.c.bf16 %v3700_v37, %v3698_v9  ;;  %3278 = vmatmul.mubr.msk.f32.gmra.mrb[20].mxu1 %vm865_vm0, %v4576_v55 }
  0xf8   : > { %v3702_v18 = vpop.eup %3701  ;;  %1405 = vmatprep.mubr.f32.mxu1 %v5178_v45 }
  0xf9   : > { %v3704_v28 = vpop.eup %3703  ;;  %3395 = vmatprep.subr.bf16.mxu0 %v3394_v16  ;;  %3275 = vmatmul.mubr.msk.f32.gmra.mrb[22].mxu0 %vm865_vm0, %v4604_v25 }
  0xfa   : > { %v3402_v42 = vpack.c.bf16 %v3704_v28, %v3702_v18  ;;  %1476 = vmatprep.mubr.f32.mxu0 %v5178_v45 }
  0xfb   : > { %v3706_v60 = vpop.eup %3705  ;;  %3279 = vmatmul.mubr.msk.f32.gmra.mrb[22].mxu1 %vm865_vm0, %v4604_v25 }
  0xfc   : > { %v3708_v59 = vpop.eup %3707  ;;  %3403 = vmatprep.subr.bf16.mxu1 %v3402_v42  ;;  %1565 = vmatprep.mubr.f32.mxu1 %v5178_v45 }
  0xfd   : > { %v3396_v62 = vpack.c.bf16 %v3708_v59, %v3706_v60  ;;  %v3710_v19 = vpop.eup %3709 }
  0xfe   : > { %v3712_v32 = vpop.eup %3711 }
  0xff   : > { %3397 = vmatpush1.bf16.msra.mxu0 %v3396_v62  ;;  %v3404_v2 = vpack.c.bf16 %v3712_v32, %v3710_v19 }
 0x101   : > { %3405 = vmatpush1.bf16.msra.mxu1 %v3404_v2 }
 0x102   : > { %3280 = vmatmul.mubr.msk.f32.vlgmr.msra.gmra.mrb[24].mxu0 %vm865_vm0, %v4526_v1 }
 0x103   : > { %1482 = vmatprep.mubr.f32.mxu0 %v5178_v45 }
 0x104   : > { %3284 = vmatmul.mubr.msk.f32.vlgmr.msra.gmra.mrb[24].mxu1 %vm865_vm0, %v4526_v1  ;;  %v4777_v1 = vpop.permute.xlu1 %847 }
 0x105   : > { %1571 = vmatprep.mubr.f32.mxu1 %v5178_v45 }
 0x106   : > { %3281 = vmatmul.mubr.msk.f32.gmra.mrb[26].mxu0 %vm865_vm0, %v4547_v56 }
 0x107   : > { %1488 = vmatprep.mubr.f32.mxu0 %v5178_v45 }
 0x108   : > { %3285 = vmatmul.mubr.msk.f32.gmra.mrb[26].mxu1 %vm865_vm0, %v4547_v56  ;;  %v4786_v17 = vpop.permute.xlu1 %857 }
 0x109   : > { %1577 = vmatprep.mubr.f32.mxu1 %v5178_v45 }
 0x10a   : > { %3282 = vmatmul.mubr.msk.f32.gmra.mrb[28].mxu0 %vm865_vm0, %v4576_v55 }
 0x10b   : > { %1494 = vmatprep.mubr.f32.mxu0 %v5178_v45 }
 0x10c   : > { %3286 = vmatmul.mubr.msk.f32.gmra.mrb[28].mxu1 %vm865_vm0, %v4576_v55  ;;  %v4795_v57 = vpop.permute.xlu1 %862 }
 0x10d   : > { %1583 = vmatprep.mubr.f32.mxu1 %v5178_v45 }
 0x10e   : > { %3283 = vmatmul.mubr.msk.f32.gmra.mrb[30].mxu0 %vm865_vm0, %v4604_v25 }
 0x10f   : > { %1760 = vmatprep.mubr.f32.mxu0 %v5178_v45 }
 0x110   : > { %3287 = vmatmul.mubr.msk.f32.gmra.mrb[30].mxu1 %vm865_vm0, %v4604_v25 }
 0x111   : > { %1849 = vmatprep.mubr.f32.mxu1 %v5178_v45 }
 0x19e   : > { %v944_v56 = vpop.f32.mrb[0].mxu0 }
 0x19f   : > { %v945_v38 = vadd.f32 %v944_v56, %v4777_v1  ;;  %v1033_v61 = vpop.f32.mrb[0].mxu1  ;;  %v946_v20 = vpop.f32.mrb[1].mxu0 }
 0x1a0   : > { %v1034_v55 = vadd.f32 %v1033_v61, %v4777_v1  ;;  %v947_v3 = vadd.f32 %v946_v20, %v4777_v1  ;;  %v1035_v46 = vpop.f32.mrb[1].mxu1 }
 0x1a1   : > { %3713 = vtanh.f32 %v945_v38  ;;  %v1036_v39 = vadd.f32 %v1035_v46, %v4777_v1 }
 0x1a2   : > { %3715 = vtanh.f32 %v1034_v55  ;;  %v950_v25 = vpop.f32.mrb[2].mxu0 }
 0x1a3   : > { %3717 = vtanh.f32 %v947_v3  ;;  %v951_v11 = vadd.f32 %v950_v25, %v4783_v13  ;;  %v1039_v12 = vpop.f32.mrb[2].mxu1  ;;  %v952_v4 = vpop.f32.mrb[3].mxu0 }
 0x1a4   : > { %3719 = vtanh.f32 %v1036_v39  ;;  %v1040_v35 = vadd.f32 %v1039_v12, %v4783_v13  ;;  %v953_v33 = vadd.f32 %v952_v4, %v4783_v13  ;;  %v1041_v53 = vpop.f32.mrb[3].mxu1 }
 0x1a5   : > { %3721 = vtanh.f32 %v951_v11  ;;  %v1042_v50 = vadd.f32 %v1041_v53, %v4783_v13 }
 0x1a6   : > { %3723 = vtanh.f32 %v1040_v35 }
 0x1a7   : > { %3725 = vtanh.f32 %v953_v33  ;;  %v956_v31 = vpop.f32.mrb[4].mxu0  ;;  %v1045_v36 = vpop.f32.mrb[4].mxu1 }
 0x1a8   : > { %3727 = vtanh.f32 %v1042_v50  ;;  %v957_v58 = vadd.f32 %v956_v31, %v4786_v17  ;;  %v1046_v0 = vadd.f32 %v1045_v36, %v4786_v17  ;;  %v958_v22 = vpop.f32.mrb[5].mxu0  ;;  %v1047_v41 = vpop.f32.mrb[5].mxu1 }
 0x1a9   : > { %v959_v6 = vadd.f32 %v958_v22, %v4786_v17  ;;  %v1048_v47 = vadd.f32 %v1047_v41, %v4786_v17 }
 0x1aa   : > { %3729 = vtanh.f32 %v957_v58 }
 0x1ab   : > { %v3714_v24 = vpop.eup %3713  ;;  %3731 = vtanh.f32 %v1046_v0  ;;  %v962_v34 = vpop.f32.mrb[6].mxu0 }
 0x1ac   : > { %v1051_v51 = vpop.f32.mrb[6].mxu1  ;;  %v3716_v27 = vpop.eup %3715  ;;  %3733 = vtanh.f32 %v959_v6  ;;  %v963_v63 = vadd.f32 %v962_v34, %v4795_v57 }
 0x1ad   : > { %v1052_v21 = vadd.f32 %v1051_v51, %v4795_v57  ;;  %v964_v5 = vpop.f32.mrb[7].mxu0  ;;  %v1053_v49 = vpop.f32.mrb[7].mxu1  ;;  %3735 = vtanh.f32 %v1048_v47 }
 0x1ae   : > { %v3718_v40 = vpop.eup %3717  ;;  %v965_v44 = vadd.f32 %v964_v5, %v4795_v57  ;;  %v1054_v23 = vadd.f32 %v1053_v49, %v4795_v57  ;;  %3737 = vtanh.f32 %v963_v63 }
 0x1af   : > { %v3720_v29 = vpop.eup %3719  ;;  %3739 = vtanh.f32 %v1052_v21  ;;  %v1122_v52 = vpop.f32.mrb[8].mxu0 }
 0x1b0   : > { %v3722_v43 = vpop.eup %3721  ;;  %v1211_v26 = vpop.f32.mrb[8].mxu1  ;;  %3741 = vtanh.f32 %v965_v44  ;;  %v1123_v48 = vadd.f32 %v1122_v52, %v4777_v1 }
 0x1b1   : > { %v3724_v15 = vpop.eup %3723  ;;  %v1212_v14 = vadd.f32 %v1211_v26, %v4777_v1  ;;  %v1124_v8 = vpop.f32.mrb[9].mxu0  ;;  %v3408_v30 = vpack.c.bf16 %v3722_v43, %v3714_v24  ;;  %3743 = vtanh.f32 %v1054_v23 }
 0x1b2   : > { %v1213_v7 = vpop.f32.mrb[9].mxu1  ;;  %v3726_v10 = vpop.eup %3725  ;;  %v1125_v54 = vadd.f32 %v1124_v8, %v4777_v1  ;;  %v3416_v37 = vpack.c.bf16 %v3724_v15, %v3716_v27  ;;  %3745 = vtanh.f32 %v1123_v48 }
 0x1b3   : > { %v1214_v9 = vadd.f32 %v1213_v7, %v4777_v1  ;;  %v3728_v16 = vpop.eup %3727  ;;  %v3406_v18 = vpack.c.bf16 %v3726_v10, %v3718_v40  ;;  %3747 = vtanh.f32 %v1212_v14  ;;  %v1128_v28 = vpop.f32.mrb[10].mxu0  ;;  %v4822_v40 = vld [vmem:[%s5134_s3 + $0x20] sm:$0xff]  ;;  %v4836_v10 = vld [vmem:[%s5134_s3 + $0x28] sm:$0xff] }
 0x1b4   : > { %v1217_v42 = vpop.f32.mrb[10].mxu1  ;;  %v3414_v60 = vpack.c.bf16 %v3728_v16, %v3720_v29  ;;  %v3730_v59 = vpop.eup %3729  ;;  %3749 = vtanh.f32 %v1125_v54  ;;  %v1129_v62 = vadd.f32 %v1128_v28, %v4783_v13 }
 0x1b5   : > { %v1218_v19 = vadd.f32 %v1217_v42, %v4783_v13  ;;  %v1130_v32 = vpop.f32.mrb[11].mxu0  ;;  %v1219_v2 = vpop.f32.mrb[11].mxu1  ;;  %3407 = vmatprep.subr.bf16.mxu0 %v3406_v18  ;;  %3751 = vtanh.f32 %v1214_v9 }
 0x1b6   : > { %v3732_v56 = vpop.eup %3731  ;;  %v1131_v38 = vadd.f32 %v1130_v32, %v4783_v13  ;;  %v1220_v61 = vadd.f32 %v1219_v2, %v4783_v13  ;;  %3415 = vmatprep.subr.bf16.mxu1 %v3414_v60  ;;  %3409 = vmatpush1.bf16.msra.mxu0 %v3408_v30  ;;  %3753 = vtanh.f32 %v1129_v62 }
 0x1b7   : > { %v3734_v20 = vpop.eup %3733  ;;  %3417 = vmatpush1.bf16.msra.mxu1 %v3416_v37  ;;  %3755 = vtanh.f32 %v1218_v19  ;;  %v1134_v3 = vpop.f32.mrb[12].mxu0 }
 0x1b8   : > { %v3736_v55 = vpop.eup %3735  ;;  %v1223_v46 = vpop.f32.mrb[12].mxu1  ;;  %3757 = vtanh.f32 %v1131_v38  ;;  %v1135_v25 = vadd.f32 %v1134_v3, %v4786_v17 }
 0x1b9   : > { %v3738_v39 = vpop.eup %3737  ;;  %v1224_v11 = vadd.f32 %v1223_v46, %v4786_v17  ;;  %v1136_v12 = vpop.f32.mrb[13].mxu0  ;;  %3759 = vtanh.f32 %v1220_v61  ;;  %v4854_v61 = vld [vmem:[%s5134_s3 + $0x30] sm:$0xff] }
 0x1ba   : > { %v1225_v4 = vpop.f32.mrb[13].mxu1  ;;  %v3740_v35 = vpop.eup %3739  ;;  %v1137_v33 = vadd.f32 %v1136_v12, %v4786_v17  ;;  %v3412_v50 = vpack.c.bf16 %v3738_v39, %v3730_v59  ;;  %3761 = vtanh.f32 %v1135_v25 }
 0x1bb   : > { %v1226_v53 = vadd.f32 %v1225_v4, %v4786_v17  ;;  %v3742_v31 = vpop.eup %3741  ;;  %v3420_v36 = vpack.c.bf16 %v3740_v35, %v3732_v56  ;;  %3763 = vtanh.f32 %v1224_v11  ;;  %v1229_v0 = vpop.f32.mrb[14].mxu1 }
 0x1bc   : > { %v3744_v58 = vpop.eup %3743  ;;  %v3410_v22 = vpack.c.bf16 %v3742_v31, %v3734_v20  ;;  %3765 = vtanh.f32 %v1137_v33  ;;  %v1140_v6 = vpop.f32.mrb[14].mxu0  ;;  %v1230_v47 = vadd.f32 %v1229_v0, %v4795_v57 }
 0x1bd   : > { %v4813_v41 = vpop.eup %3745  ;;  %v1231_v24 = vpop.f32.mrb[15].mxu1  ;;  %v3418_v34 = vpack.c.bf16 %v3744_v58, %v3736_v55  ;;  %3767 = vtanh.f32 %v1226_v53  ;;  %v1141_v27 = vadd.f32 %v1140_v6, %v4795_v57  ;;  %v4870_v53 = vld [vmem:[%s5134_s3 + $0x38] sm:$0xff] }
 0x1be   : > { %v3748_v51 = vpop.eup %3747  ;;  %v1142_v63 = vpop.f32.mrb[15].mxu0  ;;  %v1232_v21 = vadd.f32 %v1231_v24, %v4795_v57  ;;  %3411 = vmatprep.subr.bf16.mxu0 %v3410_v22  ;;  %3769 = vtanh.f32 %v1230_v47 }
 0x1bf   : > { %v3750_v5 = vpop.eup %3749  ;;  %v1143_v49 = vadd.f32 %v1142_v63, %v4795_v57  ;;  %3419 = vmatprep.subr.bf16.mxu1 %v3418_v34  ;;  %3413 = vmatpush1.bf16.msra.mxu0 %v3412_v50  ;;  %3771 = vtanh.f32 %v1141_v27 }
 0x1c0   : > { %v3752_v44 = vpop.eup %3751  ;;  %3421 = vmatpush1.bf16.msra.mxu1 %v3420_v36  ;;  %v1300_v29 = vpop.f32.mrb[16].mxu0 }
 0x1c1   : > { %v3754_v23 = vpop.eup %3753  ;;  %3773 = vtanh.f32 %v1143_v49  ;;  %v1301_v52 = vadd.f32 %v1300_v29, %v4777_v1  ;;  %v1389_v26 = vpop.f32.mrb[16].mxu1 }
 0x1c2   : > { %v3756_v43 = vpop.eup %3755  ;;  %3775 = vtanh.f32 %v1232_v21  ;;  %v1302_v15 = vpop.f32.mrb[17].mxu0  ;;  %3296 = vmatmul.mubr.msk.f32.vlgmr.msra.gmra.mrb[32].mxu0 %vm865_vm0, %v4822_v40  ;;  %v3424_v48 = vpack.c.bf16 %v3754_v23, %v4813_v41  ;;  %v1390_v8 = vadd.f32 %v1389_v26, %v4777_v1 }
 0x1c3   : > { %v3758_v14 = vpop.eup %3757  ;;  %v1303_v7 = vadd.f32 %v1302_v15, %v4777_v1  ;;  %v1391_v30 = vpop.f32.mrb[17].mxu1  ;;  %3300 = vmatmul.mubr.msk.f32.vlgmr.msra.gmra.mrb[32].mxu1 %vm865_vm0, %v4822_v40  ;;  %1766 = vmatprep.mubr.f32.mxu0 %v5178_v45  ;;  %v3432_v54 = vpack.c.bf16 %v3756_v43, %v3748_v51  ;;  %3777 = vtanh.f32 %v1301_v52 }
 0x1c4   : > { %v3760_v9 = vpop.eup %3759  ;;  %v1392_v37 = vadd.f32 %v1391_v30, %v4777_v1  ;;  %1855 = vmatprep.mubr.f32.mxu1 %v5178_v45  ;;  %v3422_v16 = vpack.c.bf16 %v3758_v14, %v3750_v5  ;;  %3779 = vtanh.f32 %v1390_v8  ;;  %v1306_v28 = vpop.f32.mrb[18].mxu0 }
 0x1c5   : > { %v4840_v18 = vpop.eup %3761  ;;  %v3430_v42 = vpack.c.bf16 %v3760_v9, %v3752_v44  ;;  %3781 = vtanh.f32 %v1303_v7  ;;  %v1307_v59 = vadd.f32 %v1306_v28, %v4783_v13  ;;  %v1395_v62 = vpop.f32.mrb[18].mxu1 }
 0x1c6   : > { %v4842_v60 = vpop.eup %3763  ;;  %v1308_v19 = vpop.f32.mrb[19].mxu0  ;;  %3297 = vmatmul.mubr.msk.f32.gmra.mrb[34].mxu0 %vm865_vm0, %v4836_v10  ;;  %3423 = vmatprep.subr.bf16.mxu0 %v3422_v16  ;;  %3783 = vtanh.f32 %v1392_v37  ;;  %v1396_v2 = vadd.f32 %v1395_v62, %v4783_v13 }
 0x1c7   : > { %v3766_v32 = vpop.eup %3765  ;;  %v1309_v56 = vadd.f32 %v1308_v19, %v4783_v13  ;;  %v1397_v38 = vpop.f32.mrb[19].mxu1  ;;  %3301 = vmatmul.mubr.msk.f32.gmra.mrb[34].mxu1 %vm865_vm0, %v4836_v10  ;;  %3431 = vmatprep.subr.bf16.mxu1 %v3430_v42  ;;  %3785 = vtanh.f32 %v1307_v59 }
 0x1c8   : > { %v3768_v20 = vpop.eup %3767  ;;  %v1398_v55 = vadd.f32 %v1397_v38, %v4783_v13  ;;  %3425 = vmatpush1.bf16.msra.mxu0 %v3424_v48  ;;  %3433 = vmatpush1.bf16.msra.mxu1 %v3432_v54  ;;  %3787 = vtanh.f32 %v1396_v2  ;;  %v1312_v46 = vpop.f32.mrb[20].mxu0 }
 0x1c9   : > { %v3770_v3 = vpop.eup %3769  ;;  %1772 = vmatprep.mubr.f32.mxu0 %v5178_v45  ;;  %1861 = vmatprep.mubr.f32.mxu1 %v5178_v45  ;;  %3789 = vtanh.f32 %v1309_v56  ;;  %v1313_v25 = vadd.f32 %v1312_v46, %v4786_v17  ;;  %v1314_v11 = vpop.f32.mrb[21].mxu0 }
 0x1ca   : > { %v3772_v39 = vpop.eup %3771  ;;  %3298 = vmatmul.mubr.msk.f32.gmra.mrb[36].mxu0 %vm865_vm0, %v4854_v61  ;;  %v3436_v12 = vpack.c.bf16 %v3770_v3, %v4842_v60  ;;  %3791 = vtanh.f32 %v1398_v55  ;;  %v1401_v35 = vpop.f32.mrb[20].mxu1  ;;  %v1315_v33 = vadd.f32 %v1314_v11, %v4786_v17 }
 0x1cb   : > { %v3774_v4 = vpop.eup %3773  ;;  %3302 = vmatmul.mubr.msk.f32.gmra.mrb[36].mxu1 %vm865_vm0, %v4854_v61  ;;  %1778 = vmatprep.mubr.f32.mxu0 %v5178_v45  ;;  %v3428_v50 = vpack.c.bf16 %v3772_v39, %v4840_v18  ;;  %3793 = vtanh.f32 %v1313_v25  ;;  %v1402_v36 = vadd.f32 %v1401_v35, %v4786_v17  ;;  %v1403_v58 = vpop.f32.mrb[21].mxu1 }
 0x1cc   : > { %v3776_v31 = vpop.eup %3775  ;;  %1867 = vmatprep.mubr.f32.mxu1 %v5178_v45  ;;  %v3426_v0 = vpack.c.bf16 %v3774_v4, %v3766_v32  ;;  %3795 = vtanh.f32 %v1315_v33  ;;  %v1404_v22 = vadd.f32 %v1403_v58, %v4786_v17  ;;  %v1318_v41 = vpop.f32.mrb[22].mxu0 }
 0x1cd   : > { %v3434_v6 = vpack.c.bf16 %v3776_v31, %v3768_v20  ;;  %v3778_v47 = vpop.eup %3777  ;;  %3797 = vtanh.f32 %v1402_v36  ;;  %v1319_v24 = vadd.f32 %v1318_v41, %v4795_v57  ;;  %v1320_v34 = vpop.f32.mrb[23].mxu0 }
 0x1ce   : > { %3299 = vmatmul.mubr.msk.f32.gmra.mrb[38].mxu0 %vm865_vm0, %v4870_v53  ;;  %3427 = vmatprep.subr.bf16.mxu0 %v3426_v0  ;;  %v3780_v51 = vpop.eup %3779  ;;  %3799 = vtanh.f32 %v1404_v22  ;;  %v1407_v27 = vpop.f32.mrb[22].mxu1  ;;  %v1321_v63 = vadd.f32 %v1320_v34, %v4795_v57 }
 0x1cf   : > { %3303 = vmatmul.mubr.msk.f32.gmra.mrb[38].mxu1 %vm865_vm0, %v4870_v53  ;;  %3435 = vmatprep.subr.bf16.mxu1 %v3434_v6  ;;  %v3782_v21 = vpop.eup %3781  ;;  %3801 = vtanh.f32 %v1319_v24  ;;  %v1408_v5 = vadd.f32 %v1407_v27, %v4795_v57  ;;  %v1409_v49 = vpop.f32.mrb[23].mxu1 }
 0x1d0   : > { %3429 = vmatpush1.bf16.msra.mxu0 %v3428_v50  ;;  %3437 = vmatpush1.bf16.msra.mxu1 %v3436_v12  ;;  %v3784_v44 = vpop.eup %3783  ;;  %3803 = vtanh.f32 %v1321_v63  ;;  %v1410_v23 = vadd.f32 %v1409_v49, %v4795_v57 }
 0x1d1   : > { %1938 = vmatprep.mubr.f32.mxu0 %v5178_v45  ;;  %2027 = vmatprep.mubr.f32.mxu1 %v5178_v45  ;;  %v3786_v29 = vpop.eup %3785  ;;  %3805 = vtanh.f32 %v1408_v5 }
 0x1d2   : > { %v3788_v43 = vpop.eup %3787  ;;  %3807 = vtanh.f32 %v1410_v23  ;;  %v3440_v52 = vpack.c.bf16 %v3786_v29, %v3778_v47 }
 0x1d3   : > { %3304 = vmatmul.mubr.msk.f32.vlgmr.msra.gmra.mrb[40].mxu0 %vm865_vm0, %v4822_v40  ;;  %3308 = vmatmul.mubr.msk.f32.vlgmr.msra.gmra.mrb[40].mxu1 %vm865_vm0, %v4822_v40  ;;  %v3790_v26 = vpop.eup %3789  ;;  %v3448_v15 = vpack.c.bf16 %v3788_v43, %v3780_v51 }
 0x1d4   : > { %1944 = vmatprep.mubr.f32.mxu0 %v5178_v45  ;;  %2033 = vmatprep.mubr.f32.mxu1 %v5178_v45  ;;  %v3792_v48 = vpop.eup %3791  ;;  %v3438_v14 = vpack.c.bf16 %v3790_v26, %v3782_v21 }
 0x1d5   : > { %v3794_v8 = vpop.eup %3793  ;;  %v1478_v7 = vpop.f32.mrb[24].mxu0  ;;  %v3446_v30 = vpack.c.bf16 %v3792_v48, %v3784_v44 }
 0x1d6   : > { %v3796_v54 = vpop.eup %3795  ;;  %v1479_v9 = vadd.f32 %v1478_v7, %v4777_v1  ;;  %v1480_v37 = vpop.f32.mrb[25].mxu0  ;;  %3439 = vmatprep.subr.bf16.mxu0 %v3438_v14 }
 0x1d7   : > { %3305 = vmatmul.mubr.msk.f32.gmra.mrb[42].mxu0 %vm865_vm0, %v4836_v10  ;;  %3309 = vmatmul.mubr.msk.f32.gmra.mrb[42].mxu1 %vm865_vm0, %v4836_v10  ;;  %v3798_v16 = vpop.eup %3797  ;;  %v1481_v18 = vadd.f32 %v1480_v37, %v4777_v1  ;;  %v1567_v42 = vpop.f32.mrb[24].mxu1 }
 0x1d8   : > { %3447 = vmatprep.subr.bf16.mxu1 %v3446_v30  ;;  %v3800_v28 = vpop.eup %3799  ;;  %3441 = vmatpush1.bf16.msra.mxu0 %v3440_v52  ;;  %3809 = vtanh.f32 %v1479_v9  ;;  %v1568_v59 = vadd.f32 %v1567_v42, %v4777_v1  ;;  %v1569_v62 = vpop.f32.mrb[25].mxu1 }
 0x1d9   : > { %3449 = vmatpush1.bf16.msra.mxu1 %v3448_v15  ;;  %v3802_v60 = vpop.eup %3801  ;;  %v1484_v19 = vpop.f32.mrb[26].mxu0  ;;  %1950 = vmatprep.mubr.f32.mxu0 %v5178_v45  ;;  %3811 = vtanh.f32 %v1481_v18  ;;  %v1570_v2 = vadd.f32 %v1569_v62, %v4777_v1 }
 0x1da   : > { %2039 = vmatprep.mubr.f32.mxu1 %v5178_v45  ;;  %v3804_v32 = vpop.eup %3803  ;;  %v1485_v56 = vadd.f32 %v1484_v19, %v4783_v13  ;;  %v1486_v38 = vpop.f32.mrb[27].mxu0  ;;  %v3444_v20 = vpack.c.bf16 %v3802_v60, %v3794_v8  ;;  %3813 = vtanh.f32 %v1568_v59 }
 0x1db   : > { %3306 = vmatmul.mubr.msk.f32.gmra.mrb[44].mxu0 %vm865_vm0, %v4854_v61  ;;  %3310 = vmatmul.mubr.msk.f32.gmra.mrb[44].mxu1 %vm865_vm0, %v4854_v61  ;;  %v3806_v55 = vpop.eup %3805  ;;  %v1487_v3 = vadd.f32 %v1486_v38, %v4783_v13  ;;  %v3442_v46 = vpack.c.bf16 %v3804_v32, %v3796_v54  ;;  %3815 = vtanh.f32 %v1570_v2  ;;  %v1573_v39 = vpop.f32.mrb[26].mxu1 }
 0x1dc   : > { %1956 = vmatprep.mubr.f32.mxu0 %v5178_v45  ;;  %2045 = vmatprep.mubr.f32.mxu1 %v5178_v45  ;;  %v3808_v1 = vpop.eup %3807  ;;  %v3452_v25 = vpack.c.bf16 %v3806_v55, %v3798_v16  ;;  %3817 = vtanh.f32 %v1485_v56  ;;  %v1574_v11 = vadd.f32 %v1573_v39, %v4783_v13  ;;  %v1575_v12 = vpop.f32.mrb[27].mxu1 }
 0x1dd   : > { %v1490_v4 = vpop.f32.mrb[28].mxu0  ;;  %3443 = vmatprep.subr.bf16.mxu0 %v3442_v46  ;;  %v3450_v35 = vpack.c.bf16 %v3808_v1, %v3800_v28  ;;  %3819 = vtanh.f32 %v1487_v3  ;;  %v1576_v33 = vadd.f32 %v1575_v12, %v4783_v13  ;;  %v4980_v56 = vpop.permute.xlu1 %1671 }
 0x1de   : > { %v1491_v50 = vadd.f32 %v1490_v4, %v4786_v17  ;;  %v1492_v31 = vpop.f32.mrb[29].mxu0  ;;  %3821 = vtanh.f32 %v1574_v11  ;;  %3445 = vmatpush1.bf16.msra.mxu0 %v3444_v20 }
 0x1df   : > { %3307 = vmatmul.mubr.msk.f32.gmra.mrb[46].mxu0 %vm865_vm0, %v4870_v53  ;;  %3311 = vmatmul.mubr.msk.f32.gmra.mrb[46].mxu1 %vm865_vm0, %v4870_v53  ;;  %v1493_v36 = vadd.f32 %v1492_v31, %v4786_v17  ;;  %3823 = vtanh.f32 %v1576_v33  ;;  %v1579_v58 = vpop.f32.mrb[28].mxu1 }
 0x1e0   : > { %3451 = vmatprep.subr.bf16.mxu1 %v3450_v35  ;;  %2116 = vmatprep.mubr.f32.mxu0 %v5178_v45  ;;  %3825 = vtanh.f32 %v1491_v50  ;;  %v1580_v13 = vadd.f32 %v1579_v58, %v4786_v17  ;;  %v1581_v0 = vpop.f32.mrb[29].mxu1 }
 0x1e1   : > { %3453 = vmatpush1.bf16.msra.mxu1 %v3452_v25  ;;  %v1496_v22 = vpop.f32.mrb[30].mxu0  ;;  %2205 = vmatprep.mubr.f32.mxu1 %v5178_v45  ;;  %3827 = vtanh.f32 %v1493_v36  ;;  %v1582_v41 = vadd.f32 %v1581_v0, %v4786_v17  ;;  %v4992_v58 = vpop.permute.xlu1 %1681 }
 0x1e2   : > { %v1497_v6 = vadd.f32 %v1496_v22, %v4795_v57  ;;  %v1498_v47 = vpop.f32.mrb[31].mxu0  ;;  %v3810_v24 = vpop.eup %3809  ;;  %3829 = vtanh.f32 %v1580_v13 }
 0x1e3   : > { %3312 = vmatmul.mubr.msk.f32.vlgmr.msra.gmra.mrb[48].mxu0 %vm865_vm0, %v4822_v40  ;;  %v1499_v34 = vadd.f32 %v1498_v47, %v4795_v57  ;;  %v3812_v51 = vpop.eup %3811  ;;  %3831 = vtanh.f32 %v1582_v41  ;;  %v1585_v27 = vpop.f32.mrb[30].mxu1 }
 0x1e4   : > { %3316 = vmatmul.mubr.msk.f32.vlgmr.msra.gmra.mrb[48].mxu1 %vm865_vm0, %v4822_v40  ;;  %2122 = vmatprep.mubr.f32.mxu0 %v5178_v45  ;;  %v3814_v17 = vpop.eup %3813  ;;  %3833 = vtanh.f32 %v1497_v6  ;;  %v1586_v63 = vadd.f32 %v1585_v27, %v4795_v57  ;;  %v1587_v21 = vpop.f32.mrb[31].mxu1 }
 0x1e5   : > { %2211 = vmatprep.mubr.f32.mxu1 %v5178_v45  ;;  %v3816_v5 = vpop.eup %3815  ;;  %3835 = vtanh.f32 %v1499_v34  ;;  %v1588_v49 = vadd.f32 %v1587_v21, %v4795_v57 }
 0x1e6   : > { %v3818_v44 = vpop.eup %3817  ;;  %3837 = vtanh.f32 %v1586_v63 }
 0x1e7   : > { %3313 = vmatmul.mubr.msk.f32.gmra.mrb[50].mxu0 %vm865_vm0, %v4836_v10  ;;  %v3820_v23 = vpop.eup %3819  ;;  %3839 = vtanh.f32 %v1588_v49  ;;  %v3456_v29 = vpack.c.bf16 %v3818_v44, %v3810_v24 }
 0x1e8   : > { %3317 = vmatmul.mubr.msk.f32.gmra.mrb[50].mxu1 %vm865_vm0, %v4836_v10  ;;  %2128 = vmatprep.mubr.f32.mxu0 %v5178_v45  ;;  %v3822_v43 = vpop.eup %3821  ;;  %v3454_v52 = vpack.c.bf16 %v3820_v23, %v3812_v51 }
 0x1e9   : > { %2217 = vmatprep.mubr.f32.mxu1 %v5178_v45  ;;  %v3824_v26 = vpop.eup %3823  ;;  %v3464_v15 = vpack.c.bf16 %v3822_v43, %v3814_v17 }
 0x1ea   : > { %v3826_v57 = vpop.eup %3825  ;;  %3455 = vmatprep.subr.bf16.mxu0 %v3454_v52  ;;  %v3462_v48 = vpack.c.bf16 %v3824_v26, %v3816_v5 }
 0x1eb   : > { %3314 = vmatmul.mubr.msk.f32.gmra.mrb[52].mxu0 %vm865_vm0, %v4854_v61  ;;  %v3828_v14 = vpop.eup %3827 }
 0x1ec   : > { %3318 = vmatmul.mubr.msk.f32.gmra.mrb[52].mxu1 %vm865_vm0, %v4854_v61  ;;  %3457 = vmatpush1.bf16.msra.mxu0 %v3456_v29  ;;  %v3830_v8 = vpop.eup %3829 }
 0x1ed   : > { %2134 = vmatprep.mubr.f32.mxu0 %v5178_v45  ;;  %3463 = vmatprep.subr.bf16.mxu1 %v3462_v48  ;;  %v3832_v7 = vpop.eup %3831 }
 0x1ee   : > { %2223 = vmatprep.mubr.f32.mxu1 %v5178_v45  ;;  %3465 = vmatpush1.bf16.msra.mxu1 %v3464_v15  ;;  %v3834_v30 = vpop.eup %3833 }
 0x1ef   : > { %3315 = vmatmul.mubr.msk.f32.gmra.mrb[54].mxu0 %vm865_vm0, %v4870_v53  ;;  %v3836_v54 = vpop.eup %3835  ;;  %v3460_v9 = vpack.c.bf16 %v3834_v30, %v3826_v57 }
 0x1f0   : > { %3319 = vmatmul.mubr.msk.f32.gmra.mrb[54].mxu1 %vm865_vm0, %v4870_v53  ;;  %2294 = vmatprep.mubr.f32.mxu0 %v5178_v45  ;;  %v3838_v37 = vpop.eup %3837  ;;  %v3458_v16 = vpack.c.bf16 %v3836_v54, %v3828_v14 }
 0x1f1   : > { %2383 = vmatprep.mubr.f32.mxu1 %v5178_v45  ;;  %v3840_v18 = vpop.eup %3839  ;;  %v3468_v28 = vpack.c.bf16 %v3838_v37, %v3830_v8 }
 0x1f2   : > { %3459 = vmatprep.subr.bf16.mxu0 %v3458_v16  ;;  %v3466_v42 = vpack.c.bf16 %v3840_v18, %v3832_v7 }
 0x1f3   : > { %3461 = vmatpush1.bf16.msra.mxu0 %v3460_v9 }
 0x1f4   : > { %3467 = vmatprep.subr.bf16.mxu1 %v3466_v42 }
 0x1f5   : > { %3469 = vmatpush1.bf16.msra.mxu1 %v3468_v28 }
 0x1f6   : > { %3320 = vmatmul.mubr.msk.f32.vlgmr.msra.gmra.mrb[56].mxu0 %vm865_vm0, %v4822_v40 }
 0x1f7   : > { %2300 = vmatprep.mubr.f32.mxu0 %v5178_v45 }
 0x1f8   : > { %3324 = vmatmul.mubr.msk.f32.vlgmr.msra.gmra.mrb[56].mxu1 %vm865_vm0, %v4822_v40  ;;  %v4974_v40 = vpop.permute.xlu0 %1666 }
 0x1f9   : > { %2389 = vmatprep.mubr.f32.mxu1 %v5178_v45 }
 0x1fa   : > { %3321 = vmatmul.mubr.msk.f32.gmra.mrb[58].mxu0 %vm865_vm0, %v4836_v10 }
 0x1fb   : > { %2306 = vmatprep.mubr.f32.mxu0 %v5178_v45 }
 0x1fc   : > { %3325 = vmatmul.mubr.msk.f32.gmra.mrb[58].mxu1 %vm865_vm0, %v4836_v10  ;;  %v4986_v25 = vpop.permute.xlu0 %1676 }
 0x1fd   : > { %2395 = vmatprep.mubr.f32.mxu1 %v5178_v45 }
 0x1fe   : > { %3322 = vmatmul.mubr.msk.f32.gmra.mrb[60].mxu0 %vm865_vm0, %v4854_v61 }
 0x1ff   : > { %2312 = vmatprep.mubr.f32.mxu0 %v5178_v45 }
 0x200   : > { %3326 = vmatmul.mubr.msk.f32.gmra.mrb[60].mxu1 %vm865_vm0, %v4854_v61 }
 0x201   : > { %2401 = vmatprep.mubr.f32.mxu1 %v5178_v45 }
 0x202   : > { %3323 = vmatmul.mubr.msk.f32.gmra.mrb[62].mxu0 %vm865_vm0, %v4870_v53 }
 0x203   : > { %2550 = vmatprep.mubr.f32.mxu0 %v5178_v45 }
 0x204   : > { %3327 = vmatmul.mubr.msk.f32.gmra.mrb[62].mxu1 %vm865_vm0, %v4870_v53 }
 0x205   : > { %2621 = vmatprep.mubr.f32.mxu1 %v5178_v45 }
 0x295   : > { %v1762_v10 = vpop.f32.mrb[32].mxu0 }
 0x296   : > { %v1763_v60 = vadd.f32 %v1762_v10, %v4974_v40  ;;  %v1851_v59 = vpop.f32.mrb[32].mxu1  ;;  %v1764_v62 = vpop.f32.mrb[33].mxu0 }
 0x297   : > { %v1852_v61 = vadd.f32 %v1851_v59, %v4974_v40  ;;  %v1765_v19 = vadd.f32 %v1764_v62, %v4974_v40  ;;  %v1853_v32 = vpop.f32.mrb[33].mxu1 }
 0x298   : > { %3841 = vtanh.f32 %v1763_v60  ;;  %v1854_v2 = vadd.f32 %v1853_v32, %v4974_v40 }
 0x299   : > { %3843 = vtanh.f32 %v1852_v61  ;;  %v1768_v53 = vpop.f32.mrb[34].mxu0 }
 0x29a   : > { %3845 = vtanh.f32 %v1765_v19  ;;  %v1769_v38 = vadd.f32 %v1768_v53, %v4980_v56  ;;  %v1857_v20 = vpop.f32.mrb[34].mxu1  ;;  %v1770_v55 = vpop.f32.mrb[35].mxu0 }
 0x29b   : > { %3847 = vtanh.f32 %v1854_v2  ;;  %v1858_v3 = vadd.f32 %v1857_v20, %v4980_v56  ;;  %v1771_v46 = vadd.f32 %v1770_v55, %v4980_v56  ;;  %v1859_v1 = vpop.f32.mrb[35].mxu1 }
 0x29c   : > { %3849 = vtanh.f32 %v1769_v38  ;;  %v1860_v39 = vadd.f32 %v1859_v1, %v4980_v56 }
 0x29d   : > { %3851 = vtanh.f32 %v1858_v3  ;;  %v1774_v11 = vpop.f32.mrb[36].mxu0 }
 0x29e   : > { %3853 = vtanh.f32 %v1771_v46  ;;  %v1775_v12 = vadd.f32 %v1774_v11, %v4986_v25  ;;  %v1863_v4 = vpop.f32.mrb[36].mxu1  ;;  %v1776_v35 = vpop.f32.mrb[37].mxu0 }
 0x29f   : > { %3855 = vtanh.f32 %v1860_v39  ;;  %v1864_v33 = vadd.f32 %v1863_v4, %v4986_v25  ;;  %v1777_v50 = vadd.f32 %v1776_v35, %v4986_v25  ;;  %v1865_v31 = vpop.f32.mrb[37].mxu1 }
 0x2a0   : > { %3857 = vtanh.f32 %v1775_v12  ;;  %v1866_v36 = vadd.f32 %v1865_v31, %v4986_v25 }
 0x2a1   : > { %3859 = vtanh.f32 %v1864_v33  ;;  %v1780_v13 = vpop.f32.mrb[38].mxu0 }
 0x2a2   : > { %v3842_v0 = vpop.eup %3841  ;;  %3861 = vtanh.f32 %v1777_v50  ;;  %v1781_v22 = vadd.f32 %v1780_v13, %v4992_v58  ;;  %v1869_v41 = vpop.f32.mrb[38].mxu1 }
 0x2a3   : > { %v1782_v6 = vpop.f32.mrb[39].mxu0  ;;  %v3844_v47 = vpop.eup %3843  ;;  %3863 = vtanh.f32 %v1866_v36  ;;  %v1870_v24 = vadd.f32 %v1869_v41, %v4992_v58 }
 0x2a4   : > { %v1783_v34 = vadd.f32 %v1782_v6, %v4992_v58  ;;  %v1871_v51 = vpop.f32.mrb[39].mxu1  ;;  %v3846_v27 = vpop.eup %3845  ;;  %3865 = vtanh.f32 %v1781_v22 }
 0x2a5   : > { %v1872_v17 = vadd.f32 %v1871_v51, %v4992_v58  ;;  %v3848_v63 = vpop.eup %3847  ;;  %3867 = vtanh.f32 %v1870_v24 }
 0x2a6   : > { %v3850_v21 = vpop.eup %3849  ;;  %3869 = vtanh.f32 %v1783_v34  ;;  %v1940_v5 = vpop.f32.mrb[40].mxu0  ;;  %v5017_v34 = vld [vmem:[%s5136_s5] sm:$0x1] }
 0x2a7   : > { %v2029_v49 = vpop.f32.mrb[40].mxu1  ;;  %v3852_v44 = vpop.eup %3851  ;;  %3871 = vtanh.f32 %v1872_v17  ;;  %v1941_v23 = vadd.f32 %v1940_v5, %v4974_v40  ;;  %v3472_v26 = vpack.c.bf16 %v3850_v21, %v3842_v0 }
 0x2a8   : > { %v2030_v29 = vadd.f32 %v2029_v49, %v4974_v40  ;;  %v1942_v43 = vpop.f32.mrb[41].mxu0  ;;  %v2031_v52 = vpop.f32.mrb[41].mxu1  ;;  %v3480_v14 = vpack.c.bf16 %v3852_v44, %v3844_v47 }
 0x2a9   : > { %v3854_v15 = vpop.eup %3853  ;;  %v1943_v57 = vadd.f32 %v1942_v43, %v4974_v40  ;;  %v2032_v48 = vadd.f32 %v2031_v52, %v4974_v40  ;;  %3873 = vtanh.f32 %v1941_v23 }
 0x2aa   : > { %v3856_v8 = vpop.eup %3855  ;;  %v3470_v7 = vpack.c.bf16 %v3854_v15, %v3846_v27  ;;  %3875 = vtanh.f32 %v2030_v29  ;;  %v1946_v54 = vpop.f32.mrb[42].mxu0 }
 0x2ab   : > { %v3858_v30 = vpop.eup %3857  ;;  %v2035_v9 = vpop.f32.mrb[42].mxu1  ;;  %v3478_v37 = vpack.c.bf16 %v3856_v8, %v3848_v63  ;;  %3877 = vtanh.f32 %v1943_v57  ;;  %v1947_v18 = vadd.f32 %v1946_v54, %v4980_v56 }
 0x2ac   : > { %v3860_v16 = vpop.eup %3859  ;;  %v2036_v28 = vadd.f32 %v2035_v9, %v4980_v56  ;;  %v1948_v42 = vpop.f32.mrb[43].mxu0  ;;  %3471 = vmatprep.subr.bf16.mxu0 %v3470_v7  ;;  %3879 = vtanh.f32 %v2032_v48 }
 0x2ad   : > { %v2037_v10 = vpop.f32.mrb[43].mxu1  ;;  %v3862_v60 = vpop.eup %3861  ;;  %v1949_v59 = vadd.f32 %v1948_v42, %v4980_v56  ;;  %3479 = vmatprep.subr.bf16.mxu1 %v3478_v37  ;;  %3473 = vmatpush1.bf16.msra.mxu0 %v3472_v26  ;;  %3881 = vtanh.f32 %v1947_v18 }
 0x2ae   : > { %v2038_v62 = vadd.f32 %v2037_v10, %v4980_v56  ;;  %v3864_v61 = vpop.eup %3863  ;;  %3481 = vmatpush1.bf16.msra.mxu1 %v3480_v14  ;;  %3883 = vtanh.f32 %v2036_v28  ;;  %v1952_v32 = vpop.f32.mrb[44].mxu0 }
 0x2af   : > { %v3866_v19 = vpop.eup %3865  ;;  %v2041_v2 = vpop.f32.mrb[44].mxu1  ;;  %3885 = vtanh.f32 %v1949_v59  ;;  %v1953_v38 = vadd.f32 %v1952_v32, %v4986_v25 }
 0x2b0   : > { %v3868_v53 = vpop.eup %3867  ;;  %v2042_v20 = vadd.f32 %v2041_v2, %v4986_v25  ;;  %v1954_v55 = vpop.f32.mrb[45].mxu0  ;;  %v3476_v46 = vpack.c.bf16 %v3866_v19, %v3858_v30  ;;  %3887 = vtanh.f32 %v2038_v62 }
 0x2b1   : > { %v2043_v3 = vpop.f32.mrb[45].mxu1  ;;  %v3870_v1 = vpop.eup %3869  ;;  %v1955_v39 = vadd.f32 %v1954_v55, %v4986_v25  ;;  %v3484_v12 = vpack.c.bf16 %v3868_v53, %v3860_v16  ;;  %3889 = vtanh.f32 %v1953_v38 }
 0x2b2   : > { %v2044_v11 = vadd.f32 %v2043_v3, %v4986_v25  ;;  %v3872_v4 = vpop.eup %3871  ;;  %v3474_v35 = vpack.c.bf16 %v3870_v1, %v3862_v60  ;;  %3891 = vtanh.f32 %v2042_v20  ;;  %v1958_v33 = vpop.f32.mrb[46].mxu0 }
 0x2b3   : > { %v2047_v50 = vpop.f32.mrb[46].mxu1  ;;  %v3482_v31 = vpack.c.bf16 %v3872_v4, %v3864_v61  ;;  %v3874_v36 = vpop.eup %3873  ;;  %3893 = vtanh.f32 %v1955_v39  ;;  %v1959_v13 = vadd.f32 %v1958_v33, %v4992_v58 }
 0x2b4   : > { %v2048_v0 = vadd.f32 %v2047_v50, %v4992_v58  ;;  %v1960_v22 = vpop.f32.mrb[47].mxu0  ;;  %v2049_v41 = vpop.f32.mrb[47].mxu1  ;;  %3475 = vmatprep.subr.bf16.mxu0 %v3474_v35  ;;  %3895 = vtanh.f32 %v2044_v11 }
 0x2b5   : > { %v3876_v6 = vpop.eup %3875  ;;  %v1961_v47 = vadd.f32 %v1960_v22, %v4992_v58  ;;  %v2050_v24 = vadd.f32 %v2049_v41, %v4992_v58  ;;  %3483 = vmatprep.subr.bf16.mxu1 %v3482_v31  ;;  %3477 = vmatpush1.bf16.msra.mxu0 %v3476_v46  ;;  %3897 = vtanh.f32 %v1959_v13 }
 0x2b6   : > { %v3878_v51 = vpop.eup %3877  ;;  %3485 = vmatpush1.bf16.msra.mxu1 %v3484_v12  ;;  %3899 = vtanh.f32 %v2048_v0  ;;  %v2118_v17 = vpop.f32.mrb[48].mxu0 }
 0x2b7   : > { %v3880_v27 = vpop.eup %3879  ;;  %3901 = vtanh.f32 %v1961_v47  ;;  %v2119_v21 = vadd.f32 %v2118_v17, %v4974_v40  ;;  %v2207_v5 = vpop.f32.mrb[48].mxu1 }
 0x2b8   : > { %v3882_v63 = vpop.eup %3881  ;;  %v2120_v49 = vpop.f32.mrb[49].mxu0  ;;  %3328 = vmatmul.mubr.msk.f32.vlgmr.msra.gmra.mrb[64].mxu0 %vm865_vm0, %v5017_v34  ;;  %3903 = vtanh.f32 %v2050_v24  ;;  %v2208_v23 = vadd.f32 %v2207_v5, %v4974_v40 }
 0x2b9   : > { %v3884_v44 = vpop.eup %3883  ;;  %v2121_v29 = vadd.f32 %v2120_v49, %v4974_v40  ;;  %v2209_v43 = vpop.f32.mrb[49].mxu1  ;;  %3329 = vmatmul.mubr.msk.f32.vlgmr.msra.gmra.mrb[64].mxu1 %vm865_vm0, %v5017_v34  ;;  %v3488_v52 = vpack.c.bf16 %v3882_v63, %v3874_v36  ;;  %2692 = vmatprep.mubr.f32.mxu0 %v5178_v45  ;;  %3905 = vtanh.f32 %v2119_v21 }
 0x2ba   : > { %v3886_v26 = vpop.eup %3885  ;;  %v2210_v15 = vadd.f32 %v2209_v43, %v4974_v40  ;;  %v3496_v57 = vpack.c.bf16 %v3884_v44, %v3876_v6  ;;  %2763 = vmatprep.mubr.f32.mxu1 %v5178_v45  ;;  %3907 = vtanh.f32 %v2208_v23  ;;  %v2124_v14 = vpop.f32.mrb[50].mxu0 }
 0x2bb   : > { %v3888_v48 = vpop.eup %3887  ;;  %v3486_v8 = vpack.c.bf16 %v3886_v26, %v3878_v51  ;;  %3909 = vtanh.f32 %v2121_v29  ;;  %v2125_v30 = vadd.f32 %v2124_v14, %v4980_v56  ;;  %v2213_v54 = vpop.f32.mrb[50].mxu1 }
 0x2bc   : > { %v3890_v7 = vpop.eup %3889  ;;  %v2126_v9 = vpop.f32.mrb[51].mxu0  ;;  %v3494_v37 = vpack.c.bf16 %v3888_v48, %v3880_v27  ;;  %3911 = vtanh.f32 %v2210_v15  ;;  %v2214_v18 = vadd.f32 %v2213_v54, %v4980_v56 }
 0x2bd   : > { %v3892_v16 = vpop.eup %3891  ;;  %v2127_v28 = vadd.f32 %v2126_v9, %v4980_v56  ;;  %v2215_v42 = vpop.f32.mrb[51].mxu1  ;;  %3487 = vmatprep.subr.bf16.mxu0 %v3486_v8  ;;  %3913 = vtanh.f32 %v2125_v30 }
 0x2be   : > { %v3894_v10 = vpop.eup %3893  ;;  %v2216_v60 = vadd.f32 %v2215_v42, %v4980_v56  ;;  %3495 = vmatprep.subr.bf16.mxu1 %v3494_v37  ;;  %3489 = vmatpush1.bf16.msra.mxu0 %v3488_v52  ;;  %3915 = vtanh.f32 %v2214_v18  ;;  %v2130_v62 = vpop.f32.mrb[52].mxu0 }
 0x2bf   : > { %v3896_v59 = vpop.eup %3895  ;;  %3497 = vmatpush1.bf16.msra.mxu1 %v3496_v57  ;;  %3917 = vtanh.f32 %v2127_v28  ;;  %v2131_v19 = vadd.f32 %v2130_v62, %v4986_v25  ;;  %v2219_v32 = vpop.f32.mrb[52].mxu1 }
 0x2c0   : > { %v3898_v61 = vpop.eup %3897  ;;  %v2132_v2 = vpop.f32.mrb[53].mxu0  ;;  %3919 = vtanh.f32 %v2216_v60  ;;  %v2220_v38 = vadd.f32 %v2219_v32, %v4986_v25 }
 0x2c1   : > { %v3900_v53 = vpop.eup %3899  ;;  %v2133_v20 = vadd.f32 %v2132_v2, %v4986_v25  ;;  %v2221_v55 = vpop.f32.mrb[53].mxu1  ;;  %v3492_v3 = vpack.c.bf16 %v3898_v61, %v3890_v7  ;;  %3921 = vtanh.f32 %v2131_v19 }
 0x2c2   : > { %v3902_v46 = vpop.eup %3901  ;;  %v2222_v1 = vadd.f32 %v2221_v55, %v4986_v25  ;;  %v3500_v39 = vpack.c.bf16 %v3900_v53, %v3892_v16  ;;  %3923 = vtanh.f32 %v2220_v38  ;;  %v2136_v12 = vpop.f32.mrb[54].mxu0 }
 0x2c3   : > { %v3904_v11 = vpop.eup %3903  ;;  %v3490_v4 = vpack.c.bf16 %v3902_v46, %v3894_v10  ;;  %3925 = vtanh.f32 %v2133_v20  ;;  %v2137_v33 = vadd.f32 %v2136_v12, %v4992_v58  ;;  %v2225_v50 = vpop.f32.mrb[54].mxu1 }
 0x2c4   : > { %v3906_v35 = vpop.eup %3905  ;;  %v2138_v31 = vpop.f32.mrb[55].mxu0  ;;  %v3498_v36 = vpack.c.bf16 %v3904_v11, %v3896_v59  ;;  %3927 = vtanh.f32 %v2222_v1  ;;  %v2226_v0 = vadd.f32 %v2225_v50, %v4992_v58 }
 0x2c5   : > { %v3908_v13 = vpop.eup %3907  ;;  %v2139_v22 = vadd.f32 %v2138_v31, %v4992_v58  ;;  %v2227_v41 = vpop.f32.mrb[55].mxu1  ;;  %3491 = vmatprep.subr.bf16.mxu0 %v3490_v4  ;;  %3929 = vtanh.f32 %v2137_v33 }
 0x2c6   : > { %v3910_v6 = vpop.eup %3909  ;;  %v2228_v47 = vadd.f32 %v2227_v41, %v4992_v58  ;;  %3499 = vmatprep.subr.bf16.mxu1 %v3498_v36  ;;  %3493 = vmatpush1.bf16.msra.mxu0 %v3492_v3  ;;  %3931 = vtanh.f32 %v2226_v0 }
 0x2c7   : > { %v3912_v24 = vpop.eup %3911  ;;  %3501 = vmatpush1.bf16.msra.mxu1 %v3500_v39  ;;  %3933 = vtanh.f32 %v2139_v22 }
 0x2c8   : > { %v3914_v51 = vpop.eup %3913  ;;  %3935 = vtanh.f32 %v2228_v47 }
 0x2c9   : > { %v3916_v27 = vpop.eup %3915  ;;  %3330 = vmatmul.mubr.msk.f32.vlgmr.msra.gmra.mrb[66].mxu0 %vm865_vm0, %v5017_v34  ;;  %v3504_v17 = vpack.c.bf16 %v3914_v51, %v3906_v35  ;;  %v2296_v23 = vpop.f32.mrb[56].mxu0 }
 0x2ca   : > { %v3918_v63 = vpop.eup %3917  ;;  %3331 = vmatmul.mubr.msk.f32.vlgmr.msra.gmra.mrb[66].mxu1 %vm865_vm0, %v5017_v34  ;;  %v3512_v21 = vpack.c.bf16 %v3916_v27, %v3908_v13  ;;  %2834 = vmatprep.mubr.f32.mxu0 %v5178_v45  ;;  %v2297_v52 = vadd.f32 %v2296_v23, %v4974_v40  ;;  %v2298_v26 = vpop.f32.mrb[57].mxu0 }
 0x2cb   : > { %v3920_v5 = vpop.eup %3919  ;;  %v3502_v49 = vpack.c.bf16 %v3918_v63, %v3910_v6  ;;  %2905 = vmatprep.mubr.f32.mxu1 %v5178_v45  ;;  %v2385_v57 = vpop.f32.mrb[56].mxu1  ;;  %v2299_v48 = vadd.f32 %v2298_v26, %v4974_v40 }
 0x2cc   : > { %v3922_v44 = vpop.eup %3921  ;;  %v3510_v29 = vpack.c.bf16 %v3920_v5, %v3912_v24  ;;  %3937 = vtanh.f32 %v2297_v52  ;;  %v2386_v8 = vadd.f32 %v2385_v57, %v4974_v40  ;;  %v2387_v7 = vpop.f32.mrb[57].mxu1 }
 0x2cd   : > { %v3924_v43 = vpop.eup %3923  ;;  %3503 = vmatprep.subr.bf16.mxu0 %v3502_v49  ;;  %3939 = vtanh.f32 %v2299_v48  ;;  %v2388_v54 = vadd.f32 %v2387_v7, %v4974_v40  ;;  %v2302_v9 = vpop.f32.mrb[58].mxu0 }
 0x2ce   : > { %v3926_v15 = vpop.eup %3925  ;;  %3511 = vmatprep.subr.bf16.mxu1 %v3510_v29  ;;  %3505 = vmatpush1.bf16.msra.mxu0 %v3504_v17  ;;  %3941 = vtanh.f32 %v2386_v8  ;;  %v2303_v16 = vadd.f32 %v2302_v9, %v4980_v56  ;;  %v2304_v18 = vpop.f32.mrb[59].mxu0  ;;  %v5187_v8 = vld [vmem:[#allocation7_spill] sm:$0xff] }
 0x2cf   : > { %v3928_v14 = vpop.eup %3927  ;;  %3513 = vmatpush1.bf16.msra.mxu1 %v3512_v21  ;;  %3943 = vtanh.f32 %v2388_v54  ;;  %v2391_v10 = vpop.f32.mrb[58].mxu1  ;;  %v2305_v60 = vadd.f32 %v2304_v18, %v4980_v56 }
 0x2d0   : > { %v3930_v30 = vpop.eup %3929  ;;  %3945 = vtanh.f32 %v2303_v16  ;;  %v2392_v61 = vadd.f32 %v2391_v10, %v4980_v56  ;;  %v2393_v19 = vpop.f32.mrb[59].mxu1 }
 0x2d1   : > { %v3932_v37 = vpop.eup %3931  ;;  %v3508_v28 = vpack.c.bf16 %v3930_v30, %v3922_v44  ;;  %3947 = vtanh.f32 %v2305_v60  ;;  %v2394_v40 = vadd.f32 %v2393_v19, %v4980_v56  ;;  %v2308_v2 = vpop.f32.mrb[60].mxu0 }
 0x2d2   : > { %v3934_v42 = vpop.eup %3933  ;;  %v3516_v59 = vpack.c.bf16 %v3932_v37, %v3924_v43  ;;  %3949 = vtanh.f32 %v2392_v61  ;;  %v2309_v38 = vadd.f32 %v2308_v2, %v4986_v25  ;;  %v2310_v20 = vpop.f32.mrb[61].mxu0 }
 0x2d3   : > { %v3936_v62 = vpop.eup %3935  ;;  %v3506_v32 = vpack.c.bf16 %v3934_v42, %v3926_v15  ;;  %3951 = vtanh.f32 %v2394_v40  ;;  %v2397_v55 = vpop.f32.mrb[60].mxu1  ;;  %v2311_v3 = vadd.f32 %v2310_v20, %v4986_v25  ;;  %v4036_v15 = vmov 1966171168  }
 0x2d4   : > { %v3514_v53 = vpack.c.bf16 %v3936_v62, %v3928_v14  ;;  %3953 = vtanh.f32 %v2309_v38  ;;  %v2398_v46 = vadd.f32 %v2397_v55, %v4986_v25  ;;  %v2399_v1 = vpop.f32.mrb[61].mxu1  ;;  %v3075_v57 = vunpack.c.l.s4 %v4036_v15  ;;  %v2477_v48 = vpop.permute.xlu0 %2476 }
 0x2d5   : > { %3507 = vmatprep.subr.bf16.mxu0 %v3506_v32  ;;  %3955 = vtanh.f32 %v2311_v3  ;;  %v2400_v56 = vadd.f32 %v2399_v1, %v4986_v25  ;;  %v2314_v39 = vpop.f32.mrb[62].mxu0  ;;  %v2482_v7 = vrot.slane %v2477_v48, %v5187_v8 }
 0x2d6   : > { %3515 = vmatprep.subr.bf16.mxu1 %v3514_v53  ;;  %3509 = vmatpush1.bf16.msra.mxu0 %v3508_v28  ;;  %v3938_v11 = vpop.eup %3937  ;;  %3957 = vtanh.f32 %v2398_v46  ;;  %v2315_v12 = vadd.f32 %v2314_v39, %v4992_v58  ;;  %v2316_v4 = vpop.f32.mrb[63].mxu0  ;;  %v3076_v14 = vunpack.c.0.s8 %v3075_v57  ;;  %v5188_v28 = vld [vmem:[#allocation6_spill] sm:$0xff] }
 0x2d7   : > { %3517 = vmatpush1.bf16.msra.mxu1 %v3516_v59  ;;  %v3940_v35 = vpop.eup %3939  ;;  %3959 = vtanh.f32 %v2400_v56  ;;  %v2403_v33 = vpop.f32.mrb[62].mxu1  ;;  %v2317_v50 = vadd.f32 %v2316_v4, %v4992_v58 }
 0x2d8   : > { %v3942_v25 = vpop.eup %3941  ;;  %3961 = vtanh.f32 %v2315_v12  ;;  %v2404_v31 = vadd.f32 %v2403_v33, %v4992_v58  ;;  %v2405_v36 = vpop.f32.mrb[63].mxu1  ;;  %v3079_v42 = vsub.s32 %v3076_v14, %v5188_v28 }
 0x2d9   : > { %3332 = vmatmul.mubr.msk.f32.vlgmr.msra.gmra.mrb[68].mxu0 %vm865_vm0, %v5017_v34  ;;  %v3944_v13 = vpop.eup %3943  ;;  %3963 = vtanh.f32 %v2317_v50  ;;  %v2406_v0 = vadd.f32 %v2405_v36, %v4992_v58 }
 0x2da   : > { %3333 = vmatmul.mubr.msk.f32.vlgmr.msra.gmra.mrb[68].mxu1 %vm865_vm0, %v5017_v34  ;;  %2976 = vmatprep.mubr.f32.mxu0 %v5178_v45  ;;  %v3946_v22 = vpop.eup %3945  ;;  %3965 = vtanh.f32 %v2404_v31 }
 0x2db   : > { %3047 = vmatprep.mubr.f32.mxu1 %v5178_v45  ;;  %v3948_v41 = vpop.eup %3947  ;;  %3967 = vtanh.f32 %v2406_v0  ;;  %v3520_v6 = vpack.c.bf16 %v3946_v22, %v3938_v11 }
 0x2dc   : > { %v3950_v47 = vpop.eup %3949  ;;  %v3518_v24 = vpack.c.bf16 %v3948_v41, %v3940_v35 }
 0x2dd   : > { %v3952_v51 = vpop.eup %3951  ;;  %v3528_v27 = vpack.c.bf16 %v3950_v47, %v3942_v25 }
 0x2de   : > { %v3954_v17 = vpop.eup %3953  ;;  %3519 = vmatprep.subr.bf16.mxu0 %v3518_v24  ;;  %v3526_v63 = vpack.c.bf16 %v3952_v51, %v3944_v13 }
 0x2df   : > { %v3956_v21 = vpop.eup %3955  ;;  %3521 = vmatpush1.bf16.msra.mxu0 %v3520_v6 }
 0x2e0   : > { %v3958_v5 = vpop.eup %3957  ;;  %3527 = vmatprep.subr.bf16.mxu1 %v3526_v63 }
 0x2e1   : > { %v3960_v45 = vpop.eup %3959  ;;  %3529 = vmatpush1.bf16.msra.mxu1 %v3528_v27 }
 0x2e2   : > { %v3962_v49 = vpop.eup %3961 }
 0x2e3   : > { %v3964_v58 = vpop.eup %3963  ;;  %v3524_v44 = vpack.c.bf16 %v3962_v49, %v3954_v17 }
 0x2e4   : > { %v3966_v23 = vpop.eup %3965  ;;  %v3522_v29 = vpack.c.bf16 %v3964_v58, %v3956_v21 }
 0x2e5   : > { %v3968_v43 = vpop.eup %3967  ;;  %v3532_v52 = vpack.c.bf16 %v3966_v23, %v3958_v5 }
 0x2e6   : > { %3523 = vmatprep.subr.bf16.mxu0 %v3522_v29  ;;  %v3530_v26 = vpack.c.bf16 %v3968_v43, %v3960_v45 }
 0x2e7   : > { %3525 = vmatpush1.bf16.msra.mxu0 %v3524_v44 }
 0x2e8   : > { %3531 = vmatprep.subr.bf16.mxu1 %v3530_v26 }
 0x2e9   : > { %3533 = vmatpush1.bf16.msra.mxu1 %v3532_v52 }
 0x2ea   : > { %3334 = vmatmul.mubr.msk.f32.vlgmr.msra.gmra.mrb[70].mxu0 %vm865_vm0, %v5017_v34 }
 0x2ec   : > { %3335 = vmatmul.mubr.msk.f32.vlgmr.msra.gmra.mrb[70].mxu1 %vm865_vm0, %v5017_v34 }
 0x38b   : > { %v2552_v30 = vpop.f32.mrb[64].mxu0 }
 0x38c   : > { %v2553_v54 = vadd.f32 %v2552_v30, %v2482_v7  ;;  %v2623_v9 = vpop.f32.mrb[64].mxu1  ;;  %v2554_v37 = vpop.f32.mrb[65].mxu0 }
 0x38d   : > { %v2624_v16 = vadd.f32 %v2623_v9, %v2482_v7  ;;  %v2555_v18 = vadd.f32 %v2554_v37, %v2482_v7  ;;  %v2625_v10 = vpop.f32.mrb[65].mxu1 }
 0x38e   : > { %v2626_v60 = vadd.f32 %v2625_v10, %v2482_v7 }
 0x38f   : > { %v3070_v59 = vcombine.low %v2553_v54, %v2555_v18 }
 0x390   : > { %v3071_v62 = vcombine.low %v2624_v16, %v2626_v60 }
 0x391   : > { %v3080_v34 = vrot.slane %v3070_v59, %v3079_v42 }
 0x392   : > { %v3087_v61 = vrot.slane %v3071_v62, %v3079_v42 }
 0x394   : > { %v3102_v19 = vcombine.low %v3080_v34, %v3087_v61 }
 0x396   : > { %v3110_v12 = vrot.slane %v3102_v19, %v3079_v42 }
 0x39c   : > { %v2694_v32 = vpop.f32.mrb[66].mxu0 }
 0x39d   : > { %v2695_v40 = vadd.f32 %v2694_v32, %v2482_v7  ;;  %v2765_v2 = vpop.f32.mrb[66].mxu1  ;;  %v2696_v53 = vpop.f32.mrb[67].mxu0 }
 0x39e   : > { %v2766_v38 = vadd.f32 %v2765_v2, %v2482_v7  ;;  %v2697_v20 = vadd.f32 %v2696_v53, %v2482_v7  ;;  %v2767_v55 = vpop.f32.mrb[67].mxu1 }
 0x39f   : > { %v2768_v3 = vadd.f32 %v2767_v55, %v2482_v7 }
 0x3a0   : > { %v3072_v46 = vcombine.low %v2695_v40, %v2697_v20 }
 0x3a1   : > { %v3073_v1 = vcombine.low %v2766_v38, %v2768_v3 }
 0x3a2   : > { %v3094_v56 = vrot.slane %v3072_v46, %v3079_v42 }
 0x3a3   : > { %v3101_v39 = vrot.slane %v3073_v1, %v3079_v42 }
 0x3a5   : > { %v3103_v11 = vcombine.low %v3094_v56, %v3101_v39 }
 0x3a7   : > { %v3117_v4 = vrot.slane %v3103_v11, %v3079_v42 }
 0x3a9   : > { %v3118_v35 = vcombine.low %v3110_v12, %v3117_v4 }
 0x3ab   : > { %3170 = vst [vmem:[%s5078_s30] sm:$0xff] %v3118_v35 }
 0x3ac   : > { %v2836_v33 = vpop.f32.mrb[68].mxu0 }
 0x3ad   : > { %v2837_v50 = vadd.f32 %v2836_v33, %v2482_v7  ;;  %v2907_v25 = vpop.f32.mrb[68].mxu1  ;;  %v2838_v31 = vpop.f32.mrb[69].mxu0 }
 0x3ae   : > { %v2908_v36 = vadd.f32 %v2907_v25, %v2482_v7  ;;  %v2839_v13 = vadd.f32 %v2838_v31, %v2482_v7  ;;  %v2909_v0 = vpop.f32.mrb[69].mxu1 }
 0x3af   : > { %v2910_v22 = vadd.f32 %v2909_v0, %v2482_v7 }
 0x3b0   : > { %v3119_v41 = vcombine.low %v2837_v50, %v2839_v13 }
 0x3b1   : > { %v3120_v6 = vcombine.low %v2908_v36, %v2910_v22 }
 0x3b2   : > { %v3129_v47 = vrot.slane %v3119_v41, %v3079_v42 }
 0x3b3   : > { %v3136_v24 = vrot.slane %v3120_v6, %v3079_v42 }
 0x3b5   : > { %v3151_v51 = vcombine.low %v3129_v47, %v3136_v24 }
 0x3b7   : > { %v3159_v26 = vrot.slane %v3151_v51, %v3079_v42 }
 0x3bd   : > { %v2978_v27 = vpop.f32.mrb[70].mxu0 }
 0x3be   : > { %v2979_v17 = vadd.f32 %v2978_v27, %v2482_v7  ;;  %v2980_v63 = vpop.f32.mrb[71].mxu0 }
 0x3bf   : > { %v3049_v21 = vpop.f32.mrb[70].mxu1  ;;  %v2981_v5 = vadd.f32 %v2980_v63, %v2482_v7 }
 0x3c0   : > { %v3050_v45 = vadd.f32 %v3049_v21, %v2482_v7  ;;  %v3051_v49 = vpop.f32.mrb[71].mxu1 }
 0x3c1   : > { %v3121_v58 = vcombine.low %v2979_v17, %v2981_v5  ;;  %v3052_v44 = vadd.f32 %v3051_v49, %v2482_v7 }
 0x3c3   : > { %v3143_v23 = vrot.slane %v3121_v58, %v3079_v42  ;;  %v3122_v29 = vcombine.low %v3050_v45, %v3052_v44 }
 0x3c5   : > { %v3150_v43 = vrot.slane %v3122_v29, %v3079_v42 }
 0x3c7   : > { %v3152_v52 = vcombine.low %v3143_v23, %v3150_v43 }
 0x3c9   : > { %v3166_v15 = vrot.slane %v3152_v52, %v3079_v42 }
 0x3cb   : > { %v3167_v57 = vcombine.low %v3159_v26, %v3166_v15 }
 0x3cd   : > { %3171 = vst [vmem:[%s5078_s30 + $0x8] sm:$0xff] %v3167_v57 }
 0x3ce   : > { %3982 = shalt.err (!%p3979_p3)
}
 0x3cf   : > { %s3983_s21 = scalar_lea.hbm %s5086_s16, 256  ;;  %s3987_s24 = scalar_lea.hbm %s5138_s7, 512 }
 0x3d0   : > { %p3984_p4 = scmp.ne.s32.totalorder %s5086_s16, %s3983_s21  ;;  %p3988_p9 = scmp.lt.u32.totalorder %s5086_s16, %s5138_s7 }
 0x3d1   : > { %p3989_p10 = scmp.lt.u32.totalorder %s3987_s24, %s3983_s21  ;;  %p3991_p12 = scmp.lt.u32.totalorder %s3983_s21, %s5086_s16 }
 0x3d2   : > { %p3985_p7 = pnand %p3984_p4, %p4119_p5 }
 0x3d3   : > { %p3990_p11 = por %p3989_p10, %p3988_p9 }
 0x3d4   : > { %p3986_p8 = pneg %p3985_p7 }
 0x3d5   : > { %p3992_p13 = por %p3991_p12, %p3990_p11 }
 0x3d7   : > { %p3993_p0 = pnand %p3992_p13, %p3986_p8 }
 0x3d9   : > { %3996 = shalt.err (!%p3993_p0)
}
 0x3da   : > { %3534 = dma.vmem_to_hbm [thread:$0]  (%p4119_p5), %s5088_s10, 256, %s5086_s16, %s3173_s17  }
 0x3db PF: > { %p3540_p1 = scmp.ge.s32.totalorder %s4031_s29, 2  ;;  %s3199_s9 = sand.u32 1, %s4019_s26  }
 0x3dc   : > { %s3200_s14 = scalar_lea.sflag [#allocation4], %s3199_s9 }
 0x3dd   : > { %p3537_p2 = pnand %p3540_p1, %p4123_p6 }
 0x3df   : > { %4014 = dma.done.wait (!%p3537_p2), %s3200_s14, 256  }
 0x3e0   : > { %4016 = vsyncadd (!%p3537_p2), %s3200_s14, 4294967040  ;;  %p19_p3 = scmp.ge.s32.totalorder %s4106_s8, 4   ;;  %s5189_s26 = smov %s4023_s27 }
 0x3e1   : > { %s5190_s27 = smov %s4027_s28  ;;  %s5191_s28 = smov %s4117_s11 }
 0x3e2   : > { %s5192_s29 = smov %s4106_s8  ;;  %21 = sbr.rel (!%p19_p3) target bundleno = 6 (0x6), region = 88 }
 0x3e9   :  { %3205 = vsyncpa [#allocation4], 1 }
 0x3ea   :  { %3207 = vsyncpa [#allocation4 + $0x1], 1 }

// kernel: tpu_custom_call.1
= control target key start
LH: loop header
LB: loop body
LE: loop exit
PB: predicated region body
PF: predicated region fallthrough
CT: control target
= control target key end

     0   :  { %s5131_s0 = inlined_call_operand.vmem [shape: f32[2,4096], index: 0, kind: input, shape index: {}]   ;;  %s5132_s1 = inlined_call_operand.vmem [shape: f32[32,2], index: 1, kind: input, shape index: {}]   ;;  %s5133_s2 = inlined_call_operand.vmem [shape: f32[32,1], index: 2, kind: input, shape index: {}]   ;;  %s5134_s3 = inlined_call_operand.vmem [shape: f32[2,32,32], index: 3, kind: input, shape index: {}]   ;;  %s5135_s4 = inlined_call_operand.vmem [shape: f32[2,32,1], index: 4, kind: input, shape index: {}]   ;;  %s5136_s5 = inlined_call_operand.vmem [shape: f32[1,32], index: 5, kind: input, shape index: {}]   ;;  %s5137_s6 = inlined_call_operand.<no memory space> [shape: f32[1,1], index: 6, kind: input, shape index: {}]   ;;  %s5138_s7 = inlined_call_operand.hbm [shape: f32[1,4096], index: 7, kind: output, shape index: {}]  }
   0x1   :  { %v12_v0 = vstv %s5137_s6 }
   0x2   :  { %13 = vst [vmem:[#allocation2] sm:$0x1] %v12_v0 }
   0x3   :  { %14 = vsyncpa [#allocation4], 0 }
   0x4   :  { %16 = vsyncpa [#allocation4 + $0x1], 0  ;;  %s4081_s26 = smov 0   ;;  %s4083_s27 = smov 0  }
   0x5   :  { %s4085_s28 = smov 0   ;;  %s4087_s29 = smov 0  }
   0x6 LB: > { %s4102_s6 = sadd.s32 4294967295, %s4031_s29   ;;  %s3246_s30 = sadd.s32 4294967294, %s4031_s29   ;;  %s4031_s29 = sphi %s4087_s29, %s5192_s29   ;;  %s4027_s28 = sphi %s4085_s28, %s5191_s28   ;;  %s4023_s27 = sphi %s4083_s27, %s5190_s27   ;;  %s4019_s26 = sphi %s4081_s26, %s5189_s26  }
   0x7   : > { %s4106_s8 = sadd.s32 1, %s4031_s29   ;;  %s181_s9 = sadd.s32 1, %s4027_s28 }
   0x8   : > { %s178_s10 = ssub.s32 %s4031_s29, %s4106_s8  ;;  %p191_p0 = scmp.ne.s32.totalorder %s4027_s28, %s4023_s27 }
   0x9   : > { %p179_p1 = scmp.eq.s32.totalorder %s178_s10, 0  ;;  %p192_p2 = scmp.eq.s32.totalorder %s4102_s6, 1 }
   0xa   : > { %p197_p3 = scmp.ne.s32.totalorder %s4023_s27, %s4019_s26  ;;  %p198_p4 = scmp.eq.s32.totalorder %s3246_s30, 1 }
   0xb   : > { %s4117_s11 = scalar_select %p179_p1, %s4027_s28, %s181_s9  }
   0xc   : > { %p4119_p5 = por %p192_p2, %p191_p0  ;;  %p4123_p6 = por %p198_p4, %p197_p3 }
   0xd   : > { %p3249_p7 = scmp.ge.s32.totalorder %s4031_s29, 1  ;;  %p243_p8 = scmp.lt.s32.totalorder %s4031_s29, 3 }
   0xf   : > { %p244_p9 = pnand %p3249_p7, %p243_p8 }
  0x11   : > { %247 = sbr.rel (%p244_p9) target bundleno = 987 (0x3db), region = 48 }
  0x18   : > { %v286_v1 = vld [vmem:[%s5132_s1] sm:$0xff]  ;;  %v4033_v3 = vmov 0   ;;  %v287_v4 = vld [vmem:[%s5132_s1 + $0x8] sm:$0xff]  ;;  %v289_v6 = vld [vmem:[%s5132_s1 + $0x18] sm:$0xff]  ;;  %v4034_v7 = vmov 1   ;;  %v5139_v11 = vmov 0.0   ;;  %v315_v12 = vlaneseq }
  0x19   : > { %v282_v2 = vld [vmem:[%s5133_s2] sm:$0xff]  ;;  %3578 = vset.pattern.permute.xlu1 %v4033_v3  ;;  %3577 = vset.pattern.permute.xlu0 %v4033_v3  ;;  %v283_v5 = vld [vmem:[%s5133_s2 + $0x8] sm:$0xff]  ;;  %v288_v8 = vld [vmem:[%s5132_s1 + $0x10] sm:$0xff]  ;;  %s3251_s15 = sshll.u32 %s4102_s6, 4  ;;  %vm865_vm0 = vcmask 261120   ;;  %s272_s24 = sand.u32 1, %s4023_s27  }
  0x1a   : > { %295 = vperm.xlu0 %3577, %v286_v1   ;;  %461 = vperm.xlu1 %3578, %v282_v2   ;;  %v284_v9 = vld [vmem:[%s5133_s2 + $0x10] sm:$0xff]  ;;  %v285_v10 = vld [vmem:[%s5133_s2 + $0x18] sm:$0xff]  ;;  %p276_p10 = scmp.lt.s32.totalorder %s3251_s15, 31  ;;  %v4156_v13 = vshrl.u32 %v315_v12, 7  ;;  %v841_v26 = vld [vmem:[%s5135_s4] sm:$0xff]  ;;  %s3250_s25 = sshll.u32 %s272_s24, 4 }
  0x1b   : > { %942 = vmatprep.mubr.f32.mxu0 %v5139_v11  ;;  %1031 = vmatprep.mubr.f32.mxu1 %v5139_v11  ;;  %v842_v27 = vld [vmem:[%s5135_s4 + $0x8] sm:$0xff]  ;;  %v843_v36 = vld [vmem:[%s5135_s4 + $0x10] sm:$0xff]  ;;  %v3292_v37 = vld [vmem:[%s5135_s4 + $0x20] sm:$0xff]  ;;  %s5078_s30 = scalar_lea.vmem [#allocation3], %s3250_s25  ;;  %s3341_s9 = sshll.u32 %s4102_s6, 8 }
  0x1c   : > { %s5194_s15 = smov (!%p276_p10, %s3251_s15), 31  ;;  %5158 = vst [vmem:[#allocation6_spill] sm:$0xff] %v4156_v13  ;;  %v321_v14 = vsub.s32 1, %v4156_v13  ;;  %v329_v15 = vsub.s32 3, %v4156_v13  ;;  %v4167_v17 = vsub.s32 0, %v4156_v13  ;;  %v325_v18 = vsub.s32 2, %v4156_v13 }
  0x1d   : > { %s3252_s16 = sshll.u32 %s5194_s15, 1  ;;  %v337_v20 = vsub.s32 5, %v4156_v13  ;;  %v345_v21 = vsub.s32 7, %v4156_v13  ;;  %v333_v22 = vsub.s32 4, %v4156_v13  ;;  %v341_v25 = vsub.s32 6, %v4156_v13  ;;  %v844_v54 = vld [vmem:[%s5135_s4 + $0x18] sm:$0xff] }
  0x1e   : > { %300 = vperm.xlu0 %3577, %v287_v4   ;;  %466 = vperm.xlu1 %3578, %v283_v5   ;;  %s4161_s19 = scalar_lea.vmem %s5131_s0, %s3252_s16  ;;  %5159 = vst [vmem:[#allocation7_spill] sm:$0xff] %v4167_v17  ;;  %v3294_v59 = vld [vmem:[%s5135_s4 + $0x30] sm:$0xff]  ;;  %s3187_s10 = sshll.u32 %s5078_s30, 4  ;;  %s5088_s10 = int_to_ptr.vmem [resolvable:$true] %s3187_s10 }
  0x1f   : > { %v290_v16 = vld [vmem:[%s4161_s19] ss:$2 sm:$0xff]  ;;  %v3254_v19 = vld [vmem:[%s4161_s19 + $0x1] ss:$2 sm:$0xff]  ;;  %v3253_v31 = vld [vmem:[%s4161_s19 + $0x10] ss:$2 sm:$0xff]  ;;  %s5086_s16 = scalar_lea.hbm %s5138_s7, %s3341_s9 }
  0x20   : > { %v4174_v23 = vrot.slane %v290_v16, %v321_v14  ;;  %v4176_v24 = vrot.slane %v290_v16, %v329_v15  ;;  %v4185_v28 = vrot.slane %v3254_v19, %v321_v14  ;;  %v4188_v29 = vrot.slane %v290_v16, %v4167_v17  ;;  %v3255_v42 = vld [vmem:[%s4161_s19 + $0x11] ss:$2 sm:$0xff]  ;;  %s3173_s17 = scalar_lea.sflag [#allocation4], %s272_s24  ;;  %s3969_s18 = scalar_lea.vmem %s5088_s10, 256 }
  0x21   : > { %v4190_v30 = vrot.slane %v290_v16, %v325_v18  ;;  %v4193_v32 = vrot.slane %v3254_v19, %v329_v15  ;;  %v4196_v33 = vrot.slane %v3254_v19, %v4167_v17  ;;  %v4198_v34 = vrot.slane %v290_v16, %v337_v20  ;;  %p3970_p11 = scmp.ne.s32.totalorder %s5088_s10, %s3969_s18  ;;  %s4037_s6 = smov [#allocation3]  }
  0x22   : > { %310 = vperm.xlu0 %3577, %v289_v6   ;;  %3579 = vset.pattern.permute.xlu1 %v4034_v7  ;;  %v4200_v35 = vrot.slane %v290_v16, %v345_v21  ;;  %v4208_v38 = vrot.slane %v3254_v19, %v325_v18  ;;  %v4210_v39 = vrot.slane %v3254_v19, %v337_v20  ;;  %s3973_s19 = sshll.u32 %s4037_s6, 4  ;;  %s3974_s19 = int_to_ptr.vmem [resolvable:$false] %s3973_s19 }
  0x23   : > { %552 = vperm.xlu1 %3579, %v287_v4   ;;  %v4212_v40 = vrot.slane %v3254_v19, %v345_v21  ;;  %v4214_v41 = vrot.slane %v290_v16, %v333_v22  ;;  %v4217_v43 = vrot.slane %v3254_v19, %v333_v22  ;;  %v4219_v44 = vrot.slane %v290_v16, %v341_v25  ;;  %p3971_p12 = pnand %p3970_p11, %p4119_p5  ;;  %s3975_s20 = scalar_lea.vmem %s3974_s19, 512 }
  0x24   : > { %v4221_v45 = vrot.slane %v3254_v19, %v341_v25  ;;  %v4223_v46 = vrot.slane %v3253_v31, %v321_v14  ;;  %v4225_v47 = vrot.slane %v3253_v31, %v329_v15  ;;  %v4228_v48 = vrot.slane %v3253_v31, %v4167_v17  ;;  %p3976_p0 = scmp.lt.s32.totalorder %s5088_s10, %s3974_s19  ;;  %p3977_p1 = scmp.lt.s32.totalorder %s3975_s20, %s3969_s18 }
  0x25   : > { %v4230_v49 = vrot.slane %v3253_v31, %v325_v18  ;;  %v4232_v50 = vrot.slane %v3255_v42, %v321_v14  ;;  %v4234_v51 = vrot.slane %v3255_v42, %v329_v15  ;;  %v4237_v52 = vrot.slane %v3255_v42, %v4167_v17  ;;  %p3972_p13 = pneg %p3971_p12 }
  0x26   : > { %3581 = vset.pattern.permute.xlu0 %v4034_v7  ;;  %5160 = vst [vmem:[#allocation8_spill] sm:$0xff] %v4228_v48  ;;  %v4239_v53 = vrot.slane %v3253_v31, %v337_v20  ;;  %v4244_v55 = vrot.slane %v3255_v42, %v325_v18  ;;  %v4246_v56 = vrot.slane %v3253_v31, %v345_v21  ;;  %v2473_v18 = vld [vmem:[#allocation2] sm:$0x1]  ;;  %p3978_p2 = por %p3977_p1, %p3976_p0 }
  0x27   : > { %548 = vperm.xlu0 %3581, %v286_v1   ;;  %3580 = vset.pattern.permute.xlu1 %v4033_v3  ;;  %5161 = vst [vmem:[#allocation9_spill] sm:$0xff] %v4230_v49  ;;  %5162 = vst [vmem:[#allocation10_spill] sm:$0xff] %v4234_v51  ;;  %v4248_v57 = vrot.slane %v3253_v31, %v333_v22  ;;  %v4250_v58 = vrot.slane %v3253_v31, %v341_v25 }
  0x28   : > { %305 = vperm.xlu1 %3580, %v288_v8   ;;  %5163 = vst [vmem:[#allocation11_spill] sm:$0xff] %v4237_v52  ;;  %5164 = vst [vmem:[#allocation12_spill] sm:$0xff] %v4239_v53  ;;  %v4259_v62 = vrot.slane %v3255_v42, %v337_v20  ;;  %v4261_v63 = vrot.slane %v3255_v42, %v345_v21  ;;  %v4263_v0 = vrot.slane %v3255_v42, %v333_v22  ;;  %p3979_p3 = pnand %p3978_p2, %p3972_p13 }
  0x29   : > { %5165 = vst [vmem:[#allocation13_spill] sm:$0xff] %v4244_v55  ;;  %5166 = vst [vmem:[#allocation14_spill] sm:$0xff] %v4246_v56  ;;  %v4265_v1 = vrot.slane %v3255_v42, %v341_v25 }
  0x2a   : > { %5167 = vst [vmem:[#allocation15_spill] sm:$0xff] %v4248_v57  ;;  %5168 = vst [vmem:[#allocation16_spill] sm:$0xff] %v4250_v58 }
  0x2b   : > { %556 = vperm.xlu0 %3581, %v288_v8   ;;  %5169 = vst [vmem:[#allocation17_spill] sm:$0xff] %v4259_v62  ;;  %5170 = vst [vmem:[#allocation18_spill] sm:$0xff] %v4261_v63 }
  0x2c   : > { %471 = vperm.xlu1 %3580, %v284_v9   ;;  %5171 = vst [vmem:[#allocation19_spill] sm:$0xff] %v4263_v0  ;;  %5172 = vst [vmem:[#allocation20_spill] sm:$0xff] %v4265_v1 }
  0x2f   : > { %3584 = vset.pattern.permute.xlu0 %v4033_v3 }
  0x30   : > { %476 = vperm.xlu1 %3580, %v285_v10   ;;  %852 = vperm.xlu0 %3584, %v842_v27   ;;  %v3293_v10 = vld [vmem:[%s5135_s4 + $0x28] sm:$0xff] }
  0x34   : > { %3582 = vset.pattern.permute.xlu1 %v4034_v7  ;;  %1666 = vperm.xlu0 %3584, %v3292_v37  }
  0x35   : > { %560 = vperm.xlu1 %3582, %v289_v6  }
  0x38   : > { %1676 = vperm.xlu0 %3584, %v3294_v59  }
  0x39   : > { %3583 = vset.pattern.permute.xlu1 %v4033_v3 }
  0x3a   : > { %847 = vperm.xlu1 %3583, %v841_v26  }
  0x3c   : > { %2476 = vperm.xlu0 %3584, %v2473_v18  }
  0x3e   : > { %857 = vperm.xlu1 %3583, %v843_v36  }
  0x42   : > { %862 = vperm.xlu1 %3583, %v844_v54  }
  0x46   : > { %1671 = vperm.xlu1 %3583, %v3293_v10  }
  0x99   : > { %v4255_v60 = vpop.permute.xlu0 %295  ;;  %v4257_v61 = vpop.permute.xlu1 %461 }
  0x9a   : > { %v396_v2 = vmul.f32 %v4174_v23, %v4255_v60  ;;  %v398_v3 = vmul.f32 %v4176_v24, %v4255_v60  ;;  %v395_v4 = vmul.f32 %v4188_v29, %v4255_v60  ;;  %v397_v5 = vmul.f32 %v4190_v30, %v4255_v60 }
  0x9b   : > { %v400_v6 = vmul.f32 %v4198_v34, %v4255_v60  ;;  %v402_v7 = vmul.f32 %v4200_v35, %v4255_v60  ;;  %v399_v8 = vmul.f32 %v4214_v41, %v4255_v60  ;;  %v401_v9 = vmul.f32 %v4219_v44, %v4255_v60 }
  0x9c   : > { %v4287_v12 = vadd.f32 %v4257_v61, %v396_v2  ;;  %v4290_v14 = vadd.f32 %v4257_v61, %v398_v3  ;;  %v4293_v15 = vadd.f32 %v4257_v61, %v395_v4  ;;  %v4296_v16 = vadd.f32 %v4257_v61, %v397_v5  ;;  %v3295_v3 = vld [vmem:[%s5135_s4 + $0x38] sm:$0xff] }
  0x9d   : > { %v4298_v19 = vpop.permute.xlu0 %300  ;;  %v4300_v20 = vpop.permute.xlu1 %466  ;;  %v4303_v21 = vadd.f32 %v4257_v61, %v400_v6  ;;  %v4306_v22 = vadd.f32 %v4257_v61, %v402_v7  ;;  %v4309_v25 = vadd.f32 %v4257_v61, %v399_v8  ;;  %v4312_v26 = vadd.f32 %v4257_v61, %v401_v9  ;;  %1681 = vperm.xlu1 %3583, %v3295_v3  }
  0x9e   : > { %v412_v27 = vmul.f32 %v4174_v23, %v4298_v19  ;;  %v414_v31 = vmul.f32 %v4176_v24, %v4298_v19  ;;  %v411_v36 = vmul.f32 %v4188_v29, %v4298_v19  ;;  %v413_v37 = vmul.f32 %v4190_v30, %v4298_v19 }
  0x9f   : > { %v416_v42 = vmul.f32 %v4198_v34, %v4298_v19  ;;  %v418_v54 = vmul.f32 %v4200_v35, %v4298_v19  ;;  %v415_v59 = vmul.f32 %v4214_v41, %v4298_v19  ;;  %v417_v2 = vmul.f32 %v4219_v44, %v4298_v19 }
  0xa0   : > { %v496_v4 = vadd.f32 %v4300_v20, %v412_v27  ;;  %v498_v5 = vadd.f32 %v4300_v20, %v414_v31  ;;  %v495_v6 = vadd.f32 %v4300_v20, %v411_v36  ;;  %v497_v7 = vadd.f32 %v4300_v20, %v413_v37 }
  0xa1   : > { %v4337_v8 = vpop.permute.xlu0 %310  ;;  %v500_v9 = vadd.f32 %v4300_v20, %v416_v42  ;;  %v502_v10 = vadd.f32 %v4300_v20, %v418_v54  ;;  %v499_v18 = vadd.f32 %v4300_v20, %v415_v59  ;;  %v501_v11 = vadd.f32 %v4300_v20, %v417_v2 }
  0xa2   : > { %v4343_v13 = vpop.permute.xlu1 %552  ;;  %v444_v27 = vmul.f32 %v4174_v23, %v4337_v8  ;;  %v4349_v31 = vmul.f32 %v4176_v24, %v4337_v8  ;;  %v4353_v36 = vmul.f32 %v4188_v29, %v4337_v8  ;;  %v4357_v37 = vmul.f32 %v4190_v30, %v4337_v8 }
  0xa3   : > { %v662_v42 = vmul.f32 %v4185_v28, %v4343_v13  ;;  %v664_v54 = vmul.f32 %v4193_v32, %v4343_v13  ;;  %v661_v59 = vmul.f32 %v4196_v33, %v4343_v13  ;;  %v663_v2 = vmul.f32 %v4208_v38, %v4343_v13 }
  0xa4   : > { %v666_v17 = vmul.f32 %v4210_v39, %v4343_v13  ;;  %v668_v1 = vmul.f32 %v4212_v40, %v4343_v13  ;;  %v665_v3 = vmul.f32 %v4217_v43, %v4343_v13  ;;  %v667_v58 = vmul.f32 %v4221_v45, %v4343_v13 }
  0xa5   : > { %v726_v0 = vadd.f32 %v662_v42, %v496_v4  ;;  %v728_v57 = vadd.f32 %v664_v54, %v498_v5  ;;  %v725_v63 = vadd.f32 %v661_v59, %v495_v6  ;;  %v727_v56 = vadd.f32 %v663_v2, %v497_v7 }
  0xa6   : > { %v4375_v62 = vpop.permute.xlu0 %548  ;;  %v730_v53 = vadd.f32 %v666_v17, %v500_v9  ;;  %v4377_v55 = vadd.f32 %v668_v1, %v502_v10  ;;  %v4379_v49 = vadd.f32 %v665_v3, %v499_v18  ;;  %v4381_v52 = vadd.f32 %v667_v58, %v501_v11 }
  0xa7   : > { %v4383_v48 = vpop.permute.xlu1 %305  ;;  %v646_v51 = vmul.f32 %v4185_v28, %v4375_v62  ;;  %3585 = vtanh.f32 %v726_v0  ;;  %v648_v4 = vmul.f32 %v4193_v32, %v4375_v62  ;;  %v645_v5 = vmul.f32 %v4196_v33, %v4375_v62 }
  0xa8   : > { %3587 = vtanh.f32 %v728_v57  ;;  %v647_v17 = vmul.f32 %v4208_v38, %v4375_v62  ;;  %v428_v11 = vmul.f32 %v4174_v23, %v4383_v48  ;;  %v430_v58 = vmul.f32 %v4176_v24, %v4383_v48 }
  0xa9   : > { %v710_v1 = vadd.f32 %v646_v51, %v4287_v12  ;;  %v712_v0 = vadd.f32 %v648_v4, %v4290_v14  ;;  %v709_v6 = vadd.f32 %v645_v5, %v4293_v15  ;;  %3589 = vtanh.f32 %v725_v63 }
  0xaa   : > { %v4400_v7 = vpop.permute.xlu0 %556  ;;  %v711_v57 = vadd.f32 %v647_v17, %v4296_v16  ;;  %3591 = vtanh.f32 %v727_v56  ;;  %v427_v9 = vmul.f32 %v4188_v29, %v4383_v48  ;;  %v429_v23 = vmul.f32 %v4190_v30, %v4383_v48 }
  0xab   : > { %v4407_v10 = vpop.permute.xlu1 %471  ;;  %3593 = vtanh.f32 %v710_v1  ;;  %v678_v24 = vmul.f32 %v4185_v28, %v4400_v7  ;;  %v680_v51 = vmul.f32 %v4193_v32, %v4400_v7  ;;  %v677_v63 = vmul.f32 %v4196_v33, %v4400_v7 }
  0xac   : > { %3595 = vtanh.f32 %v712_v0  ;;  %v512_v56 = vadd.f32 %v4407_v10, %v428_v11  ;;  %v514_v29 = vadd.f32 %v4407_v10, %v430_v58  ;;  %v511_v12 = vadd.f32 %v4407_v10, %v427_v9 }
  0xad   : > { %3597 = vtanh.f32 %v709_v6  ;;  %v513_v30 = vadd.f32 %v4407_v10, %v429_v23  ;;  %v679_v14 = vmul.f32 %v4208_v38, %v4400_v7  ;;  %v650_v15 = vmul.f32 %v4210_v39, %v4375_v62 }
  0xae   : > { %3599 = vtanh.f32 %v711_v57  ;;  %v742_v16 = vadd.f32 %v678_v24, %v512_v56  ;;  %v744_v18 = vadd.f32 %v680_v51, %v514_v29  ;;  %v741_v42 = vadd.f32 %v677_v63, %v511_v12 }
  0xaf   : > { %v4423_v54 = vpop.permute.xlu1 %476  ;;  %v743_v59 = vadd.f32 %v679_v14, %v513_v30  ;;  %v714_v2 = vadd.f32 %v650_v15, %v4303_v21  ;;  %3601 = vtanh.f32 %v730_v53  ;;  %v652_v3 = vmul.f32 %v4212_v40, %v4375_v62 }
  0xb0   : > { %v528_v4 = vadd.f32 %v4423_v54, %v444_v27  ;;  %3603 = vtanh.f32 %v742_v16  ;;  %v530_v5 = vadd.f32 %v4423_v54, %v4349_v31  ;;  %v527_v17 = vadd.f32 %v4423_v54, %v4353_v36 }
  0xb1   : > { %v3586_v11 = vpop.eup %3585  ;;  %3605 = vtanh.f32 %v744_v18  ;;  %v529_v58 = vadd.f32 %v4423_v54, %v4357_v37  ;;  %v716_v21 = vadd.f32 %v652_v3, %v4306_v22  ;;  %v649_v53 = vmul.f32 %v4217_v43, %v4375_v62 }
  0xb2   : > { %v3588_v1 = vpop.eup %3587  ;;  %3607 = vtanh.f32 %v741_v42  ;;  %v651_v27 = vmul.f32 %v4221_v45, %v4375_v62  ;;  %v432_v31 = vmul.f32 %v4198_v34, %v4383_v48  ;;  %v448_v36 = vmul.f32 %v4198_v34, %v4337_v8 }
  0xb3   : > { %v3590_v0 = vpop.eup %3589  ;;  %3609 = vtanh.f32 %v743_v59  ;;  %v713_v37 = vadd.f32 %v649_v53, %v4309_v25  ;;  %v682_v22 = vmul.f32 %v4210_v39, %v4400_v7  ;;  %v434_v6 = vmul.f32 %v4200_v35, %v4383_v48 }
  0xb4   : > { %v3592_v57 = vpop.eup %3591  ;;  %v4449_v9 = vpop.permute.xlu1 %560  ;;  %3611 = vtanh.f32 %v714_v2  ;;  %v715_v23 = vadd.f32 %v651_v27, %v4312_v26  ;;  %v516_v24 = vadd.f32 %v4407_v10, %v432_v31  ;;  %v532_v34 = vadd.f32 %v4423_v54, %v448_v36 }
  0xb5   : > { %v3594_v51 = vpop.eup %3593  ;;  %v694_v25 = vmul.f32 %v4185_v28, %v4449_v9  ;;  %v696_v63 = vmul.f32 %v4193_v32, %v4449_v9  ;;  %v693_v56 = vmul.f32 %v4196_v33, %v4449_v9  ;;  %v695_v29 = vmul.f32 %v4208_v38, %v4449_v9 }
  0xb6   : > { %v3596_v12 = vpop.eup %3595  ;;  %v3342_v30 = vpack.c.bf16 %v3586_v11, %v3594_v51  ;;  %3613 = vtanh.f32 %v716_v21  ;;  %v698_v26 = vmul.f32 %v4210_v39, %v4449_v9  ;;  %v746_v14 = vadd.f32 %v682_v22, %v516_v24 }
  0xb7   : > { %v3598_v15 = vpop.eup %3597  ;;  %v3350_v16 = vpack.c.bf16 %v3588_v1, %v3596_v12  ;;  %v758_v18 = vadd.f32 %v694_v25, %v528_v4  ;;  %v760_v28 = vadd.f32 %v696_v63, %v530_v5  ;;  %v757_v42 = vadd.f32 %v693_v56, %v527_v17 }
  0xb8   : > { %v3600_v59 = vpop.eup %3599  ;;  %3343 = vmatprep.subr.bf16.mxu0 %v3342_v30  ;;  %v3344_v32 = vpack.c.bf16 %v3590_v0, %v3598_v15  ;;  %v759_v2 = vadd.f32 %v695_v29, %v529_v58  ;;  %3615 = vtanh.f32 %v4377_v55  ;;  %v762_v33 = vadd.f32 %v698_v26, %v532_v34 }
  0xb9   : > { %v4465_v38 = vpop.eup %3601  ;;  %3351 = vmatprep.subr.bf16.mxu1 %v3350_v16  ;;  %v3352_v3 = vpack.c.bf16 %v3592_v57, %v3600_v59  ;;  %3617 = vtanh.f32 %v758_v18  ;;  %v450_v39 = vmul.f32 %v4200_v35, %v4337_v8  ;;  %v518_v11 = vadd.f32 %v4407_v10, %v434_v6 }
  0xba   : > { %v3604_v4 = vpop.eup %3603  ;;  %3345 = vmatpush1.bf16.msra.mxu0 %v3344_v32  ;;  %3619 = vtanh.f32 %v760_v28  ;;  %v684_v5 = vmul.f32 %v4212_v40, %v4400_v7  ;;  %v700_v55 = vmul.f32 %v4212_v40, %v4449_v9  ;;  %v431_v17 = vmul.f32 %v4214_v41, %v4383_v48 }
  0xbb   : > { %v3606_v58 = vpop.eup %3605  ;;  %3353 = vmatpush1.bf16.msra.mxu1 %v3352_v3  ;;  %3621 = vtanh.f32 %v757_v42  ;;  %v534_v21 = vadd.f32 %v4423_v54, %v450_v39  ;;  %v447_v35 = vmul.f32 %v4214_v41, %v4337_v8  ;;  %v681_v53 = vmul.f32 %v4217_v43, %v4400_v7 }
  0xbc   : > { %v3608_v1 = vpop.eup %3607  ;;  %3623 = vtanh.f32 %v759_v2  ;;  %v748_v27 = vadd.f32 %v684_v5, %v518_v11  ;;  %v515_v31 = vadd.f32 %v4407_v10, %v431_v17  ;;  %v697_v40 = vmul.f32 %v4217_v43, %v4449_v9  ;;  %v5173_v5 = vld [vmem:[#allocation10_spill] sm:$0xff] }
  0xbd   : > { %v4484_v36 = vpop.eup %3609  ;;  %3625 = vtanh.f32 %v713_v37  ;;  %v764_v0 = vadd.f32 %v700_v55, %v534_v21  ;;  %v531_v22 = vadd.f32 %v4423_v54, %v447_v35  ;;  %v433_v41 = vmul.f32 %v4219_v44, %v4383_v48  ;;  %v5174_v21 = vld [vmem:[#allocation8_spill] sm:$0xff] }
  0xbe   : > { %v3612_v6 = vpop.eup %3611  ;;  %3627 = vtanh.f32 %v4379_v49  ;;  %v745_v57 = vadd.f32 %v681_v53, %v515_v31  ;;  %v449_v24 = vmul.f32 %v4219_v44, %v4337_v8  ;;  %v683_v34 = vmul.f32 %v4221_v45, %v4400_v7 }
  0xbf   : > { %v3358_v43 = vpack.c.bf16 %v4465_v38, %v3612_v6  ;;  %3629 = vtanh.f32 %v715_v23  ;;  %v761_v37 = vadd.f32 %v697_v40, %v531_v22  ;;  %v517_v51 = vadd.f32 %v4407_v10, %v433_v41  ;;  %v5175_v40 = vld [vmem:[#allocation11_spill] sm:$0xff] }
  0xc0   : > { %v3614_v25 = vpop.eup %3613  ;;  %3631 = vtanh.f32 %v4381_v52  ;;  %v533_v63 = vadd.f32 %v4423_v54, %v449_v24  ;;  %v699_v49 = vmul.f32 %v4221_v45, %v4449_v9  ;;  %v404_v44 = vmul.f32 %v4223_v46, %v4255_v60 }
  0xc1   : > { %3633 = vtanh.f32 %v746_v14  ;;  %v747_v56 = vadd.f32 %v683_v34, %v517_v51  ;;  %v420_v23 = vmul.f32 %v4223_v46, %v4298_v19  ;;  %v654_v29 = vmul.f32 %v4232_v50, %v4375_v62 }
  0xc2   : > { %v3616_v12 = vpop.eup %3615  ;;  %3635 = vtanh.f32 %v762_v33  ;;  %v763_v30 = vadd.f32 %v699_v49, %v533_v63  ;;  %v488_v52 = vadd.f32 %v4257_v61, %v404_v44  ;;  %v670_v26 = vmul.f32 %v4232_v50, %v4343_v13 }
  0xc3   : > { %v3618_v45 = vpop.eup %3617  ;;  %v3366_v15 = vpack.c.bf16 %v3616_v12, %v3614_v25  ;;  %3637 = vtanh.f32 %v748_v27  ;;  %v504_v14 = vadd.f32 %v4300_v20, %v420_v23  ;;  %v406_v16 = vmul.f32 %v4225_v47, %v4255_v60  ;;  %v5177_v12 = vld [vmem:[#allocation13_spill] sm:$0xff] }
  0xc4   : > { %v3620_v18 = vpop.eup %3619  ;;  %v3346_v28 = vpack.c.bf16 %v3618_v45, %v3604_v4  ;;  %3639 = vtanh.f32 %v764_v0  ;;  %v718_v42 = vadd.f32 %v654_v29, %v488_v52  ;;  %v422_v59 = vmul.f32 %v4225_v47, %v4298_v19 }
  0xc5   : > { %v3622_v32 = vpop.eup %3621  ;;  %v3354_v2 = vpack.c.bf16 %v3620_v18, %v3606_v58  ;;  %3641 = vtanh.f32 %v745_v57  ;;  %v734_v33 = vadd.f32 %v670_v26, %v504_v14  ;;  %v490_v38 = vadd.f32 %v4257_v61, %v406_v16 }
  0xc6   : > { %v3624_v3 = vpop.eup %3623  ;;  %3347 = vmatprep.subr.bf16.mxu0 %v3346_v28  ;;  %v3348_v39 = vpack.c.bf16 %v3622_v32, %v3608_v1  ;;  %3643 = vtanh.f32 %v761_v37  ;;  %v506_v11 = vadd.f32 %v4300_v20, %v422_v59  ;;  %v656_v4 = vmul.f32 %v5173_v5, %v4375_v62  ;;  %v4526_v1 = vld [vmem:[%s5134_s3] sm:$0xff] }
  0xc7   : > { %v3626_v55 = vpop.eup %3625  ;;  %3355 = vmatprep.subr.bf16.mxu1 %v3354_v2  ;;  %v3356_v17 = vpack.c.bf16 %v3624_v3, %v4484_v36  ;;  %3645 = vtanh.f32 %v747_v56  ;;  %v672_v58 = vmul.f32 %v5173_v5, %v4343_v13  ;;  %v403_v35 = vmul.f32 %v5174_v21, %v4255_v60  ;;  %v5176_v37 = vld [vmem:[#allocation9_spill] sm:$0xff]  ;;  %v4547_v56 = vld [vmem:[%s5134_s3 + $0x8] sm:$0xff] }
  0xc8   : > { %v3628_v53 = vpop.eup %3627  ;;  %3349 = vmatpush1.bf16.msra.mxu0 %v3348_v39  ;;  %3647 = vtanh.f32 %v763_v30  ;;  %v720_v27 = vadd.f32 %v656_v4, %v490_v38  ;;  %v419_v31 = vmul.f32 %v5174_v21, %v4298_v19  ;;  %v653_v36 = vmul.f32 %v5175_v40, %v4375_v62 }
  0xc9   : > { %v3630_v0 = vpop.eup %3629  ;;  %3357 = vmatpush1.bf16.msra.mxu1 %v3356_v17  ;;  %3359 = vmatprep.subr.bf16.mxu0 %v3358_v43  ;;  %v3360_v22 = vpack.c.bf16 %v3628_v53, %v3626_v55  ;;  %3649 = vtanh.f32 %v718_v42  ;;  %v736_v41 = vadd.f32 %v672_v58, %v506_v11  ;;  %v487_v6 = vadd.f32 %v4257_v61, %v403_v35  ;;  %v4576_v55 = vld [vmem:[%s5134_s3 + $0x10] sm:$0xff] }
  0xca   : > { %v3632_v57 = vpop.eup %3631  ;;  %3367 = vmatprep.subr.bf16.mxu1 %v3366_v15  ;;  %3651 = vtanh.f32 %v734_v33  ;;  %v503_v24 = vadd.f32 %v4300_v20, %v419_v31  ;;  %v669_v34 = vmul.f32 %v5175_v40, %v4343_v13  ;;  %v405_v51 = vmul.f32 %v5176_v37, %v4255_v60 }
  0xcb   : > { %v3634_v25 = vpop.eup %3633  ;;  %3256 = vmatmul.mubr.msk.f32.vlgmr.msra.gmra.mrb[0].mxu0 %vm865_vm0, %v4526_v1  ;;  %v3368_v43 = vpack.c.bf16 %v3632_v57, %v3630_v0  ;;  %3653 = vtanh.f32 %v720_v27  ;;  %v717_v63 = vadd.f32 %v653_v36, %v487_v6  ;;  %v421_v49 = vmul.f32 %v5176_v37, %v4298_v19 }
  0xcc   : > { %v3636_v44 = vpop.eup %3635  ;;  %3260 = vmatmul.mubr.msk.f32.vlgmr.msra.gmra.mrb[0].mxu1 %vm865_vm0, %v4526_v1  ;;  %3361 = vmatpush1.bf16.msra.mxu0 %v3360_v22  ;;  %3655 = vtanh.f32 %v736_v41  ;;  %v733_v23 = vadd.f32 %v669_v34, %v503_v24  ;;  %v489_v29 = vadd.f32 %v4257_v61, %v405_v51  ;;  %v655_v30 = vmul.f32 %v5177_v12, %v4375_v62 }
  0xcd   : > { %v3638_v52 = vpop.eup %3637  ;;  %3369 = vmatpush1.bf16.msra.mxu1 %v3368_v43  ;;  %v3362_v26 = vpack.c.bf16 %v3636_v44, %v3634_v25  ;;  %v5178_v45 = vmov 0.0   ;;  %3657 = vtanh.f32 %v717_v63  ;;  %v505_v15 = vadd.f32 %v4300_v20, %v421_v49  ;;  %v4604_v25 = vld [vmem:[%s5134_s3 + $0x18] sm:$0xff] }
  0xce   : > { %948 = vmatprep.mubr.f32.mxu0 %v5178_v45  ;;  %v671_v14 = vmul.f32 %v5177_v12, %v4343_v13  ;;  %v3640_v16 = vpop.eup %3639  ;;  %1037 = vmatprep.mubr.f32.mxu1 %v5178_v45  ;;  %3659 = vtanh.f32 %v733_v23  ;;  %v719_v18 = vadd.f32 %v655_v30, %v489_v29  ;;  %v436_v28 = vmul.f32 %v4223_v46, %v4383_v48 }
  0xcf   : > { %v452_v42 = vmul.f32 %v4223_v46, %v4337_v8  ;;  %v3642_v59 = vpop.eup %3641  ;;  %3363 = vmatprep.subr.bf16.mxu0 %v3362_v26  ;;  %v3370_v32 = vpack.c.bf16 %v3640_v16, %v3638_v52  ;;  %3257 = vmatmul.mubr.msk.f32.gmra.mrb[2].mxu0 %vm865_vm0, %v4547_v56  ;;  %v686_v33 = vmul.f32 %v4232_v50, %v4400_v7 }
  0xd0   : > { %v735_v2 = vadd.f32 %v671_v14, %v505_v15  ;;  %v3644_v38 = vpop.eup %3643  ;;  %3261 = vmatmul.mubr.msk.f32.gmra.mrb[2].mxu1 %vm865_vm0, %v4547_v56  ;;  %954 = vmatprep.mubr.f32.mxu0 %v5178_v45  ;;  %3661 = vtanh.f32 %v719_v18  ;;  %v520_v3 = vadd.f32 %v4407_v10, %v436_v28  ;;  %v702_v39 = vmul.f32 %v4232_v50, %v4449_v9 }
  0xd1   : > { %v536_v46 = vadd.f32 %v4423_v54, %v452_v42  ;;  %v3646_v11 = vpop.eup %3645  ;;  %3371 = vmatprep.subr.bf16.mxu1 %v3370_v32  ;;  %v3364_v4 = vpack.c.bf16 %v3644_v38, %v3642_v59  ;;  %1043 = vmatprep.mubr.f32.mxu1 %v5178_v45  ;;  %v438_v17 = vmul.f32 %v4225_v47, %v4383_v48 }
  0xd2   : > { %3663 = vtanh.f32 %v735_v2  ;;  %v454_v58 = vmul.f32 %v4225_v47, %v4337_v8  ;;  %v3648_v35 = vpop.eup %3647  ;;  %v750_v53 = vadd.f32 %v686_v33, %v520_v3  ;;  %v688_v27 = vmul.f32 %v5173_v5, %v4400_v7  ;;  %v5180_v33 = vld [vmem:[#allocation17_spill] sm:$0xff] }
  0xd3   : > { %v766_v50 = vadd.f32 %v702_v39, %v536_v46  ;;  %v704_v31 = vmul.f32 %v5173_v5, %v4449_v9  ;;  %v3650_v36 = vpop.eup %3649  ;;  %3365 = vmatpush1.bf16.msra.mxu0 %v3364_v4  ;;  %v3372_v0 = vpack.c.bf16 %v3648_v35, %v3646_v11  ;;  %v522_v22 = vadd.f32 %v4407_v10, %v438_v17 }
  0xd4   : > { %v538_v41 = vadd.f32 %v4423_v54, %v454_v58  ;;  %v435_v6 = vmul.f32 %v5174_v21, %v4383_v48  ;;  %v3652_v47 = vpop.eup %3651  ;;  %3258 = vmatmul.mubr.msk.f32.gmra.mrb[4].mxu0 %vm865_vm0, %v4576_v55  ;;  %3262 = vmatmul.mubr.msk.f32.gmra.mrb[4].mxu1 %vm865_vm0, %v4576_v55  ;;  %3665 = vtanh.f32 %v750_v53  ;;  %v451_v5 = vmul.f32 %v5174_v21, %v4337_v8  ;;  %v5181_v58 = vld [vmem:[#allocation14_spill] sm:$0xff] }
  0xd5   : > { %v685_v57 = vmul.f32 %v5175_v40, %v4400_v7  ;;  %v701_v24 = vmul.f32 %v5175_v40, %v4449_v9  ;;  %v3654_v34 = vpop.eup %3653  ;;  %3373 = vmatpush1.bf16.msra.mxu1 %v3372_v0  ;;  %v3374_v51 = vpack.c.bf16 %v3652_v47, %v3650_v36  ;;  %960 = vmatprep.mubr.f32.mxu0 %v5178_v45  ;;  %3667 = vtanh.f32 %v766_v50 }
  0xd6   : > { %v752_v43 = vadd.f32 %v688_v27, %v522_v22  ;;  %v768_v63 = vadd.f32 %v704_v31, %v538_v41  ;;  %v3656_v21 = vpop.eup %3655  ;;  %1049 = vmatprep.mubr.f32.mxu1 %v5178_v45  ;;  %v519_v49 = vadd.f32 %v4407_v10, %v435_v6  ;;  %v535_v40 = vadd.f32 %v4423_v54, %v451_v5  ;;  %v5182_v27 = vld [vmem:[#allocation18_spill] sm:$0xff]  ;;  %v5183_v5 = vld [vmem:[#allocation15_spill] sm:$0xff] }
  0xd7   : > { %v437_v44 = vmul.f32 %v5176_v37, %v4383_v48  ;;  %v453_v23 = vmul.f32 %v5176_v37, %v4337_v8  ;;  %v3658_v29 = vpop.eup %3657  ;;  %3375 = vmatprep.subr.bf16.mxu0 %v3374_v51  ;;  %v3382_v30 = vpack.c.bf16 %v3656_v21, %v3654_v34  ;;  %v687_v52 = vmul.f32 %v5177_v12, %v4400_v7 }
  0xd8   : > { %3669 = vtanh.f32 %v752_v43  ;;  %v703_v26 = vmul.f32 %v5177_v12, %v4449_v9  ;;  %v3660_v15 = vpop.eup %3659  ;;  %3259 = vmatmul.mubr.msk.f32.gmra.mrb[6].mxu0 %vm865_vm0, %v4604_v25  ;;  %3263 = vmatmul.mubr.msk.f32.gmra.mrb[6].mxu1 %vm865_vm0, %v4604_v25  ;;  %v749_v14 = vadd.f32 %v685_v57, %v519_v49  ;;  %v765_v37 = vadd.f32 %v701_v24, %v535_v40  ;;  %v5179_v12 = vld [vmem:[#allocation12_spill] sm:$0xff]  ;;  %v5184_v43 = vld [vmem:[#allocation19_spill] sm:$0xff] }
  0xd9   : > { %3671 = vtanh.f32 %v768_v63  ;;  %v521_v16 = vadd.f32 %v4407_v10, %v437_v44  ;;  %3383 = vmatprep.subr.bf16.mxu1 %v3382_v30  ;;  %1120 = vmatprep.mubr.f32.mxu0 %v5178_v45  ;;  %v3376_v18 = vpack.c.bf16 %v3660_v15, %v3658_v29  ;;  %v537_v28 = vadd.f32 %v4423_v54, %v453_v23  ;;  %v5185_v30 = vld [vmem:[#allocation16_spill] sm:$0xff] }
  0xda   : > { %v408_v42 = vmul.f32 %v5179_v12, %v4255_v60  ;;  %v3662_v59 = vpop.eup %3661  ;;  %1209 = vmatprep.mubr.f32.mxu1 %v5178_v45  ;;  %3673 = vtanh.f32 %v749_v14  ;;  %v424_v2 = vmul.f32 %v5179_v12, %v4298_v19  ;;  %v658_v38 = vmul.f32 %v5180_v33, %v4375_v62 }
  0xdb   : > { %v751_v32 = vadd.f32 %v687_v52, %v521_v16  ;;  %3675 = vtanh.f32 %v765_v37  ;;  %v767_v46 = vadd.f32 %v703_v26, %v537_v28  ;;  %v674_v11 = vmul.f32 %v5180_v33, %v4343_v13  ;;  %v5186_v37 = vld [vmem:[#allocation20_spill] sm:$0xff] }
  0xdc   : > { %v3664_v3 = vpop.eup %3663  ;;  %v492_v39 = vadd.f32 %v4257_v61, %v408_v42  ;;  %3264 = vmatmul.mubr.msk.f32.vlgmr.msra.gmra.mrb[8].mxu0 %vm865_vm0, %v4526_v1  ;;  %3268 = vmatmul.mubr.msk.f32.vlgmr.msra.gmra.mrb[8].mxu1 %vm865_vm0, %v4526_v1  ;;  %v508_v17 = vadd.f32 %v4300_v20, %v424_v2  ;;  %v410_v35 = vmul.f32 %v5181_v58, %v4255_v60 }
  0xdd   : > { %v3384_v4 = vpack.c.bf16 %v3664_v3, %v3662_v59  ;;  %3677 = vtanh.f32 %v751_v32  ;;  %3377 = vmatpush1.bf16.msra.mxu0 %v3376_v18  ;;  %1126 = vmatprep.mubr.f32.mxu0 %v5178_v45  ;;  %v426_v50 = vmul.f32 %v5181_v58, %v4298_v19  ;;  %v660_v31 = vmul.f32 %v5182_v27, %v4375_v62 }
  0xde   : > { %3679 = vtanh.f32 %v767_v46  ;;  %v722_v53 = vadd.f32 %v658_v38, %v492_v39  ;;  %v3666_v36 = vpop.eup %3665  ;;  %1215 = vmatprep.mubr.f32.mxu1 %v5178_v45  ;;  %v738_v0 = vadd.f32 %v674_v11, %v508_v17  ;;  %v494_v22 = vadd.f32 %v4257_v61, %v410_v35 }
  0xdf   : > { %3385 = vmatpush1.bf16.msra.mxu1 %v3384_v4  ;;  %v676_v41 = vmul.f32 %v5182_v27, %v4343_v13  ;;  %v3668_v6 = vpop.eup %3667  ;;  %v510_v47 = vadd.f32 %v4300_v20, %v426_v50  ;;  %v407_v57 = vmul.f32 %v5183_v5, %v4255_v60  ;;  %v423_v24 = vmul.f32 %v5183_v5, %v4298_v19 }
  0xe0   : > { %3681 = vtanh.f32 %v722_v53  ;;  %v3378_v34 = vpack.c.bf16 %v3668_v6, %v3666_v36  ;;  %3265 = vmatmul.mubr.msk.f32.gmra.mrb[10].mxu0 %vm865_vm0, %v4547_v56  ;;  %3269 = vmatmul.mubr.msk.f32.gmra.mrb[10].mxu1 %vm865_vm0, %v4547_v56  ;;  %v724_v51 = vadd.f32 %v660_v31, %v494_v22  ;;  %v657_v63 = vmul.f32 %v5184_v43, %v4375_v62 }
  0xe1   : > { %3683 = vtanh.f32 %v738_v0  ;;  %v740_v49 = vadd.f32 %v676_v41, %v510_v47  ;;  %1132 = vmatprep.mubr.f32.mxu0 %v5178_v45  ;;  %1221 = vmatprep.mubr.f32.mxu1 %v5178_v45  ;;  %v491_v40 = vadd.f32 %v4257_v61, %v407_v57  ;;  %v507_v44 = vadd.f32 %v4300_v20, %v423_v24 }
  0xe2   : > { %v3670_v21 = vpop.eup %3669  ;;  %3379 = vmatprep.subr.bf16.mxu0 %v3378_v34  ;;  %3685 = vtanh.f32 %v724_v51  ;;  %v673_v29 = vmul.f32 %v5184_v43, %v4343_v13  ;;  %v409_v52 = vmul.f32 %v5185_v30, %v4255_v60  ;;  %v425_v26 = vmul.f32 %v5185_v30, %v4298_v19 }
  0xe3   : > { %v3672_v23 = vpop.eup %3671  ;;  %3687 = vtanh.f32 %v740_v49  ;;  %v721_v14 = vadd.f32 %v657_v63, %v491_v40  ;;  %v659_v16 = vmul.f32 %v5186_v37, %v4375_v62  ;;  %v675_v62 = vmul.f32 %v5186_v37, %v4343_v13 }
  0xe4   : > { %v3386_v15 = vpack.c.bf16 %v3672_v23, %v3670_v21  ;;  %v3674_v18 = vpop.eup %3673  ;;  %3266 = vmatmul.mubr.msk.f32.gmra.mrb[12].mxu0 %vm865_vm0, %v4576_v55  ;;  %3270 = vmatmul.mubr.msk.f32.gmra.mrb[12].mxu1 %vm865_vm0, %v4576_v55  ;;  %v737_v28 = vadd.f32 %v673_v29, %v507_v44  ;;  %v493_v42 = vadd.f32 %v4257_v61, %v409_v52 }
  0xe5   : > { %v509_v60 = vadd.f32 %v4300_v20, %v425_v26  ;;  %v3676_v59 = vpop.eup %3675  ;;  %1138 = vmatprep.mubr.f32.mxu0 %v5178_v45  ;;  %3689 = vtanh.f32 %v721_v14  ;;  %v440_v19 = vmul.f32 %v5179_v12, %v4383_v48  ;;  %v456_v32 = vmul.f32 %v5179_v12, %v4337_v8  ;;  %1227 = vmatprep.mubr.f32.mxu1 %v5178_v45 }
  0xe6   : > { %3387 = vmatprep.subr.bf16.mxu1 %v3386_v15  ;;  %v3380_v38 = vpack.c.bf16 %v3676_v59, %v3674_v18  ;;  %3691 = vtanh.f32 %v737_v28  ;;  %v723_v61 = vadd.f32 %v659_v16, %v493_v42  ;;  %v690_v20 = vmul.f32 %v5180_v33, %v4400_v7 }
  0xe7   : > { %v3678_v2 = vpop.eup %3677  ;;  %v739_v46 = vadd.f32 %v675_v62, %v509_v60  ;;  %v524_v39 = vadd.f32 %v4407_v10, %v440_v19  ;;  %v540_v13 = vadd.f32 %v4423_v54, %v456_v32  ;;  %v706_v11 = vmul.f32 %v5180_v33, %v4449_v9 }
  0xe8   : > { %v3680_v3 = vpop.eup %3679  ;;  %3381 = vmatpush1.bf16.msra.mxu0 %v3380_v38  ;;  %3271 = vmatmul.mubr.msk.f32.gmra.mrb[14].mxu1 %vm865_vm0, %v4604_v25  ;;  %3693 = vtanh.f32 %v723_v61  ;;  %v442_v4 = vmul.f32 %v5181_v58, %v4383_v48  ;;  %v458_v17 = vmul.f32 %v5181_v58, %v4337_v8  ;;  %v692_v50 = vmul.f32 %v5182_v27, %v4400_v7 }
  0xe9   : > { %v3388_v12 = vpack.c.bf16 %v3680_v3, %v3678_v2  ;;  %3267 = vmatmul.mubr.msk.f32.gmra.mrb[14].mxu0 %vm865_vm0, %v4604_v25  ;;  %1387 = vmatprep.mubr.f32.mxu1 %v5178_v45  ;;  %3695 = vtanh.f32 %v739_v46  ;;  %v754_v33 = vadd.f32 %v690_v20, %v524_v39  ;;  %v770_v53 = vadd.f32 %v706_v11, %v540_v13  ;;  %v4783_v13 = vpop.permute.xlu0 %852 }
  0xea   : > { %v3682_v35 = vpop.eup %3681  ;;  %1298 = vmatprep.mubr.f32.mxu0 %v5178_v45  ;;  %v526_v36 = vadd.f32 %v4407_v10, %v442_v4  ;;  %v542_v58 = vadd.f32 %v4423_v54, %v458_v17  ;;  %v708_v0 = vmul.f32 %v5182_v27, %v4449_v9  ;;  %v439_v41 = vmul.f32 %v5183_v5, %v4383_v48 }
  0xeb   : > { %v3684_v31 = vpop.eup %3683  ;;  %3389 = vmatpush1.bf16.msra.mxu1 %v3388_v12  ;;  %3697 = vtanh.f32 %v754_v33  ;;  %v455_v6 = vmul.f32 %v5183_v5, %v4337_v8  ;;  %v689_v34 = vmul.f32 %v5184_v43, %v4400_v7  ;;  %v705_v21 = vmul.f32 %v5184_v43, %v4449_v9 }
  0xec   : > { %v3390_v22 = vpack.c.bf16 %v3684_v31, %v3682_v35  ;;  %v3686_v47 = vpop.eup %3685  ;;  %3699 = vtanh.f32 %v770_v53  ;;  %v756_v57 = vadd.f32 %v692_v50, %v526_v36  ;;  %v772_v24 = vadd.f32 %v708_v0, %v542_v58 }
  0xed   : > { %v3688_v51 = vpop.eup %3687  ;;  %3272 = vmatmul.mubr.msk.f32.vlgmr.msra.gmra.mrb[16].mxu0 %vm865_vm0, %v4526_v1  ;;  %v523_v27 = vadd.f32 %v4407_v10, %v439_v41  ;;  %v539_v63 = vadd.f32 %v4423_v54, %v455_v6  ;;  %v441_v49 = vmul.f32 %v5185_v30, %v4383_v48  ;;  %v457_v40 = vmul.f32 %v5185_v30, %v4337_v8 }
  0xee   : > { %3391 = vmatprep.subr.bf16.mxu0 %v3390_v22  ;;  %v3398_v5 = vpack.c.bf16 %v3688_v51, %v3686_v47  ;;  %3276 = vmatmul.mubr.msk.f32.vlgmr.msra.gmra.mrb[16].mxu1 %vm865_vm0, %v4526_v1  ;;  %3701 = vtanh.f32 %v756_v57  ;;  %v691_v43 = vmul.f32 %v5186_v37, %v4400_v7  ;;  %v707_v48 = vmul.f32 %v5186_v37, %v4449_v9 }
  0xef   : > { %1304 = vmatprep.mubr.f32.mxu0 %v5178_v45  ;;  %v3690_v44 = vpop.eup %3689  ;;  %3703 = vtanh.f32 %v772_v24  ;;  %1393 = vmatprep.mubr.f32.mxu1 %v5178_v45  ;;  %v753_v23 = vadd.f32 %v689_v34, %v523_v27  ;;  %v769_v29 = vadd.f32 %v705_v21, %v539_v63  ;;  %v525_v26 = vadd.f32 %v4407_v10, %v441_v49 }
  0xf0   : > { %v3692_v52 = vpop.eup %3691  ;;  %3399 = vmatprep.subr.bf16.mxu1 %v3398_v5  ;;  %v541_v15 = vadd.f32 %v4423_v54, %v457_v40 }
  0xf1   : > { %v3392_v14 = vpack.c.bf16 %v3692_v52, %v3690_v44  ;;  %3273 = vmatmul.mubr.msk.f32.gmra.mrb[18].mxu0 %vm865_vm0, %v4547_v56  ;;  %3705 = vtanh.f32 %v753_v23  ;;  %v755_v7 = vadd.f32 %v691_v43, %v525_v26 }
  0xf2   : > { %v3694_v8 = vpop.eup %3693  ;;  %3277 = vmatmul.mubr.msk.f32.gmra.mrb[18].mxu1 %vm865_vm0, %v4547_v56  ;;  %3707 = vtanh.f32 %v769_v29  ;;  %v771_v30 = vadd.f32 %v707_v48, %v541_v15  ;;  %1310 = vmatprep.mubr.f32.mxu0 %v5178_v45 }
  0xf3   : > { %v3696_v10 = vpop.eup %3695  ;;  %3393 = vmatpush1.bf16.msra.mxu0 %v3392_v14  ;;  %1399 = vmatprep.mubr.f32.mxu1 %v5178_v45  ;;  %3709 = vtanh.f32 %v755_v7 }
  0xf4   : > { %v3400_v54 = vpack.c.bf16 %v3696_v10, %v3694_v8  ;;  %3711 = vtanh.f32 %v771_v30 }
  0xf5   : > { %v3698_v9 = vpop.eup %3697  ;;  %3274 = vmatmul.mubr.msk.f32.gmra.mrb[20].mxu0 %vm865_vm0, %v4576_v55 }
  0xf6   : > { %v3700_v37 = vpop.eup %3699  ;;  %3401 = vmatpush1.bf16.msra.mxu1 %v3400_v54  ;;  %1316 = vmatprep.mubr.f32.mxu0 %v5178_v45 }
  0xf7   : > { %v3394_v16 = vpack.c.bf16 %v3700_v37, %v3698_v9  ;;  %3278 = vmatmul.mubr.msk.f32.gmra.mrb[20].mxu1 %vm865_vm0, %v4576_v55 }
  0xf8   : > { %v3702_v18 = vpop.eup %3701  ;;  %1405 = vmatprep.mubr.f32.mxu1 %v5178_v45 }
  0xf9   : > { %v3704_v28 = vpop.eup %3703  ;;  %3395 = vmatprep.subr.bf16.mxu0 %v3394_v16  ;;  %3275 = vmatmul.mubr.msk.f32.gmra.mrb[22].mxu0 %vm865_vm0, %v4604_v25 }
  0xfa   : > { %v3402_v42 = vpack.c.bf16 %v3704_v28, %v3702_v18  ;;  %1476 = vmatprep.mubr.f32.mxu0 %v5178_v45 }
  0xfb   : > { %v3706_v60 = vpop.eup %3705  ;;  %3279 = vmatmul.mubr.msk.f32.gmra.mrb[22].mxu1 %vm865_vm0, %v4604_v25 }
  0xfc   : > { %v3708_v59 = vpop.eup %3707  ;;  %3403 = vmatprep.subr.bf16.mxu1 %v3402_v42  ;;  %1565 = vmatprep.mubr.f32.mxu1 %v5178_v45 }
  0xfd   : > { %v3396_v62 = vpack.c.bf16 %v3708_v59, %v3706_v60  ;;  %v3710_v19 = vpop.eup %3709 }
  0xfe   : > { %v3712_v32 = vpop.eup %3711 }
  0xff   : > { %3397 = vmatpush1.bf16.msra.mxu0 %v3396_v62  ;;  %v3404_v2 = vpack.c.bf16 %v3712_v32, %v3710_v19 }
 0x101   : > { %3405 = vmatpush1.bf16.msra.mxu1 %v3404_v2 }
 0x102   : > { %3280 = vmatmul.mubr.msk.f32.vlgmr.msra.gmra.mrb[24].mxu0 %vm865_vm0, %v4526_v1 }
 0x103   : > { %1482 = vmatprep.mubr.f32.mxu0 %v5178_v45 }
 0x104   : > { %3284 = vmatmul.mubr.msk.f32.vlgmr.msra.gmra.mrb[24].mxu1 %vm865_vm0, %v4526_v1  ;;  %v4777_v1 = vpop.permute.xlu1 %847 }
 0x105   : > { %1571 = vmatprep.mubr.f32.mxu1 %v5178_v45 }
 0x106   : > { %3281 = vmatmul.mubr.msk.f32.gmra.mrb[26].mxu0 %vm865_vm0, %v4547_v56 }
 0x107   : > { %1488 = vmatprep.mubr.f32.mxu0 %v5178_v45 }
 0x108   : > { %3285 = vmatmul.mubr.msk.f32.gmra.mrb[26].mxu1 %vm865_vm0, %v4547_v56  ;;  %v4786_v17 = vpop.permute.xlu1 %857 }
 0x109   : > { %1577 = vmatprep.mubr.f32.mxu1 %v5178_v45 }
 0x10a   : > { %3282 = vmatmul.mubr.msk.f32.gmra.mrb[28].mxu0 %vm865_vm0, %v4576_v55 }
 0x10b   : > { %1494 = vmatprep.mubr.f32.mxu0 %v5178_v45 }
 0x10c   : > { %3286 = vmatmul.mubr.msk.f32.gmra.mrb[28].mxu1 %vm865_vm0, %v4576_v55  ;;  %v4795_v57 = vpop.permute.xlu1 %862 }
 0x10d   : > { %1583 = vmatprep.mubr.f32.mxu1 %v5178_v45 }
 0x10e   : > { %3283 = vmatmul.mubr.msk.f32.gmra.mrb[30].mxu0 %vm865_vm0, %v4604_v25 }
 0x10f   : > { %1760 = vmatprep.mubr.f32.mxu0 %v5178_v45 }
 0x110   : > { %3287 = vmatmul.mubr.msk.f32.gmra.mrb[30].mxu1 %vm865_vm0, %v4604_v25 }
 0x111   : > { %1849 = vmatprep.mubr.f32.mxu1 %v5178_v45 }
 0x19e   : > { %v944_v56 = vpop.f32.mrb[0].mxu0 }
 0x19f   : > { %v945_v38 = vadd.f32 %v944_v56, %v4777_v1  ;;  %v1033_v61 = vpop.f32.mrb[0].mxu1  ;;  %v946_v20 = vpop.f32.mrb[1].mxu0 }
 0x1a0   : > { %v1034_v55 = vadd.f32 %v1033_v61, %v4777_v1  ;;  %v947_v3 = vadd.f32 %v946_v20, %v4777_v1  ;;  %v1035_v46 = vpop.f32.mrb[1].mxu1 }
 0x1a1   : > { %3713 = vtanh.f32 %v945_v38  ;;  %v1036_v39 = vadd.f32 %v1035_v46, %v4777_v1 }
 0x1a2   : > { %3715 = vtanh.f32 %v1034_v55  ;;  %v950_v25 = vpop.f32.mrb[2].mxu0 }
 0x1a3   : > { %3717 = vtanh.f32 %v947_v3  ;;  %v951_v11 = vadd.f32 %v950_v25, %v4783_v13  ;;  %v1039_v12 = vpop.f32.mrb[2].mxu1  ;;  %v952_v4 = vpop.f32.mrb[3].mxu0 }
 0x1a4   : > { %3719 = vtanh.f32 %v1036_v39  ;;  %v1040_v35 = vadd.f32 %v1039_v12, %v4783_v13  ;;  %v953_v33 = vadd.f32 %v952_v4, %v4783_v13  ;;  %v1041_v53 = vpop.f32.mrb[3].mxu1 }
 0x1a5   : > { %3721 = vtanh.f32 %v951_v11  ;;  %v1042_v50 = vadd.f32 %v1041_v53, %v4783_v13 }
 0x1a6   : > { %3723 = vtanh.f32 %v1040_v35 }
 0x1a7   : > { %3725 = vtanh.f32 %v953_v33  ;;  %v956_v31 = vpop.f32.mrb[4].mxu0  ;;  %v1045_v36 = vpop.f32.mrb[4].mxu1 }
 0x1a8   : > { %3727 = vtanh.f32 %v1042_v50  ;;  %v957_v58 = vadd.f32 %v956_v31, %v4786_v17  ;;  %v1046_v0 = vadd.f32 %v1045_v36, %v4786_v17  ;;  %v958_v22 = vpop.f32.mrb[5].mxu0  ;;  %v1047_v41 = vpop.f32.mrb[5].mxu1 }
 0x1a9   : > { %v959_v6 = vadd.f32 %v958_v22, %v4786_v17  ;;  %v1048_v47 = vadd.f32 %v1047_v41, %v4786_v17 }
 0x1aa   : > { %3729 = vtanh.f32 %v957_v58 }
 0x1ab   : > { %v3714_v24 = vpop.eup %3713  ;;  %3731 = vtanh.f32 %v1046_v0  ;;  %v962_v34 = vpop.f32.mrb[6].mxu0 }
 0x1ac   : > { %v1051_v51 = vpop.f32.mrb[6].mxu1  ;;  %v3716_v27 = vpop.eup %3715  ;;  %3733 = vtanh.f32 %v959_v6  ;;  %v963_v63 = vadd.f32 %v962_v34, %v4795_v57 }
 0x1ad   : > { %v1052_v21 = vadd.f32 %v1051_v51, %v4795_v57  ;;  %v964_v5 = vpop.f32.mrb[7].mxu0  ;;  %v1053_v49 = vpop.f32.mrb[7].mxu1  ;;  %3735 = vtanh.f32 %v1048_v47 }
 0x1ae   : > { %v3718_v40 = vpop.eup %3717  ;;  %v965_v44 = vadd.f32 %v964_v5, %v4795_v57  ;;  %v1054_v23 = vadd.f32 %v1053_v49, %v4795_v57  ;;  %3737 = vtanh.f32 %v963_v63 }
 0x1af   : > { %v3720_v29 = vpop.eup %3719  ;;  %3739 = vtanh.f32 %v1052_v21  ;;  %v1122_v52 = vpop.f32.mrb[8].mxu0 }
 0x1b0   : > { %v3722_v43 = vpop.eup %3721  ;;  %v1211_v26 = vpop.f32.mrb[8].mxu1  ;;  %3741 = vtanh.f32 %v965_v44  ;;  %v1123_v48 = vadd.f32 %v1122_v52, %v4777_v1 }
 0x1b1   : > { %v3724_v15 = vpop.eup %3723  ;;  %v1212_v14 = vadd.f32 %v1211_v26, %v4777_v1  ;;  %v1124_v8 = vpop.f32.mrb[9].mxu0  ;;  %v3408_v30 = vpack.c.bf16 %v3722_v43, %v3714_v24  ;;  %3743 = vtanh.f32 %v1054_v23 }
 0x1b2   : > { %v1213_v7 = vpop.f32.mrb[9].mxu1  ;;  %v3726_v10 = vpop.eup %3725  ;;  %v1125_v54 = vadd.f32 %v1124_v8, %v4777_v1  ;;  %v3416_v37 = vpack.c.bf16 %v3724_v15, %v3716_v27  ;;  %3745 = vtanh.f32 %v1123_v48 }
 0x1b3   : > { %v1214_v9 = vadd.f32 %v1213_v7, %v4777_v1  ;;  %v3728_v16 = vpop.eup %3727  ;;  %v3406_v18 = vpack.c.bf16 %v3726_v10, %v3718_v40  ;;  %3747 = vtanh.f32 %v1212_v14  ;;  %v1128_v28 = vpop.f32.mrb[10].mxu0  ;;  %v4822_v40 = vld [vmem:[%s5134_s3 + $0x20] sm:$0xff]  ;;  %v4836_v10 = vld [vmem:[%s5134_s3 + $0x28] sm:$0xff] }
 0x1b4   : > { %v1217_v42 = vpop.f32.mrb[10].mxu1  ;;  %v3414_v60 = vpack.c.bf16 %v3728_v16, %v3720_v29  ;;  %v3730_v59 = vpop.eup %3729  ;;  %3749 = vtanh.f32 %v1125_v54  ;;  %v1129_v62 = vadd.f32 %v1128_v28, %v4783_v13 }
 0x1b5   : > { %v1218_v19 = vadd.f32 %v1217_v42, %v4783_v13  ;;  %v1130_v32 = vpop.f32.mrb[11].mxu0  ;;  %v1219_v2 = vpop.f32.mrb[11].mxu1  ;;  %3407 = vmatprep.subr.bf16.mxu0 %v3406_v18  ;;  %3751 = vtanh.f32 %v1214_v9 }
 0x1b6   : > { %v3732_v56 = vpop.eup %3731  ;;  %v1131_v38 = vadd.f32 %v1130_v32, %v4783_v13  ;;  %v1220_v61 = vadd.f32 %v1219_v2, %v4783_v13  ;;  %3415 = vmatprep.subr.bf16.mxu1 %v3414_v60  ;;  %3409 = vmatpush1.bf16.msra.mxu0 %v3408_v30  ;;  %3753 = vtanh.f32 %v1129_v62 }
 0x1b7   : > { %v3734_v20 = vpop.eup %3733  ;;  %3417 = vmatpush1.bf16.msra.mxu1 %v3416_v37  ;;  %3755 = vtanh.f32 %v1218_v19  ;;  %v1134_v3 = vpop.f32.mrb[12].mxu0 }
 0x1b8   : > { %v3736_v55 = vpop.eup %3735  ;;  %v1223_v46 = vpop.f32.mrb[12].mxu1  ;;  %3757 = vtanh.f32 %v1131_v38  ;;  %v1135_v25 = vadd.f32 %v1134_v3, %v4786_v17 }
 0x1b9   : > { %v3738_v39 = vpop.eup %3737  ;;  %v1224_v11 = vadd.f32 %v1223_v46, %v4786_v17  ;;  %v1136_v12 = vpop.f32.mrb[13].mxu0  ;;  %3759 = vtanh.f32 %v1220_v61  ;;  %v4854_v61 = vld [vmem:[%s5134_s3 + $0x30] sm:$0xff] }
 0x1ba   : > { %v1225_v4 = vpop.f32.mrb[13].mxu1  ;;  %v3740_v35 = vpop.eup %3739  ;;  %v1137_v33 = vadd.f32 %v1136_v12, %v4786_v17  ;;  %v3412_v50 = vpack.c.bf16 %v3738_v39, %v3730_v59  ;;  %3761 = vtanh.f32 %v1135_v25 }
 0x1bb   : > { %v1226_v53 = vadd.f32 %v1225_v4, %v4786_v17  ;;  %v3742_v31 = vpop.eup %3741  ;;  %v3420_v36 = vpack.c.bf16 %v3740_v35, %v3732_v56  ;;  %3763 = vtanh.f32 %v1224_v11  ;;  %v1229_v0 = vpop.f32.mrb[14].mxu1 }
 0x1bc   : > { %v3744_v58 = vpop.eup %3743  ;;  %v3410_v22 = vpack.c.bf16 %v3742_v31, %v3734_v20  ;;  %3765 = vtanh.f32 %v1137_v33  ;;  %v1140_v6 = vpop.f32.mrb[14].mxu0  ;;  %v1230_v47 = vadd.f32 %v1229_v0, %v4795_v57 }
 0x1bd   : > { %v4813_v41 = vpop.eup %3745  ;;  %v1231_v24 = vpop.f32.mrb[15].mxu1  ;;  %v3418_v34 = vpack.c.bf16 %v3744_v58, %v3736_v55  ;;  %3767 = vtanh.f32 %v1226_v53  ;;  %v1141_v27 = vadd.f32 %v1140_v6, %v4795_v57  ;;  %v4870_v53 = vld [vmem:[%s5134_s3 + $0x38] sm:$0xff] }
 0x1be   : > { %v3748_v51 = vpop.eup %3747  ;;  %v1142_v63 = vpop.f32.mrb[15].mxu0  ;;  %v1232_v21 = vadd.f32 %v1231_v24, %v4795_v57  ;;  %3411 = vmatprep.subr.bf16.mxu0 %v3410_v22  ;;  %3769 = vtanh.f32 %v1230_v47 }
 0x1bf   : > { %v3750_v5 = vpop.eup %3749  ;;  %v1143_v49 = vadd.f32 %v1142_v63, %v4795_v57  ;;  %3419 = vmatprep.subr.bf16.mxu1 %v3418_v34  ;;  %3413 = vmatpush1.bf16.msra.mxu0 %v3412_v50  ;;  %3771 = vtanh.f32 %v1141_v27 }
 0x1c0   : > { %v3752_v44 = vpop.eup %3751  ;;  %3421 = vmatpush1.bf16.msra.mxu1 %v3420_v36  ;;  %v1300_v29 = vpop.f32.mrb[16].mxu0 }
 0x1c1   : > { %v3754_v23 = vpop.eup %3753  ;;  %3773 = vtanh.f32 %v1143_v49  ;;  %v1301_v52 = vadd.f32 %v1300_v29, %v4777_v1  ;;  %v1389_v26 = vpop.f32.mrb[16].mxu1 }
 0x1c2   : > { %v3756_v43 = vpop.eup %3755  ;;  %3775 = vtanh.f32 %v1232_v21  ;;  %v1302_v15 = vpop.f32.mrb[17].mxu0  ;;  %3296 = vmatmul.mubr.msk.f32.vlgmr.msra.gmra.mrb[32].mxu0 %vm865_vm0, %v4822_v40  ;;  %v3424_v48 = vpack.c.bf16 %v3754_v23, %v4813_v41  ;;  %v1390_v8 = vadd.f32 %v1389_v26, %v4777_v1 }
 0x1c3   : > { %v3758_v14 = vpop.eup %3757  ;;  %v1303_v7 = vadd.f32 %v1302_v15, %v4777_v1  ;;  %v1391_v30 = vpop.f32.mrb[17].mxu1  ;;  %3300 = vmatmul.mubr.msk.f32.vlgmr.msra.gmra.mrb[32].mxu1 %vm865_vm0, %v4822_v40  ;;  %1766 = vmatprep.mubr.f32.mxu0 %v5178_v45  ;;  %v3432_v54 = vpack.c.bf16 %v3756_v43, %v3748_v51  ;;  %3777 = vtanh.f32 %v1301_v52 }
 0x1c4   : > { %v3760_v9 = vpop.eup %3759  ;;  %v1392_v37 = vadd.f32 %v1391_v30, %v4777_v1  ;;  %1855 = vmatprep.mubr.f32.mxu1 %v5178_v45  ;;  %v3422_v16 = vpack.c.bf16 %v3758_v14, %v3750_v5  ;;  %3779 = vtanh.f32 %v1390_v8  ;;  %v1306_v28 = vpop.f32.mrb[18].mxu0 }
 0x1c5   : > { %v4840_v18 = vpop.eup %3761  ;;  %v3430_v42 = vpack.c.bf16 %v3760_v9, %v3752_v44  ;;  %3781 = vtanh.f32 %v1303_v7  ;;  %v1307_v59 = vadd.f32 %v1306_v28, %v4783_v13  ;;  %v1395_v62 = vpop.f32.mrb[18].mxu1 }
 0x1c6   : > { %v4842_v60 = vpop.eup %3763  ;;  %v1308_v19 = vpop.f32.mrb[19].mxu0  ;;  %3297 = vmatmul.mubr.msk.f32.gmra.mrb[34].mxu0 %vm865_vm0, %v4836_v10  ;;  %3423 = vmatprep.subr.bf16.mxu0 %v3422_v16  ;;  %3783 = vtanh.f32 %v1392_v37  ;;  %v1396_v2 = vadd.f32 %v1395_v62, %v4783_v13 }
 0x1c7   : > { %v3766_v32 = vpop.eup %3765  ;;  %v1309_v56 = vadd.f32 %v1308_v19, %v4783_v13  ;;  %v1397_v38 = vpop.f32.mrb[19].mxu1  ;;  %3301 = vmatmul.mubr.msk.f32.gmra.mrb[34].mxu1 %vm865_vm0, %v4836_v10  ;;  %3431 = vmatprep.subr.bf16.mxu1 %v3430_v42  ;;  %3785 = vtanh.f32 %v1307_v59 }
 0x1c8   : > { %v3768_v20 = vpop.eup %3767  ;;  %v1398_v55 = vadd.f32 %v1397_v38, %v4783_v13  ;;  %3425 = vmatpush1.bf16.msra.mxu0 %v3424_v48  ;;  %3433 = vmatpush1.bf16.msra.mxu1 %v3432_v54  ;;  %3787 = vtanh.f32 %v1396_v2  ;;  %v1312_v46 = vpop.f32.mrb[20].mxu0 }
 0x1c9   : > { %v3770_v3 = vpop.eup %3769  ;;  %1772 = vmatprep.mubr.f32.mxu0 %v5178_v45  ;;  %1861 = vmatprep.mubr.f32.mxu1 %v5178_v45  ;;  %3789 = vtanh.f32 %v1309_v56  ;;  %v1313_v25 = vadd.f32 %v1312_v46, %v4786_v17  ;;  %v1314_v11 = vpop.f32.mrb[21].mxu0 }
 0x1ca   : > { %v3772_v39 = vpop.eup %3771  ;;  %3298 = vmatmul.mubr.msk.f32.gmra.mrb[36].mxu0 %vm865_vm0, %v4854_v61  ;;  %v3436_v12 = vpack.c.bf16 %v3770_v3, %v4842_v60  ;;  %3791 = vtanh.f32 %v1398_v55  ;;  %v1401_v35 = vpop.f32.mrb[20].mxu1  ;;  %v1315_v33 = vadd.f32 %v1314_v11, %v4786_v17 }
 0x1cb   : > { %v3774_v4 = vpop.eup %3773  ;;  %3302 = vmatmul.mubr.msk.f32.gmra.mrb[36].mxu1 %vm865_vm0, %v4854_v61  ;;  %1778 = vmatprep.mubr.f32.mxu0 %v5178_v45  ;;  %v3428_v50 = vpack.c.bf16 %v3772_v39, %v4840_v18  ;;  %3793 = vtanh.f32 %v1313_v25  ;;  %v1402_v36 = vadd.f32 %v1401_v35, %v4786_v17  ;;  %v1403_v58 = vpop.f32.mrb[21].mxu1 }
 0x1cc   : > { %v3776_v31 = vpop.eup %3775  ;;  %1867 = vmatprep.mubr.f32.mxu1 %v5178_v45  ;;  %v3426_v0 = vpack.c.bf16 %v3774_v4, %v3766_v32  ;;  %3795 = vtanh.f32 %v1315_v33  ;;  %v1404_v22 = vadd.f32 %v1403_v58, %v4786_v17  ;;  %v1318_v41 = vpop.f32.mrb[22].mxu0 }
 0x1cd   : > { %v3434_v6 = vpack.c.bf16 %v3776_v31, %v3768_v20  ;;  %v3778_v47 = vpop.eup %3777  ;;  %3797 = vtanh.f32 %v1402_v36  ;;  %v1319_v24 = vadd.f32 %v1318_v41, %v4795_v57  ;;  %v1320_v34 = vpop.f32.mrb[23].mxu0 }
 0x1ce   : > { %3299 = vmatmul.mubr.msk.f32.gmra.mrb[38].mxu0 %vm865_vm0, %v4870_v53  ;;  %3427 = vmatprep.subr.bf16.mxu0 %v3426_v0  ;;  %v3780_v51 = vpop.eup %3779  ;;  %3799 = vtanh.f32 %v1404_v22  ;;  %v1407_v27 = vpop.f32.mrb[22].mxu1  ;;  %v1321_v63 = vadd.f32 %v1320_v34, %v4795_v57 }
 0x1cf   : > { %3303 = vmatmul.mubr.msk.f32.gmra.mrb[38].mxu1 %vm865_vm0, %v4870_v53  ;;  %3435 = vmatprep.subr.bf16.mxu1 %v3434_v6  ;;  %v3782_v21 = vpop.eup %3781  ;;  %3801 = vtanh.f32 %v1319_v24  ;;  %v1408_v5 = vadd.f32 %v1407_v27, %v4795_v57  ;;  %v1409_v49 = vpop.f32.mrb[23].mxu1 }
 0x1d0   : > { %3429 = vmatpush1.bf16.msra.mxu0 %v3428_v50  ;;  %3437 = vmatpush1.bf16.msra.mxu1 %v3436_v12  ;;  %v3784_v44 = vpop.eup %3783  ;;  %3803 = vtanh.f32 %v1321_v63  ;;  %v1410_v23 = vadd.f32 %v1409_v49, %v4795_v57 }
 0x1d1   : > { %1938 = vmatprep.mubr.f32.mxu0 %v5178_v45  ;;  %2027 = vmatprep.mubr.f32.mxu1 %v5178_v45  ;;  %v3786_v29 = vpop.eup %3785  ;;  %3805 = vtanh.f32 %v1408_v5 }
 0x1d2   : > { %v3788_v43 = vpop.eup %3787  ;;  %3807 = vtanh.f32 %v1410_v23  ;;  %v3440_v52 = vpack.c.bf16 %v3786_v29, %v3778_v47 }
 0x1d3   : > { %3304 = vmatmul.mubr.msk.f32.vlgmr.msra.gmra.mrb[40].mxu0 %vm865_vm0, %v4822_v40  ;;  %3308 = vmatmul.mubr.msk.f32.vlgmr.msra.gmra.mrb[40].mxu1 %vm865_vm0, %v4822_v40  ;;  %v3790_v26 = vpop.eup %3789  ;;  %v3448_v15 = vpack.c.bf16 %v3788_v43, %v3780_v51 }
 0x1d4   : > { %1944 = vmatprep.mubr.f32.mxu0 %v5178_v45  ;;  %2033 = vmatprep.mubr.f32.mxu1 %v5178_v45  ;;  %v3792_v48 = vpop.eup %3791  ;;  %v3438_v14 = vpack.c.bf16 %v3790_v26, %v3782_v21 }
 0x1d5   : > { %v3794_v8 = vpop.eup %3793  ;;  %v1478_v7 = vpop.f32.mrb[24].mxu0  ;;  %v3446_v30 = vpack.c.bf16 %v3792_v48, %v3784_v44 }
 0x1d6   : > { %v3796_v54 = vpop.eup %3795  ;;  %v1479_v9 = vadd.f32 %v1478_v7, %v4777_v1  ;;  %v1480_v37 = vpop.f32.mrb[25].mxu0  ;;  %3439 = vmatprep.subr.bf16.mxu0 %v3438_v14 }
 0x1d7   : > { %3305 = vmatmul.mubr.msk.f32.gmra.mrb[42].mxu0 %vm865_vm0, %v4836_v10  ;;  %3309 = vmatmul.mubr.msk.f32.gmra.mrb[42].mxu1 %vm865_vm0, %v4836_v10  ;;  %v3798_v16 = vpop.eup %3797  ;;  %v1481_v18 = vadd.f32 %v1480_v37, %v4777_v1  ;;  %v1567_v42 = vpop.f32.mrb[24].mxu1 }
 0x1d8   : > { %3447 = vmatprep.subr.bf16.mxu1 %v3446_v30  ;;  %v3800_v28 = vpop.eup %3799  ;;  %3441 = vmatpush1.bf16.msra.mxu0 %v3440_v52  ;;  %3809 = vtanh.f32 %v1479_v9  ;;  %v1568_v59 = vadd.f32 %v1567_v42, %v4777_v1  ;;  %v1569_v62 = vpop.f32.mrb[25].mxu1 }
 0x1d9   : > { %3449 = vmatpush1.bf16.msra.mxu1 %v3448_v15  ;;  %v3802_v60 = vpop.eup %3801  ;;  %v1484_v19 = vpop.f32.mrb[26].mxu0  ;;  %1950 = vmatprep.mubr.f32.mxu0 %v5178_v45  ;;  %3811 = vtanh.f32 %v1481_v18  ;;  %v1570_v2 = vadd.f32 %v1569_v62, %v4777_v1 }
 0x1da   : > { %2039 = vmatprep.mubr.f32.mxu1 %v5178_v45  ;;  %v3804_v32 = vpop.eup %3803  ;;  %v1485_v56 = vadd.f32 %v1484_v19, %v4783_v13  ;;  %v1486_v38 = vpop.f32.mrb[27].mxu0  ;;  %v3444_v20 = vpack.c.bf16 %v3802_v60, %v3794_v8  ;;  %3813 = vtanh.f32 %v1568_v59 }
 0x1db   : > { %3306 = vmatmul.mubr.msk.f32.gmra.mrb[44].mxu0 %vm865_vm0, %v4854_v61  ;;  %3310 = vmatmul.mubr.msk.f32.gmra.mrb[44].mxu1 %vm865_vm0, %v4854_v61  ;;  %v3806_v55 = vpop.eup %3805  ;;  %v1487_v3 = vadd.f32 %v1486_v38, %v4783_v13  ;;  %v3442_v46 = vpack.c.bf16 %v3804_v32, %v3796_v54  ;;  %3815 = vtanh.f32 %v1570_v2  ;;  %v1573_v39 = vpop.f32.mrb[26].mxu1 }
 0x1dc   : > { %1956 = vmatprep.mubr.f32.mxu0 %v5178_v45  ;;  %2045 = vmatprep.mubr.f32.mxu1 %v5178_v45  ;;  %v3808_v1 = vpop.eup %3807  ;;  %v3452_v25 = vpack.c.bf16 %v3806_v55, %v3798_v16  ;;  %3817 = vtanh.f32 %v1485_v56  ;;  %v1574_v11 = vadd.f32 %v1573_v39, %v4783_v13  ;;  %v1575_v12 = vpop.f32.mrb[27].mxu1 }
 0x1dd   : > { %v1490_v4 = vpop.f32.mrb[28].mxu0  ;;  %3443 = vmatprep.subr.bf16.mxu0 %v3442_v46  ;;  %v3450_v35 = vpack.c.bf16 %v3808_v1, %v3800_v28  ;;  %3819 = vtanh.f32 %v1487_v3  ;;  %v1576_v33 = vadd.f32 %v1575_v12, %v4783_v13  ;;  %v4980_v56 = vpop.permute.xlu1 %1671 }
 0x1de   : > { %v1491_v50 = vadd.f32 %v1490_v4, %v4786_v17  ;;  %v1492_v31 = vpop.f32.mrb[29].mxu0  ;;  %3821 = vtanh.f32 %v1574_v11  ;;  %3445 = vmatpush1.bf16.msra.mxu0 %v3444_v20 }
 0x1df   : > { %3307 = vmatmul.mubr.msk.f32.gmra.mrb[46].mxu0 %vm865_vm0, %v4870_v53  ;;  %3311 = vmatmul.mubr.msk.f32.gmra.mrb[46].mxu1 %vm865_vm0, %v4870_v53  ;;  %v1493_v36 = vadd.f32 %v1492_v31, %v4786_v17  ;;  %3823 = vtanh.f32 %v1576_v33  ;;  %v1579_v58 = vpop.f32.mrb[28].mxu1 }
 0x1e0   : > { %3451 = vmatprep.subr.bf16.mxu1 %v3450_v35  ;;  %2116 = vmatprep.mubr.f32.mxu0 %v5178_v45  ;;  %3825 = vtanh.f32 %v1491_v50  ;;  %v1580_v13 = vadd.f32 %v1579_v58, %v4786_v17  ;;  %v1581_v0 = vpop.f32.mrb[29].mxu1 }
 0x1e1   : > { %3453 = vmatpush1.bf16.msra.mxu1 %v3452_v25  ;;  %v1496_v22 = vpop.f32.mrb[30].mxu0  ;;  %2205 = vmatprep.mubr.f32.mxu1 %v5178_v45  ;;  %3827 = vtanh.f32 %v1493_v36  ;;  %v1582_v41 = vadd.f32 %v1581_v0, %v4786_v17  ;;  %v4992_v58 = vpop.permute.xlu1 %1681 }
 0x1e2   : > { %v1497_v6 = vadd.f32 %v1496_v22, %v4795_v57  ;;  %v1498_v47 = vpop.f32.mrb[31].mxu0  ;;  %v3810_v24 = vpop.eup %3809  ;;  %3829 = vtanh.f32 %v1580_v13 }
 0x1e3   : > { %3312 = vmatmul.mubr.msk.f32.vlgmr.msra.gmra.mrb[48].mxu0 %vm865_vm0, %v4822_v40  ;;  %v1499_v34 = vadd.f32 %v1498_v47, %v4795_v57  ;;  %v3812_v51 = vpop.eup %3811  ;;  %3831 = vtanh.f32 %v1582_v41  ;;  %v1585_v27 = vpop.f32.mrb[30].mxu1 }
 0x1e4   : > { %3316 = vmatmul.mubr.msk.f32.vlgmr.msra.gmra.mrb[48].mxu1 %vm865_vm0, %v4822_v40  ;;  %2122 = vmatprep.mubr.f32.mxu0 %v5178_v45  ;;  %v3814_v17 = vpop.eup %3813  ;;  %3833 = vtanh.f32 %v1497_v6  ;;  %v1586_v63 = vadd.f32 %v1585_v27, %v4795_v57  ;;  %v1587_v21 = vpop.f32.mrb[31].mxu1 }
 0x1e5   : > { %2211 = vmatprep.mubr.f32.mxu1 %v5178_v45  ;;  %v3816_v5 = vpop.eup %3815  ;;  %3835 = vtanh.f32 %v1499_v34  ;;  %v1588_v49 = vadd.f32 %v1587_v21, %v4795_v57 }
 0x1e6   : > { %v3818_v44 = vpop.eup %3817  ;;  %3837 = vtanh.f32 %v1586_v63 }
 0x1e7   : > { %3313 = vmatmul.mubr.msk.f32.gmra.mrb[50].mxu0 %vm865_vm0, %v4836_v10  ;;  %v3820_v23 = vpop.eup %3819  ;;  %3839 = vtanh.f32 %v1588_v49  ;;  %v3456_v29 = vpack.c.bf16 %v3818_v44, %v3810_v24 }
 0x1e8   : > { %3317 = vmatmul.mubr.msk.f32.gmra.mrb[50].mxu1 %vm865_vm0, %v4836_v10  ;;  %2128 = vmatprep.mubr.f32.mxu0 %v5178_v45  ;;  %v3822_v43 = vpop.eup %3821  ;;  %v3454_v52 = vpack.c.bf16 %v3820_v23, %v3812_v51 }
 0x1e9   : > { %2217 = vmatprep.mubr.f32.mxu1 %v5178_v45  ;;  %v3824_v26 = vpop.eup %3823  ;;  %v3464_v15 = vpack.c.bf16 %v3822_v43, %v3814_v17 }
 0x1ea   : > { %v3826_v57 = vpop.eup %3825  ;;  %3455 = vmatprep.subr.bf16.mxu0 %v3454_v52  ;;  %v3462_v48 = vpack.c.bf16 %v3824_v26, %v3816_v5 }
 0x1eb   : > { %3314 = vmatmul.mubr.msk.f32.gmra.mrb[52].mxu0 %vm865_vm0, %v4854_v61  ;;  %v3828_v14 = vpop.eup %3827 }
 0x1ec   : > { %3318 = vmatmul.mubr.msk.f32.gmra.mrb[52].mxu1 %vm865_vm0, %v4854_v61  ;;  %3457 = vmatpush1.bf16.msra.mxu0 %v3456_v29  ;;  %v3830_v8 = vpop.eup %3829 }
 0x1ed   : > { %2134 = vmatprep.mubr.f32.mxu0 %v5178_v45  ;;  %3463 = vmatprep.subr.bf16.mxu1 %v3462_v48  ;;  %v3832_v7 = vpop.eup %3831 }
 0x1ee   : > { %2223 = vmatprep.mubr.f32.mxu1 %v5178_v45  ;;  %3465 = vmatpush1.bf16.msra.mxu1 %v3464_v15  ;;  %v3834_v30 = vpop.eup %3833 }
 0x1ef   : > { %3315 = vmatmul.mubr.msk.f32.gmra.mrb[54].mxu0 %vm865_vm0, %v4870_v53  ;;  %v3836_v54 = vpop.eup %3835  ;;  %v3460_v9 = vpack.c.bf16 %v3834_v30, %v3826_v57 }
 0x1f0   : > { %3319 = vmatmul.mubr.msk.f32.gmra.mrb[54].mxu1 %vm865_vm0, %v4870_v53  ;;  %2294 = vmatprep.mubr.f32.mxu0 %v5178_v45  ;;  %v3838_v37 = vpop.eup %3837  ;;  %v3458_v16 = vpack.c.bf16 %v3836_v54, %v3828_v14 }
 0x1f1   : > { %2383 = vmatprep.mubr.f32.mxu1 %v5178_v45  ;;  %v3840_v18 = vpop.eup %3839  ;;  %v3468_v28 = vpack.c.bf16 %v3838_v37, %v3830_v8 }
 0x1f2   : > { %3459 = vmatprep.subr.bf16.mxu0 %v3458_v16  ;;  %v3466_v42 = vpack.c.bf16 %v3840_v18, %v3832_v7 }
 0x1f3   : > { %3461 = vmatpush1.bf16.msra.mxu0 %v3460_v9 }
 0x1f4   : > { %3467 = vmatprep.subr.bf16.mxu1 %v3466_v42 }
 0x1f5   : > { %3469 = vmatpush1.bf16.msra.mxu1 %v3468_v28 }
 0x1f6   : > { %3320 = vmatmul.mubr.msk.f32.vlgmr.msra.gmra.mrb[56].mxu0 %vm865_vm0, %v4822_v40 }
 0x1f7   : > { %2300 = vmatprep.mubr.f32.mxu0 %v5178_v45 }
 0x1f8   : > { %3324 = vmatmul.mubr.msk.f32.vlgmr.msra.gmra.mrb[56].mxu1 %vm865_vm0, %v4822_v40  ;;  %v4974_v40 = vpop.permute.xlu0 %1666 }
 0x1f9   : > { %2389 = vmatprep.mubr.f32.mxu1 %v5178_v45 }
 0x1fa   : > { %3321 = vmatmul.mubr.msk.f32.gmra.mrb[58].mxu0 %vm865_vm0, %v4836_v10 }
 0x1fb   : > { %2306 = vmatprep.mubr.f32.mxu0 %v5178_v45 }
 0x1fc   : > { %3325 = vmatmul.mubr.msk.f32.gmra.mrb[58].mxu1 %vm865_vm0, %v4836_v10  ;;  %v4986_v25 = vpop.permute.xlu0 %1676 }
 0x1fd   : > { %2395 = vmatprep.mubr.f32.mxu1 %v5178_v45 }
 0x1fe   : > { %3322 = vmatmul.mubr.msk.f32.gmra.mrb[60].mxu0 %vm865_vm0, %v4854_v61 }
 0x1ff   : > { %2312 = vmatprep.mubr.f32.mxu0 %v5178_v45 }
 0x200   : > { %3326 = vmatmul.mubr.msk.f32.gmra.mrb[60].mxu1 %vm865_vm0, %v4854_v61 }
 0x201   : > { %2401 = vmatprep.mubr.f32.mxu1 %v5178_v45 }
 0x202   : > { %3323 = vmatmul.mubr.msk.f32.gmra.mrb[62].mxu0 %vm865_vm0, %v4870_v53 }
 0x203   : > { %2550 = vmatprep.mubr.f32.mxu0 %v5178_v45 }
 0x204   : > { %3327 = vmatmul.mubr.msk.f32.gmra.mrb[62].mxu1 %vm865_vm0, %v4870_v53 }
 0x205   : > { %2621 = vmatprep.mubr.f32.mxu1 %v5178_v45 }
 0x295   : > { %v1762_v10 = vpop.f32.mrb[32].mxu0 }
 0x296   : > { %v1763_v60 = vadd.f32 %v1762_v10, %v4974_v40  ;;  %v1851_v59 = vpop.f32.mrb[32].mxu1  ;;  %v1764_v62 = vpop.f32.mrb[33].mxu0 }
 0x297   : > { %v1852_v61 = vadd.f32 %v1851_v59, %v4974_v40  ;;  %v1765_v19 = vadd.f32 %v1764_v62, %v4974_v40  ;;  %v1853_v32 = vpop.f32.mrb[33].mxu1 }
 0x298   : > { %3841 = vtanh.f32 %v1763_v60  ;;  %v1854_v2 = vadd.f32 %v1853_v32, %v4974_v40 }
 0x299   : > { %3843 = vtanh.f32 %v1852_v61  ;;  %v1768_v53 = vpop.f32.mrb[34].mxu0 }
 0x29a   : > { %3845 = vtanh.f32 %v1765_v19  ;;  %v1769_v38 = vadd.f32 %v1768_v53, %v4980_v56  ;;  %v1857_v20 = vpop.f32.mrb[34].mxu1  ;;  %v1770_v55 = vpop.f32.mrb[35].mxu0 }
 0x29b   : > { %3847 = vtanh.f32 %v1854_v2  ;;  %v1858_v3 = vadd.f32 %v1857_v20, %v4980_v56  ;;  %v1771_v46 = vadd.f32 %v1770_v55, %v4980_v56  ;;  %v1859_v1 = vpop.f32.mrb[35].mxu1 }
 0x29c   : > { %3849 = vtanh.f32 %v1769_v38  ;;  %v1860_v39 = vadd.f32 %v1859_v1, %v4980_v56 }
 0x29d   : > { %3851 = vtanh.f32 %v1858_v3  ;;  %v1774_v11 = vpop.f32.mrb[36].mxu0 }
 0x29e   : > { %3853 = vtanh.f32 %v1771_v46  ;;  %v1775_v12 = vadd.f32 %v1774_v11, %v4986_v25  ;;  %v1863_v4 = vpop.f32.mrb[36].mxu1  ;;  %v1776_v35 = vpop.f32.mrb[37].mxu0 }
 0x29f   : > { %3855 = vtanh.f32 %v1860_v39  ;;  %v1864_v33 = vadd.f32 %v1863_v4, %v4986_v25  ;;  %v1777_v50 = vadd.f32 %v1776_v35, %v4986_v25  ;;  %v1865_v31 = vpop.f32.mrb[37].mxu1 }
 0x2a0   : > { %3857 = vtanh.f32 %v1775_v12  ;;  %v1866_v36 = vadd.f32 %v1865_v31, %v4986_v25 }
 0x2a1   : > { %3859 = vtanh.f32 %v1864_v33  ;;  %v1780_v13 = vpop.f32.mrb[38].mxu0 }
 0x2a2   : > { %v3842_v0 = vpop.eup %3841  ;;  %3861 = vtanh.f32 %v1777_v50  ;;  %v1781_v22 = vadd.f32 %v1780_v13, %v4992_v58  ;;  %v1869_v41 = vpop.f32.mrb[38].mxu1 }
 0x2a3   : > { %v1782_v6 = vpop.f32.mrb[39].mxu0  ;;  %v3844_v47 = vpop.eup %3843  ;;  %3863 = vtanh.f32 %v1866_v36  ;;  %v1870_v24 = vadd.f32 %v1869_v41, %v4992_v58 }
 0x2a4   : > { %v1783_v34 = vadd.f32 %v1782_v6, %v4992_v58  ;;  %v1871_v51 = vpop.f32.mrb[39].mxu1  ;;  %v3846_v27 = vpop.eup %3845  ;;  %3865 = vtanh.f32 %v1781_v22 }
 0x2a5   : > { %v1872_v17 = vadd.f32 %v1871_v51, %v4992_v58  ;;  %v3848_v63 = vpop.eup %3847  ;;  %3867 = vtanh.f32 %v1870_v24 }
 0x2a6   : > { %v3850_v21 = vpop.eup %3849  ;;  %3869 = vtanh.f32 %v1783_v34  ;;  %v1940_v5 = vpop.f32.mrb[40].mxu0  ;;  %v5017_v34 = vld [vmem:[%s5136_s5] sm:$0x1] }
 0x2a7   : > { %v2029_v49 = vpop.f32.mrb[40].mxu1  ;;  %v3852_v44 = vpop.eup %3851  ;;  %3871 = vtanh.f32 %v1872_v17  ;;  %v1941_v23 = vadd.f32 %v1940_v5, %v4974_v40  ;;  %v3472_v26 = vpack.c.bf16 %v3850_v21, %v3842_v0 }
 0x2a8   : > { %v2030_v29 = vadd.f32 %v2029_v49, %v4974_v40  ;;  %v1942_v43 = vpop.f32.mrb[41].mxu0  ;;  %v2031_v52 = vpop.f32.mrb[41].mxu1  ;;  %v3480_v14 = vpack.c.bf16 %v3852_v44, %v3844_v47 }
 0x2a9   : > { %v3854_v15 = vpop.eup %3853  ;;  %v1943_v57 = vadd.f32 %v1942_v43, %v4974_v40  ;;  %v2032_v48 = vadd.f32 %v2031_v52, %v4974_v40  ;;  %3873 = vtanh.f32 %v1941_v23 }
 0x2aa   : > { %v3856_v8 = vpop.eup %3855  ;;  %v3470_v7 = vpack.c.bf16 %v3854_v15, %v3846_v27  ;;  %3875 = vtanh.f32 %v2030_v29  ;;  %v1946_v54 = vpop.f32.mrb[42].mxu0 }
 0x2ab   : > { %v3858_v30 = vpop.eup %3857  ;;  %v2035_v9 = vpop.f32.mrb[42].mxu1  ;;  %v3478_v37 = vpack.c.bf16 %v3856_v8, %v3848_v63  ;;  %3877 = vtanh.f32 %v1943_v57  ;;  %v1947_v18 = vadd.f32 %v1946_v54, %v4980_v56 }
 0x2ac   : > { %v3860_v16 = vpop.eup %3859  ;;  %v2036_v28 = vadd.f32 %v2035_v9, %v4980_v56  ;;  %v1948_v42 = vpop.f32.mrb[43].mxu0  ;;  %3471 = vmatprep.subr.bf16.mxu0 %v3470_v7  ;;  %3879 = vtanh.f32 %v2032_v48 }
 0x2ad   : > { %v2037_v10 = vpop.f32.mrb[43].mxu1  ;;  %v3862_v60 = vpop.eup %3861  ;;  %v1949_v59 = vadd.f32 %v1948_v42, %v4980_v56  ;;  %3479 = vmatprep.subr.bf16.mxu1 %v3478_v37  ;;  %3473 = vmatpush1.bf16.msra.mxu0 %v3472_v26  ;;  %3881 = vtanh.f32 %v1947_v18 }
 0x2ae   : > { %v2038_v62 = vadd.f32 %v2037_v10, %v4980_v56  ;;  %v3864_v61 = vpop.eup %3863  ;;  %3481 = vmatpush1.bf16.msra.mxu1 %v3480_v14  ;;  %3883 = vtanh.f32 %v2036_v28  ;;  %v1952_v32 = vpop.f32.mrb[44].mxu0 }
 0x2af   : > { %v3866_v19 = vpop.eup %3865  ;;  %v2041_v2 = vpop.f32.mrb[44].mxu1  ;;  %3885 = vtanh.f32 %v1949_v59  ;;  %v1953_v38 = vadd.f32 %v1952_v32, %v4986_v25 }
 0x2b0   : > { %v3868_v53 = vpop.eup %3867  ;;  %v2042_v20 = vadd.f32 %v2041_v2, %v4986_v25  ;;  %v1954_v55 = vpop.f32.mrb[45].mxu0  ;;  %v3476_v46 = vpack.c.bf16 %v3866_v19, %v3858_v30  ;;  %3887 = vtanh.f32 %v2038_v62 }
 0x2b1   : > { %v2043_v3 = vpop.f32.mrb[45].mxu1  ;;  %v3870_v1 = vpop.eup %3869  ;;  %v1955_v39 = vadd.f32 %v1954_v55, %v4986_v25  ;;  %v3484_v12 = vpack.c.bf16 %v3868_v53, %v3860_v16  ;;  %3889 = vtanh.f32 %v1953_v38 }
 0x2b2   : > { %v2044_v11 = vadd.f32 %v2043_v3, %v4986_v25  ;;  %v3872_v4 = vpop.eup %3871  ;;  %v3474_v35 = vpack.c.bf16 %v3870_v1, %v3862_v60  ;;  %3891 = vtanh.f32 %v2042_v20  ;;  %v1958_v33 = vpop.f32.mrb[46].mxu0 }
 0x2b3   : > { %v2047_v50 = vpop.f32.mrb[46].mxu1  ;;  %v3482_v31 = vpack.c.bf16 %v3872_v4, %v3864_v61  ;;  %v3874_v36 = vpop.eup %3873  ;;  %3893 = vtanh.f32 %v1955_v39  ;;  %v1959_v13 = vadd.f32 %v1958_v33, %v4992_v58 }
 0x2b4   : > { %v2048_v0 = vadd.f32 %v2047_v50, %v4992_v58  ;;  %v1960_v22 = vpop.f32.mrb[47].mxu0  ;;  %v2049_v41 = vpop.f32.mrb[47].mxu1  ;;  %3475 = vmatprep.subr.bf16.mxu0 %v3474_v35  ;;  %3895 = vtanh.f32 %v2044_v11 }
 0x2b5   : > { %v3876_v6 = vpop.eup %3875  ;;  %v1961_v47 = vadd.f32 %v1960_v22, %v4992_v58  ;;  %v2050_v24 = vadd.f32 %v2049_v41, %v4992_v58  ;;  %3483 = vmatprep.subr.bf16.mxu1 %v3482_v31  ;;  %3477 = vmatpush1.bf16.msra.mxu0 %v3476_v46  ;;  %3897 = vtanh.f32 %v1959_v13 }
 0x2b6   : > { %v3878_v51 = vpop.eup %3877  ;;  %3485 = vmatpush1.bf16.msra.mxu1 %v3484_v12  ;;  %3899 = vtanh.f32 %v2048_v0  ;;  %v2118_v17 = vpop.f32.mrb[48].mxu0 }
 0x2b7   : > { %v3880_v27 = vpop.eup %3879  ;;  %3901 = vtanh.f32 %v1961_v47  ;;  %v2119_v21 = vadd.f32 %v2118_v17, %v4974_v40  ;;  %v2207_v5 = vpop.f32.mrb[48].mxu1 }
 0x2b8   : > { %v3882_v63 = vpop.eup %3881  ;;  %v2120_v49 = vpop.f32.mrb[49].mxu0  ;;  %3328 = vmatmul.mubr.msk.f32.vlgmr.msra.gmra.mrb[64].mxu0 %vm865_vm0, %v5017_v34  ;;  %3903 = vtanh.f32 %v2050_v24  ;;  %v2208_v23 = vadd.f32 %v2207_v5, %v4974_v40 }
 0x2b9   : > { %v3884_v44 = vpop.eup %3883  ;;  %v2121_v29 = vadd.f32 %v2120_v49, %v4974_v40  ;;  %v2209_v43 = vpop.f32.mrb[49].mxu1  ;;  %3329 = vmatmul.mubr.msk.f32.vlgmr.msra.gmra.mrb[64].mxu1 %vm865_vm0, %v5017_v34  ;;  %v3488_v52 = vpack.c.bf16 %v3882_v63, %v3874_v36  ;;  %2692 = vmatprep.mubr.f32.mxu0 %v5178_v45  ;;  %3905 = vtanh.f32 %v2119_v21 }
 0x2ba   : > { %v3886_v26 = vpop.eup %3885  ;;  %v2210_v15 = vadd.f32 %v2209_v43, %v4974_v40  ;;  %v3496_v57 = vpack.c.bf16 %v3884_v44, %v3876_v6  ;;  %2763 = vmatprep.mubr.f32.mxu1 %v5178_v45  ;;  %3907 = vtanh.f32 %v2208_v23  ;;  %v2124_v14 = vpop.f32.mrb[50].mxu0 }
 0x2bb   : > { %v3888_v48 = vpop.eup %3887  ;;  %v3486_v8 = vpack.c.bf16 %v3886_v26, %v3878_v51  ;;  %3909 = vtanh.f32 %v2121_v29  ;;  %v2125_v30 = vadd.f32 %v2124_v14, %v4980_v56  ;;  %v2213_v54 = vpop.f32.mrb[50].mxu1 }
 0x2bc   : > { %v3890_v7 = vpop.eup %3889  ;;  %v2126_v9 = vpop.f32.mrb[51].mxu0  ;;  %v3494_v37 = vpack.c.bf16 %v3888_v48, %v3880_v27  ;;  %3911 = vtanh.f32 %v2210_v15  ;;  %v2214_v18 = vadd.f32 %v2213_v54, %v4980_v56 }
 0x2bd   : > { %v3892_v16 = vpop.eup %3891  ;;  %v2127_v28 = vadd.f32 %v2126_v9, %v4980_v56  ;;  %v2215_v42 = vpop.f32.mrb[51].mxu1  ;;  %3487 = vmatprep.subr.bf16.mxu0 %v3486_v8  ;;  %3913 = vtanh.f32 %v2125_v30 }
 0x2be   : > { %v3894_v10 = vpop.eup %3893  ;;  %v2216_v60 = vadd.f32 %v2215_v42, %v4980_v56  ;;  %3495 = vmatprep.subr.bf16.mxu1 %v3494_v37  ;;  %3489 = vmatpush1.bf16.msra.mxu0 %v3488_v52  ;;  %3915 = vtanh.f32 %v2214_v18  ;;  %v2130_v62 = vpop.f32.mrb[52].mxu0 }
 0x2bf   : > { %v3896_v59 = vpop.eup %3895  ;;  %3497 = vmatpush1.bf16.msra.mxu1 %v3496_v57  ;;  %3917 = vtanh.f32 %v2127_v28  ;;  %v2131_v19 = vadd.f32 %v2130_v62, %v4986_v25  ;;  %v2219_v32 = vpop.f32.mrb[52].mxu1 }
 0x2c0   : > { %v3898_v61 = vpop.eup %3897  ;;  %v2132_v2 = vpop.f32.mrb[53].mxu0  ;;  %3919 = vtanh.f32 %v2216_v60  ;;  %v2220_v38 = vadd.f32 %v2219_v32, %v4986_v25 }
 0x2c1   : > { %v3900_v53 = vpop.eup %3899  ;;  %v2133_v20 = vadd.f32 %v2132_v2, %v4986_v25  ;;  %v2221_v55 = vpop.f32.mrb[53].mxu1  ;;  %v3492_v3 = vpack.c.bf16 %v3898_v61, %v3890_v7  ;;  %3921 = vtanh.f32 %v2131_v19 }
 0x2c2   : > { %v3902_v46 = vpop.eup %3901  ;;  %v2222_v1 = vadd.f32 %v2221_v55, %v4986_v25  ;;  %v3500_v39 = vpack.c.bf16 %v3900_v53, %v3892_v16  ;;  %3923 = vtanh.f32 %v2220_v38  ;;  %v2136_v12 = vpop.f32.mrb[54].mxu0 }
 0x2c3   : > { %v3904_v11 = vpop.eup %3903  ;;  %v3490_v4 = vpack.c.bf16 %v3902_v46, %v3894_v10  ;;  %3925 = vtanh.f32 %v2133_v20  ;;  %v2137_v33 = vadd.f32 %v2136_v12, %v4992_v58  ;;  %v2225_v50 = vpop.f32.mrb[54].mxu1 }
 0x2c4   : > { %v3906_v35 = vpop.eup %3905  ;;  %v2138_v31 = vpop.f32.mrb[55].mxu0  ;;  %v3498_v36 = vpack.c.bf16 %v3904_v11, %v3896_v59  ;;  %3927 = vtanh.f32 %v2222_v1  ;;  %v2226_v0 = vadd.f32 %v2225_v50, %v4992_v58 }
 0x2c5   : > { %v3908_v13 = vpop.eup %3907  ;;  %v2139_v22 = vadd.f32 %v2138_v31, %v4992_v58  ;;  %v2227_v41 = vpop.f32.mrb[55].mxu1  ;;  %3491 = vmatprep.subr.bf16.mxu0 %v3490_v4  ;;  %3929 = vtanh.f32 %v2137_v33 }
 0x2c6   : > { %v3910_v6 = vpop.eup %3909  ;;  %v2228_v47 = vadd.f32 %v2227_v41, %v4992_v58  ;;  %3499 = vmatprep.subr.bf16.mxu1 %v3498_v36  ;;  %3493 = vmatpush1.bf16.msra.mxu0 %v3492_v3  ;;  %3931 = vtanh.f32 %v2226_v0 }
 0x2c7   : > { %v3912_v24 = vpop.eup %3911  ;;  %3501 = vmatpush1.bf16.msra.mxu1 %v3500_v39  ;;  %3933 = vtanh.f32 %v2139_v22 }
 0x2c8   : > { %v3914_v51 = vpop.eup %3913  ;;  %3935 = vtanh.f32 %v2228_v47 }
 0x2c9   : > { %v3916_v27 = vpop.eup %3915  ;;  %3330 = vmatmul.mubr.msk.f32.vlgmr.msra.gmra.mrb[66].mxu0 %vm865_vm0, %v5017_v34  ;;  %v3504_v17 = vpack.c.bf16 %v3914_v51, %v3906_v35  ;;  %v2296_v23 = vpop.f32.mrb[56].mxu0 }
 0x2ca   : > { %v3918_v63 = vpop.eup %3917  ;;  %3331 = vmatmul.mubr.msk.f32.vlgmr.msra.gmra.mrb[66].mxu1 %vm865_vm0, %v5017_v34  ;;  %v3512_v21 = vpack.c.bf16 %v3916_v27, %v3908_v13  ;;  %2834 = vmatprep.mubr.f32.mxu0 %v5178_v45  ;;  %v2297_v52 = vadd.f32 %v2296_v23, %v4974_v40  ;;  %v2298_v26 = vpop.f32.mrb[57].mxu0 }
 0x2cb   : > { %v3920_v5 = vpop.eup %3919  ;;  %v3502_v49 = vpack.c.bf16 %v3918_v63, %v3910_v6  ;;  %2905 = vmatprep.mubr.f32.mxu1 %v5178_v45  ;;  %v2385_v57 = vpop.f32.mrb[56].mxu1  ;;  %v2299_v48 = vadd.f32 %v2298_v26, %v4974_v40 }
 0x2cc   : > { %v3922_v44 = vpop.eup %3921  ;;  %v3510_v29 = vpack.c.bf16 %v3920_v5, %v3912_v24  ;;  %3937 = vtanh.f32 %v2297_v52  ;;  %v2386_v8 = vadd.f32 %v2385_v57, %v4974_v40  ;;  %v2387_v7 = vpop.f32.mrb[57].mxu1 }
 0x2cd   : > { %v3924_v43 = vpop.eup %3923  ;;  %3503 = vmatprep.subr.bf16.mxu0 %v3502_v49  ;;  %3939 = vtanh.f32 %v2299_v48  ;;  %v2388_v54 = vadd.f32 %v2387_v7, %v4974_v40  ;;  %v2302_v9 = vpop.f32.mrb[58].mxu0 }
 0x2ce   : > { %v3926_v15 = vpop.eup %3925  ;;  %3511 = vmatprep.subr.bf16.mxu1 %v3510_v29  ;;  %3505 = vmatpush1.bf16.msra.mxu0 %v3504_v17  ;;  %3941 = vtanh.f32 %v2386_v8  ;;  %v2303_v16 = vadd.f32 %v2302_v9, %v4980_v56  ;;  %v2304_v18 = vpop.f32.mrb[59].mxu0  ;;  %v5187_v8 = vld [vmem:[#allocation7_spill] sm:$0xff] }
 0x2cf   : > { %v3928_v14 = vpop.eup %3927  ;;  %3513 = vmatpush1.bf16.msra.mxu1 %v3512_v21  ;;  %3943 = vtanh.f32 %v2388_v54  ;;  %v2391_v10 = vpop.f32.mrb[58].mxu1  ;;  %v2305_v60 = vadd.f32 %v2304_v18, %v4980_v56 }
 0x2d0   : > { %v3930_v30 = vpop.eup %3929  ;;  %3945 = vtanh.f32 %v2303_v16  ;;  %v2392_v61 = vadd.f32 %v2391_v10, %v4980_v56  ;;  %v2393_v19 = vpop.f32.mrb[59].mxu1 }
 0x2d1   : > { %v3932_v37 = vpop.eup %3931  ;;  %v3508_v28 = vpack.c.bf16 %v3930_v30, %v3922_v44  ;;  %3947 = vtanh.f32 %v2305_v60  ;;  %v2394_v40 = vadd.f32 %v2393_v19, %v4980_v56  ;;  %v2308_v2 = vpop.f32.mrb[60].mxu0 }
 0x2d2   : > { %v3934_v42 = vpop.eup %3933  ;;  %v3516_v59 = vpack.c.bf16 %v3932_v37, %v3924_v43  ;;  %3949 = vtanh.f32 %v2392_v61  ;;  %v2309_v38 = vadd.f32 %v2308_v2, %v4986_v25  ;;  %v2310_v20 = vpop.f32.mrb[61].mxu0 }
 0x2d3   : > { %v3936_v62 = vpop.eup %3935  ;;  %v3506_v32 = vpack.c.bf16 %v3934_v42, %v3926_v15  ;;  %3951 = vtanh.f32 %v2394_v40  ;;  %v2397_v55 = vpop.f32.mrb[60].mxu1  ;;  %v2311_v3 = vadd.f32 %v2310_v20, %v4986_v25  ;;  %v4036_v15 = vmov 1966171168  }
 0x2d4   : > { %v3514_v53 = vpack.c.bf16 %v3936_v62, %v3928_v14  ;;  %3953 = vtanh.f32 %v2309_v38  ;;  %v2398_v46 = vadd.f32 %v2397_v55, %v4986_v25  ;;  %v2399_v1 = vpop.f32.mrb[61].mxu1  ;;  %v3075_v57 = vunpack.c.l.s4 %v4036_v15  ;;  %v2477_v48 = vpop.permute.xlu0 %2476 }
 0x2d5   : > { %3507 = vmatprep.subr.bf16.mxu0 %v3506_v32  ;;  %3955 = vtanh.f32 %v2311_v3  ;;  %v2400_v56 = vadd.f32 %v2399_v1, %v4986_v25  ;;  %v2314_v39 = vpop.f32.mrb[62].mxu0  ;;  %v2482_v7 = vrot.slane %v2477_v48, %v5187_v8 }
 0x2d6   : > { %3515 = vmatprep.subr.bf16.mxu1 %v3514_v53  ;;  %3509 = vmatpush1.bf16.msra.mxu0 %v3508_v28  ;;  %v3938_v11 = vpop.eup %3937  ;;  %3957 = vtanh.f32 %v2398_v46  ;;  %v2315_v12 = vadd.f32 %v2314_v39, %v4992_v58  ;;  %v2316_v4 = vpop.f32.mrb[63].mxu0  ;;  %v3076_v14 = vunpack.c.0.s8 %v3075_v57  ;;  %v5188_v28 = vld [vmem:[#allocation6_spill] sm:$0xff] }
 0x2d7   : > { %3517 = vmatpush1.bf16.msra.mxu1 %v3516_v59  ;;  %v3940_v35 = vpop.eup %3939  ;;  %3959 = vtanh.f32 %v2400_v56  ;;  %v2403_v33 = vpop.f32.mrb[62].mxu1  ;;  %v2317_v50 = vadd.f32 %v2316_v4, %v4992_v58 }
 0x2d8   : > { %v3942_v25 = vpop.eup %3941  ;;  %3961 = vtanh.f32 %v2315_v12  ;;  %v2404_v31 = vadd.f32 %v2403_v33, %v4992_v58  ;;  %v2405_v36 = vpop.f32.mrb[63].mxu1  ;;  %v3079_v42 = vsub.s32 %v3076_v14, %v5188_v28 }
 0x2d9   : > { %3332 = vmatmul.mubr.msk.f32.vlgmr.msra.gmra.mrb[68].mxu0 %vm865_vm0, %v5017_v34  ;;  %v3944_v13 = vpop.eup %3943  ;;  %3963 = vtanh.f32 %v2317_v50  ;;  %v2406_v0 = vadd.f32 %v2405_v36, %v4992_v58 }
 0x2da   : > { %3333 = vmatmul.mubr.msk.f32.vlgmr.msra.gmra.mrb[68].mxu1 %vm865_vm0, %v5017_v34  ;;  %2976 = vmatprep.mubr.f32.mxu0 %v5178_v45  ;;  %v3946_v22 = vpop.eup %3945  ;;  %3965 = vtanh.f32 %v2404_v31 }
 0x2db   : > { %3047 = vmatprep.mubr.f32.mxu1 %v5178_v45  ;;  %v3948_v41 = vpop.eup %3947  ;;  %3967 = vtanh.f32 %v2406_v0  ;;  %v3520_v6 = vpack.c.bf16 %v3946_v22, %v3938_v11 }
 0x2dc   : > { %v3950_v47 = vpop.eup %3949  ;;  %v3518_v24 = vpack.c.bf16 %v3948_v41, %v3940_v35 }
 0x2dd   : > { %v3952_v51 = vpop.eup %3951  ;;  %v3528_v27 = vpack.c.bf16 %v3950_v47, %v3942_v25 }
 0x2de   : > { %v3954_v17 = vpop.eup %3953  ;;  %3519 = vmatprep.subr.bf16.mxu0 %v3518_v24  ;;  %v3526_v63 = vpack.c.bf16 %v3952_v51, %v3944_v13 }
 0x2df   : > { %v3956_v21 = vpop.eup %3955  ;;  %3521 = vmatpush1.bf16.msra.mxu0 %v3520_v6 }
 0x2e0   : > { %v3958_v5 = vpop.eup %3957  ;;  %3527 = vmatprep.subr.bf16.mxu1 %v3526_v63 }
 0x2e1   : > { %v3960_v45 = vpop.eup %3959  ;;  %3529 = vmatpush1.bf16.msra.mxu1 %v3528_v27 }
 0x2e2   : > { %v3962_v49 = vpop.eup %3961 }
 0x2e3   : > { %v3964_v58 = vpop.eup %3963  ;;  %v3524_v44 = vpack.c.bf16 %v3962_v49, %v3954_v17 }
 0x2e4   : > { %v3966_v23 = vpop.eup %3965  ;;  %v3522_v29 = vpack.c.bf16 %v3964_v58, %v3956_v21 }
 0x2e5   : > { %v3968_v43 = vpop.eup %3967  ;;  %v3532_v52 = vpack.c.bf16 %v3966_v23, %v3958_v5 }
 0x2e6   : > { %3523 = vmatprep.subr.bf16.mxu0 %v3522_v29  ;;  %v3530_v26 = vpack.c.bf16 %v3968_v43, %v3960_v45 }
 0x2e7   : > { %3525 = vmatpush1.bf16.msra.mxu0 %v3524_v44 }
 0x2e8   : > { %3531 = vmatprep.subr.bf16.mxu1 %v3530_v26 }
 0x2e9   : > { %3533 = vmatpush1.bf16.msra.mxu1 %v3532_v52 }
 0x2ea   : > { %3334 = vmatmul.mubr.msk.f32.vlgmr.msra.gmra.mrb[70].mxu0 %vm865_vm0, %v5017_v34 }
 0x2ec   : > { %3335 = vmatmul.mubr.msk.f32.vlgmr.msra.gmra.mrb[70].mxu1 %vm865_vm0, %v5017_v34 }
 0x38b   : > { %v2552_v30 = vpop.f32.mrb[64].mxu0 }
 0x38c   : > { %v2553_v54 = vadd.f32 %v2552_v30, %v2482_v7  ;;  %v2623_v9 = vpop.f32.mrb[64].mxu1  ;;  %v2554_v37 = vpop.f32.mrb[65].mxu0 }
 0x38d   : > { %v2624_v16 = vadd.f32 %v2623_v9, %v2482_v7  ;;  %v2555_v18 = vadd.f32 %v2554_v37, %v2482_v7  ;;  %v2625_v10 = vpop.f32.mrb[65].mxu1 }
 0x38e   : > { %v2626_v60 = vadd.f32 %v2625_v10, %v2482_v7 }
 0x38f   : > { %v3070_v59 = vcombine.low %v2553_v54, %v2555_v18 }
 0x390   : > { %v3071_v62 = vcombine.low %v2624_v16, %v2626_v60 }
 0x391   : > { %v3080_v34 = vrot.slane %v3070_v59, %v3079_v42 }
 0x392   : > { %v3087_v61 = vrot.slane %v3071_v62, %v3079_v42 }
 0x394   : > { %v3102_v19 = vcombine.low %v3080_v34, %v3087_v61 }
 0x396   : > { %v3110_v12 = vrot.slane %v3102_v19, %v3079_v42 }
 0x39c   : > { %v2694_v32 = vpop.f32.mrb[66].mxu0 }
 0x39d   : > { %v2695_v40 = vadd.f32 %v2694_v32, %v2482_v7  ;;  %v2765_v2 = vpop.f32.mrb[66].mxu1  ;;  %v2696_v53 = vpop.f32.mrb[67].mxu0 }
 0x39e   : > { %v2766_v38 = vadd.f32 %v2765_v2, %v2482_v7  ;;  %v2697_v20 = vadd.f32 %v2696_v53, %v2482_v7  ;;  %v2767_v55 = vpop.f32.mrb[67].mxu1 }
 0x39f   : > { %v2768_v3 = vadd.f32 %v2767_v55, %v2482_v7 }
 0x3a0   : > { %v3072_v46 = vcombine.low %v2695_v40, %v2697_v20 }
 0x3a1   : > { %v3073_v1 = vcombine.low %v2766_v38, %v2768_v3 }
 0x3a2   : > { %v3094_v56 = vrot.slane %v3072_v46, %v3079_v42 }
 0x3a3   : > { %v3101_v39 = vrot.slane %v3073_v1, %v3079_v42 }
 0x3a5   : > { %v3103_v11 = vcombine.low %v3094_v56, %v3101_v39 }
 0x3a7   : > { %v3117_v4 = vrot.slane %v3103_v11, %v3079_v42 }
 0x3a9   : > { %v3118_v35 = vcombine.low %v3110_v12, %v3117_v4 }
 0x3ab   : > { %3170 = vst [vmem:[%s5078_s30] sm:$0xff] %v3118_v35 }
 0x3ac   : > { %v2836_v33 = vpop.f32.mrb[68].mxu0 }
 0x3ad   : > { %v2837_v50 = vadd.f32 %v2836_v33, %v2482_v7  ;;  %v2907_v25 = vpop.f32.mrb[68].mxu1  ;;  %v2838_v31 = vpop.f32.mrb[69].mxu0 }
 0x3ae   : > { %v2908_v36 = vadd.f32 %v2907_v25, %v2482_v7  ;;  %v2839_v13 = vadd.f32 %v2838_v31, %v2482_v7  ;;  %v2909_v0 = vpop.f32.mrb[69].mxu1 }
 0x3af   : > { %v2910_v22 = vadd.f32 %v2909_v0, %v2482_v7 }
 0x3b0   : > { %v3119_v41 = vcombine.low %v2837_v50, %v2839_v13 }
 0x3b1   : > { %v3120_v6 = vcombine.low %v2908_v36, %v2910_v22 }
 0x3b2   : > { %v3129_v47 = vrot.slane %v3119_v41, %v3079_v42 }
 0x3b3   : > { %v3136_v24 = vrot.slane %v3120_v6, %v3079_v42 }
 0x3b5   : > { %v3151_v51 = vcombine.low %v3129_v47, %v3136_v24 }
 0x3b7   : > { %v3159_v26 = vrot.slane %v3151_v51, %v3079_v42 }
 0x3bd   : > { %v2978_v27 = vpop.f32.mrb[70].mxu0 }
 0x3be   : > { %v2979_v17 = vadd.f32 %v2978_v27, %v2482_v7  ;;  %v2980_v63 = vpop.f32.mrb[71].mxu0 }
 0x3bf   : > { %v3049_v21 = vpop.f32.mrb[70].mxu1  ;;  %v2981_v5 = vadd.f32 %v2980_v63, %v2482_v7 }
 0x3c0   : > { %v3050_v45 = vadd.f32 %v3049_v21, %v2482_v7  ;;  %v3051_v49 = vpop.f32.mrb[71].mxu1 }
 0x3c1   : > { %v3121_v58 = vcombine.low %v2979_v17, %v2981_v5  ;;  %v3052_v44 = vadd.f32 %v3051_v49, %v2482_v7 }
 0x3c3   : > { %v3143_v23 = vrot.slane %v3121_v58, %v3079_v42  ;;  %v3122_v29 = vcombine.low %v3050_v45, %v3052_v44 }
 0x3c5   : > { %v3150_v43 = vrot.slane %v3122_v29, %v3079_v42 }
 0x3c7   : > { %v3152_v52 = vcombine.low %v3143_v23, %v3150_v43 }
 0x3c9   : > { %v3166_v15 = vrot.slane %v3152_v52, %v3079_v42 }
 0x3cb   : > { %v3167_v57 = vcombine.low %v3159_v26, %v3166_v15 }
 0x3cd   : > { %3171 = vst [vmem:[%s5078_s30 + $0x8] sm:$0xff] %v3167_v57 }
 0x3ce   : > { %3982 = shalt.err (!%p3979_p3)
}
 0x3cf   : > { %s3983_s21 = scalar_lea.hbm %s5086_s16, 256  ;;  %s3987_s24 = scalar_lea.hbm %s5138_s7, 512 }
 0x3d0   : > { %p3984_p4 = scmp.ne.s32.totalorder %s5086_s16, %s3983_s21  ;;  %p3988_p9 = scmp.lt.u32.totalorder %s5086_s16, %s5138_s7 }
 0x3d1   : > { %p3989_p10 = scmp.lt.u32.totalorder %s3987_s24, %s3983_s21  ;;  %p3991_p12 = scmp.lt.u32.totalorder %s3983_s21, %s5086_s16 }
 0x3d2   : > { %p3985_p7 = pnand %p3984_p4, %p4119_p5 }
 0x3d3   : > { %p3990_p11 = por %p3989_p10, %p3988_p9 }
 0x3d4   : > { %p3986_p8 = pneg %p3985_p7 }
 0x3d5   : > { %p3992_p13 = por %p3991_p12, %p3990_p11 }
 0x3d7   : > { %p3993_p0 = pnand %p3992_p13, %p3986_p8 }
 0x3d9   : > { %3996 = shalt.err (!%p3993_p0)
}
 0x3da   : > { %3534 = dma.vmem_to_hbm [thread:$0]  (%p4119_p5), %s5088_s10, 256, %s5086_s16, %s3173_s17  }
 0x3db PF: > { %p3540_p1 = scmp.ge.s32.totalorder %s4031_s29, 2  ;;  %s3199_s9 = sand.u32 1, %s4019_s26  }
 0x3dc   : > { %s3200_s14 = scalar_lea.sflag [#allocation4], %s3199_s9 }
 0x3dd   : > { %p3537_p2 = pnand %p3540_p1, %p4123_p6 }
 0x3df   : > { %4014 = dma.done.wait (!%p3537_p2), %s3200_s14, 256  }
 0x3e0   : > { %4016 = vsyncadd (!%p3537_p2), %s3200_s14, 4294967040  ;;  %p19_p3 = scmp.ge.s32.totalorder %s4106_s8, 4   ;;  %s5189_s26 = smov %s4023_s27 }
 0x3e1   : > { %s5190_s27 = smov %s4027_s28  ;;  %s5191_s28 = smov %s4117_s11 }
 0x3e2   : > { %s5192_s29 = smov %s4106_s8  ;;  %21 = sbr.rel (!%p19_p3) target bundleno = 6 (0x6), region = 88 }
 0x3e9   :  { %3205 = vsyncpa [#allocation4], 1 }
 0x3ea   :  { %3207 = vsyncpa [#allocation4 + $0x1], 1 }

</bundles_post_ra>
